<compile_context>
chip_gen: v5e
topology: v5e:2x2
jax: 0.10.0
libtpu: 0.0.40
codegen_flags: <defaults>
</compile_context>

<pallas_src>
import functools

import jax
import jax.numpy as jnp
import numpy as np
from jax.experimental import pallas as pl
from jax.experimental.pallas import tpu as pltpu


# ----------------------------------------------------------------------------
# Fused kernel: conv(5)+ReLU+pool -> conv(3)+ReLU+pool -> BiLSTM(h_n) -> FC
# ----------------------------------------------------------------------------
def _fused_crcnn_kernel(
    epar_ref,              # (B*4, n_max, D) f32  mod-4 parity slabs of padded conv0 input
    w0_ref, b0_ref,        # (K0, D, C) bf16, (1, C) f32
    w1_ref, b1_ref,        # (K1, C, C) bf16, (1, C) f32
    wih_ref, bih_ref,      # (C, 8H) bf16, (1, 8H) f32   [fwd | bwd], b_ih + b_hh folded
    whh_f_ref, whh_b_ref,  # (H, 4H) bf16 each
    wfc_ref, bfc_ref,      # (2H, Cpad) bf16, (1, Cpad) f32
    o_ref,                 # (B, Cpad) f32
    f_ref,                 # scratch (2*F0cap, C) f32 : parity slabs of padded conv1 input
    xz_ref,                # scratch (T*B, C) f32     : time-major LSTM inputs
    *, L,
):
    f32, bf16 = jnp.float32, jnp.bfloat16
    B = o_ref.shape[0]
    K0, _, C = w0_ref.shape
    K1 = w1_ref.shape[0]
    H = whh_f_ref.shape[0]

    # Static lengths (Conv1d stride=1 pad=1, floor-mode MaxPool1d(2,2)).
    Lout0 = L + 2 - K0 + 1
    Lp0 = Lout0 // 2
    Lout1 = Lp0 + 2 - K1 + 1
    T = Lout1 // 2
    n_out0 = [len(range(s, Lout0, 4)) for s in range(4)]  # conv0 rows per (position % 4)
    nPE = (Lp0 + 1) // 2       # pooled rows at even positions
    nPO = Lp0 // 2             # pooled rows at odd positions
    nE1 = (Lout1 + 1) // 2     # conv1 rows at even positions
    nO1 = Lout1 // 2           # conv1 rows at odd positions
    F0cap = (Lp0 + 3) // 2     # per-parity capacity of the padded conv1 input

    b0 = b0_ref[...]
    b1 = b1_ref[...]

    # Only interior rows of the conv1 parity slabs are ever written, so zero the
    # tiny buffer once; the pad rows stay zero for every batch element.
    f_ref[...] = jnp.zeros(f_ref.shape, f32)

    for b in range(B):
        # ---- Conv1d(D->C, K0=5, pad=1) + ReLU, outputs split by position mod 4 --
        slabs = [epar_ref[b * 4 + r] for r in range(4)]      # (n_max, D) each
        y0 = []
        for s in range(4):
            ns = n_out0[s]
            acc = jnp.zeros((ns, C), f32)
            for k in range(K0):
                r = (s + k) % 4
                off = (s + k) // 4
                x = slabs[r][off:off + ns, :].astype(bf16)
                acc = acc + jnp.dot(x, w0_ref[k], preferred_element_type=f32)
            y0.append(jnp.maximum(acc + b0, 0.0))
        # ---- MaxPool1d(2,2): dense max of contiguous parity slabs ----------------
        pe = jnp.maximum(y0[0][:nPE], y0[1][:nPE])           # pooled positions 0,2,4,...
        po = jnp.maximum(y0[2][:nPO], y0[3][:nPO])           # pooled positions 1,3,5,...

        # ---- Conv1d(C->C, K1=3, pad=1) + ReLU, parity-split (positions mod 2) ----
        # Padded conv1 input P1 = [0, pooled..., 0]; even/odd-index slabs of P1:
        f_ref[pl.ds(1, nPO), :] = po                         # even indices of P1
        f_ref[pl.ds(F0cap, nPE), :] = pe                     # odd  indices of P1
        fsl = (f_ref[pl.ds(0, F0cap), :], f_ref[pl.ds(F0cap, F0cap), :])
        y1 = []
        for s, nrows in ((0, nE1), (1, nO1)):
            acc = jnp.zeros((nrows, C), f32)
            for k in range(K1):
                r = (s + k) % 2
                off = (s + k) // 2
                x = fsl[r][off:off + nrows, :].astype(bf16)
                acc = acc + jnp.dot(x, w1_ref[k], preferred_element_type=f32)
            y1.append(jnp.maximum(acc + b1, 0.0))
        # ---- MaxPool1d(2,2) -> LSTM inputs, stored time-major (row = t*B + b) ----
        z = jnp.maximum(y1[0][:T], y1[1][:T])                # (T, C)
        for t in range(T):
            xz_ref[pl.ds(t * B + b, 1), :] = z[t:t + 1, :]

    # ---- BiLSTM: input projection hoisted to one matmul; recurrence batched over B
    xs = xz_ref[...].astype(bf16)                            # (T*B, C), time-major
    gx = jnp.dot(xs, wih_ref[...], preferred_element_type=f32) + bih_ref[...]  # (T*B, 8H)

    def cell(g, c):                                          # torch gate order i, f, g, o
        i_g = jax.nn.sigmoid(g[:, 0 * H:1 * H])
        f_g = jax.nn.sigmoid(g[:, 1 * H:2 * H])
        g_g = jnp.tanh(g[:, 2 * H:3 * H])
        o_g = jax.nn.sigmoid(g[:, 3 * H:4 * H])
        c_n = f_g * c + i_g * g_g
        return o_g * jnp.tanh(c_n), c_n

    h_f = jnp.zeros((B, H), f32)
    c_f = jnp.zeros((B, H), f32)
    h_b = jnp.zeros((B, H), f32)
    c_b = jnp.zeros((B, H), f32)
    for i in range(T):                                       # fwd/bwd chains interleaved
        gx_f = gx[i * B:(i + 1) * B, 0:4 * H]
        gx_b = gx[(T - 1 - i) * B:(T - i) * B, 4 * H:8 * H]
        g_f = gx_f + jnp.dot(h_f.astype(bf16), whh_f_ref[...], preferred_element_type=f32)
        g_b = gx_b + jnp.dot(h_b.astype(bf16), whh_b_ref[...], preferred_element_type=f32)
        h_f, c_f = cell(g_f, c_f)
        h_b, c_b = cell(g_b, c_b)

    # feature = cat(h_n[0], h_n[1]); nn.Dropout is identity in eval; batched FC,
    # one lane-dense (B, Cpad) store.
    feat = jnp.concatenate([h_f, h_b], axis=1).astype(bf16)  # (B, 2H)
    o_ref[...] = jnp.dot(feat, wfc_ref[...], preferred_element_type=f32) + bfc_ref[...]


def _fused_forward(epar, w0, b0, w1, b1, wih, bih, whh_f, whh_b, wfc, bfc, *, L, B):
    K0 = w0.shape[0]
    K1 = w1.shape[0]
    C = w0.shape[2]
    Lout0 = L + 2 - K0 + 1
    Lp0 = Lout0 // 2
    Lout1 = Lp0 + 2 - K1 + 1
    T = Lout1 // 2
    assert Lout0 >= 4 and Lp0 >= 2 and T >= 1, "sequence too short for this model"
    cpad = wfc.shape[1]
    f0cap = (Lp0 + 3) // 2

    args = (epar, w0, b0, w1, b1, wih, bih, whh_f, whh_b, wfc, bfc)
    in_specs = [pl.BlockSpec(a.shape, lambda i, n=a.ndim: (0,) * n) for a in args]
    kernel = functools.partial(_fused_crcnn_kernel, L=L)
    return pl.pallas_call(
        kernel,
        out_shape=jax.ShapeDtypeStruct((B, cpad), jnp.float32),
        grid=(1,),
        in_specs=in_specs,
        out_specs=pl.BlockSpec((B, cpad), lambda i: (0, 0)),
        scratch_shapes=[
            pltpu.VMEM((2 * f0cap, C), jnp.float32),   # conv1 padded-input parity slabs
            pltpu.VMEM((T * B, C), jnp.float32),       # time-major LSTM inputs
        ],
        compiler_params=pltpu.CompilerParams(dimension_semantics=("arbitrary",)),
    )(*args)


# ----------------------------------------------------------------------------
# Full forward (eval mode: word dropout and nn.Dropout are identity)
# ----------------------------------------------------------------------------
def efficient_char_crnn_forward(tokens, params):
    # Embedding gather kept as plain-JAX glue (not a hot conv/matmul path).
    emb = jnp.take(params["embedding"], tokens, axis=0)        # (B, L, D)
    B, L, D = emb.shape
    classes = params["fc_w"].shape[0]
    bf16 = jnp.bfloat16

    # mod-4 parity slabs of the zero-padded (pad=1) conv0 input: the in-kernel
    # conv/pool pipeline then needs only dense contiguous slices.
    p0 = jnp.pad(emb, ((0, 0), (1, 1), (0, 0)))
    n_max = -(-(L + 2) // 4)
    slabs = []
    for r in range(4):
        s = p0[:, r::4, :]
        slabs.append(jnp.pad(s, ((0, 0), (0, n_max - s.shape[1]), (0, 0))))
    epar = jnp.stack(slabs, axis=1).reshape(B * 4, n_max, D)

    # PyTorch parameter layouts -> kernel layouts (bf16 MXU operands, f32 biases).
    w0 = jnp.transpose(params["conv0_w"], (2, 1, 0)).astype(bf16)     # (K0, Cin, Cout)
    w1 = jnp.transpose(params["conv1_w"], (2, 1, 0)).astype(bf16)
    b0 = params["conv0_b"].astype(jnp.float32)[None, :]
    b1 = params["conv1_b"].astype(jnp.float32)[None, :]
    wih = jnp.concatenate([params["w_ih_f"].T, params["w_ih_b"].T], axis=1).astype(bf16)
    bih = jnp.concatenate([params["b_ih_f"] + params["b_hh_f"],
                           params["b_ih_b"] + params["b_hh_b"]])[None, :].astype(jnp.float32)
    whh_f = params["w_hh_f"].T.astype(bf16)                           # (H, 4H)
    whh_b = params["w_hh_b"].T.astype(bf16)
    cpad = ((classes + 127) // 128) * 128                             # lane-dense FC output
    wfc = jnp.pad(params["fc_w"].T, ((0, 0), (0, cpad - classes))).astype(bf16)
    bfc = jnp.pad(params["fc_b"], (0, cpad - classes))[None, :].astype(jnp.float32)

    out = _fused_forward(epar, w0, b0, w1, b1, wih, bih, whh_f, whh_b, wfc, bfc, L=L, B=B)
    return out[:, :classes]


# ----------------------------------------------------------------------------
# Pure-JAX reference (mirrors the PyTorch module, eval mode, torch layouts)
# ----------------------------------------------------------------------------
def reference_forward(tokens, params):
    emb = jnp.take(params["embedding"], tokens, axis=0)               # (B, L, D)

    def conv1d(x, w, b):                                              # w: (Cout, Cin, K)
        K = w.shape[2]
        Lout = x.shape[1] + 2 - K + 1
        xp = jnp.pad(x, ((0, 0), (1, 1), (0, 0)))
        y = jnp.zeros((x.shape[0], Lout, w.shape[0]), jnp.float32) + b[None, None, :]
        for k in range(K):
            y = y + jnp.einsum("blc,oc->blo", xp[:, k:k + Lout, :], w[:, :, k])
        return y

    def pool2(x):
        Lp = x.shape[1] // 2
        return jnp.maximum(x[:, 0:2 * Lp:2, :], x[:, 1:2 * Lp:2, :])

    r = pool2(jax.nn.relu(conv1d(emb, params["conv0_w"], params["conv0_b"])))
    r = pool2(jax.nn.relu(conv1d(r, params["conv1_w"], params["conv1_b"])))

    H = params["w_hh_f"].shape[1]

    def lstm_dir(x, wih, whh, bih, bhh, reverse):
        Bsz, T, _ = x.shape
        h = jnp.zeros((Bsz, H), jnp.float32)
        c = jnp.zeros((Bsz, H), jnp.float32)
        order = range(T - 1, -1, -1) if reverse else range(T)
        for t in order:
            g = x[:, t, :] @ wih.T + bih + h @ whh.T + bhh
            i = jax.nn.sigmoid(g[:, 0 * H:1 * H])
            f = jax.nn.sigmoid(g[:, 1 * H:2 * H])
            gg = jnp.tanh(g[:, 2 * H:3 * H])
            o = jax.nn.sigmoid(g[:, 3 * H:4 * H])
            c = f * c + i * gg
            h = o * jnp.tanh(c)
        return h

    h_f = lstm_dir(r, params["w_ih_f"], params["w_hh_f"], params["b_ih_f"],
                   params["b_hh_f"], reverse=False)
    h_b = lstm_dir(r, params["w_ih_b"], params["w_hh_b"], params["b_ih_b"],
                   params["b_hh_b"], reverse=True)
    feat = jnp.concatenate([h_f, h_b], axis=1)
    return feat @ params["fc_w"].T + params["fc_b"]


def init_params(key, vocab_size, word_dim, classes, pad_idx=0):
    C, H = 128, 128                            # fixed by the module
    ks = jax.random.split(key, 16)

    def nrm(k, shape, scale=0.1):
        return scale * jax.random.normal(k, shape, jnp.float32)

    emb = nrm(ks[0], (vocab_size, word_dim)).at[pad_idx].set(0.0)
    return {                                   # torch-native layouts
        "embedding": emb,
        "conv0_w": nrm(ks[1], (C, word_dim, 5)),   # Conv1d: (Cout, Cin, K)
        "conv0_b": nrm(ks[2], (C,)),
        "conv1_w": nrm(ks[3], (C, C, 3)),
        "conv1_b": nrm(ks[4], (C,)),
        "w_ih_f": nrm(ks[5], (4 * H, C)),          # LSTM weight_ih_l0 (i,f,g,o rows)
        "w_hh_f": nrm(ks[6], (4 * H, H)),
        "b_ih_f": nrm(ks[7], (4 * H,)),
        "b_hh_f": nrm(ks[8], (4 * H,)),
        "w_ih_b": nrm(ks[9], (4 * H, C)),          # *_reverse
        "w_hh_b": nrm(ks[10], (4 * H, H)),
        "b_ih_b": nrm(ks[11], (4 * H,)),
        "b_hh_b": nrm(ks[12], (4 * H,)),
        "fc_w": nrm(ks[13], (classes, 2 * H)),     # Linear: (out, in)
        "fc_b": nrm(ks[14], (classes,)),
    }


if __name__ == "__main__":
    key = jax.random.PRNGKey(0)
    B, L = 2, 24                        # batch, char-token sequence length
    vocab_size, word_dim, classes = 32, 128, 4

    pkey, tkey = jax.random.split(key)
    params = init_params(pkey, vocab_size, word_dim, classes)
    tokens = jax.random.randint(tkey, (B, L), 0, vocab_size, dtype=jnp.int32)

    out = jax.jit(efficient_char_crnn_forward)(tokens, params)
    out = jax.block_until_ready(out)
    assert out.shape == (B, classes), out.shape

    ref = jax.block_until_ready(jax.jit(reference_forward)(tokens, params))
    np.testing.assert_allclose(np.asarray(out), np.asarray(ref), rtol=5e-2, atol=5e-2)
    print("KERNEL_OK")
</pallas_src>

<mosaic_0001>
module attributes {stable_mosaic.version = 11 : i64} {
  func.func @_fused_crcnn_kernel(%arg0: i32, %arg1: memref<8x7x128xf32, #tpu.memory_space<vmem>>, %arg2: memref<5x128x128xbf16, #tpu.memory_space<vmem>>, %arg3: memref<1x128xf32, #tpu.memory_space<vmem>>, %arg4: memref<3x128x128xbf16, #tpu.memory_space<vmem>>, %arg5: memref<1x128xf32, #tpu.memory_space<vmem>>, %arg6: memref<128x1024xbf16, #tpu.memory_space<vmem>>, %arg7: memref<1x1024xf32, #tpu.memory_space<vmem>>, %arg8: memref<128x512xbf16, #tpu.memory_space<vmem>>, %arg9: memref<128x512xbf16, #tpu.memory_space<vmem>>, %arg10: memref<256x128xbf16, #tpu.memory_space<vmem>>, %arg11: memref<1x128xf32, #tpu.memory_space<vmem>>, %arg12: memref<2x128xf32, #tpu.memory_space<vmem>>, %arg13: memref<14x128xf32, #tpu.memory_space<vmem>>, %arg14: memref<10x128xf32, #tpu.memory_space<vmem>>) attributes {dimension_semantics = [#tpu.dimension_semantics<arbitrary>], iteration_bounds = array<i64: 1>, scalar_prefetch = 0 : i64, scratch_operands = 2 : i64, tpu.core_type = #tpu.core_type<tc>, window_params = [{pipeline_mode = #tpu.pipeline_mode<synchronous>, transform_indices = @transform_0, window_bounds = array<i64: 8, 7, 128>}, {pipeline_mode = #tpu.pipeline_mode<synchronous>, transform_indices = @transform_1, window_bounds = array<i64: 5, 128, 128>}, {pipeline_mode = #tpu.pipeline_mode<synchronous>, transform_indices = @transform_2, window_bounds = array<i64: 1, 128>}, {pipeline_mode = #tpu.pipeline_mode<synchronous>, transform_indices = @transform_3, window_bounds = array<i64: 3, 128, 128>}, {pipeline_mode = #tpu.pipeline_mode<synchronous>, transform_indices = @transform_4, window_bounds = array<i64: 1, 128>}, {pipeline_mode = #tpu.pipeline_mode<synchronous>, transform_indices = @transform_5, window_bounds = array<i64: 128, 1024>}, {pipeline_mode = #tpu.pipeline_mode<synchronous>, transform_indices = @transform_6, window_bounds = array<i64: 1, 1024>}, {pipeline_mode = #tpu.pipeline_mode<synchronous>, transform_indices = @transform_7, window_bounds = array<i64: 128, 512>}, {pipeline_mode = #tpu.pipeline_mode<synchronous>, transform_indices = @transform_8, window_bounds = array<i64: 128, 512>}, {pipeline_mode = #tpu.pipeline_mode<synchronous>, transform_indices = @transform_9, window_bounds = array<i64: 256, 128>}, {pipeline_mode = #tpu.pipeline_mode<synchronous>, transform_indices = @transform_10, window_bounds = array<i64: 1, 128>}, {pipeline_mode = #tpu.pipeline_mode<synchronous>, transform_indices = @transform_11, window_bounds = array<i64: 2, 128>}]} {
    %c0 = arith.constant 0 : index
    %c0_0 = arith.constant 0 : index
    %0 = vector.load %arg3[%c0, %c0_0] : memref<1x128xf32, #tpu.memory_space<vmem>>, vector<1x128xf32>
    %c0_1 = arith.constant 0 : index
    %c0_2 = arith.constant 0 : index
    %1 = vector.load %arg5[%c0_1, %c0_2] : memref<1x128xf32, #tpu.memory_space<vmem>>, vector<1x128xf32>
    %cst = arith.constant 0.000000e+00 : f32
    %2 = vector.broadcast %cst : f32 to vector<14x128xf32>
    %c0_3 = arith.constant 0 : index
    %c0_4 = arith.constant 0 : index
    %3 = vector.load %arg13[%c0_3, %c0_4] : memref<14x128xf32, #tpu.memory_space<vmem>>, vector<14x128xf32>
    tpu.vector_store %arg13[%c0_3, %c0_4], %2 {strides = array<i32>} : memref<14x128xf32, #tpu.memory_space<vmem>>, vector<14x128xf32>,
    %c0_5 = arith.constant 0 : index
    %c0_6 = arith.constant 0 : index
    %c0_7 = arith.constant 0 : index
    %4 = vector.load %arg1[%c0_5, %c0_6, %c0_7] : memref<8x7x128xf32, #tpu.memory_space<vmem>>, vector<1x7x128xf32>
    %5 = vector.shape_cast %4 : vector<1x7x128xf32> to vector<7x128xf32>
    %c1 = arith.constant 1 : index
    %c0_8 = arith.constant 0 : index
    %c0_9 = arith.constant 0 : index
    %6 = vector.load %arg1[%c1, %c0_8, %c0_9] : memref<8x7x128xf32, #tpu.memory_space<vmem>>, vector<1x7x128xf32>
    %7 = vector.shape_cast %6 : vector<1x7x128xf32> to vector<7x128xf32>
    %c2 = arith.constant 2 : index
    %c0_10 = arith.constant 0 : index
    %c0_11 = arith.constant 0 : index
    %8 = vector.load %arg1[%c2, %c0_10, %c0_11] : memref<8x7x128xf32, #tpu.memory_space<vmem>>, vector<1x7x128xf32>
    %9 = vector.shape_cast %8 : vector<1x7x128xf32> to vector<7x128xf32>
    %c3 = arith.constant 3 : index
    %c0_12 = arith.constant 0 : index
    %c0_13 = arith.constant 0 : index
    %10 = vector.load %arg1[%c3, %c0_12, %c0_13] : memref<8x7x128xf32, #tpu.memory_space<vmem>>, vector<1x7x128xf32>
    %11 = vector.shape_cast %10 : vector<1x7x128xf32> to vector<7x128xf32>
    %cst_14 = arith.constant 0.000000e+00 : f32
    %12 = vector.broadcast %cst_14 : f32 to vector<6x128xf32>
    %13 = vector.extract_strided_slice %5 {offsets = [0, 0], sizes = [6, 128], strides = [1, 1]} : vector<7x128xf32> to vector<6x128xf32>
    %14 = arith.truncf %13 : vector<6x128xf32> to vector<6x128xbf16>
    %c0_15 = arith.constant 0 : index
    %c0_16 = arith.constant 0 : index
    %c0_17 = arith.constant 0 : index
    %15 = vector.load %arg2[%c0_15, %c0_16, %c0_17] : memref<5x128x128xbf16, #tpu.memory_space<vmem>>, vector<1x128x128xbf16>
    %16 = vector.shape_cast %15 : vector<1x128x128xbf16> to vector<128x128xbf16>
    %cst_18 = arith.constant dense<0.000000e+00> : vector<6x128xf32>
    %17 = tpu.matmul %14, %16, %cst_18 {dimension_numbers = #tpu.dot_dimension_numbers<[1], [0], [0], [1], [0, 0, 1, 1], [], []>} : vector<6x128xbf16>, vector<128x128xbf16>, vector<6x128xf32> -> vector<6x128xf32>
    %18 = arith.addf %12, %17 : vector<6x128xf32>
    %19 = vector.extract_strided_slice %7 {offsets = [0, 0], sizes = [6, 128], strides = [1, 1]} : vector<7x128xf32> to vector<6x128xf32>
    %20 = arith.truncf %19 : vector<6x128xf32> to vector<6x128xbf16>
    %c1_19 = arith.constant 1 : index
    %c0_20 = arith.constant 0 : index
    %c0_21 = arith.constant 0 : index
    %21 = vector.load %arg2[%c1_19, %c0_20, %c0_21] : memref<5x128x128xbf16, #tpu.memory_space<vmem>>, vector<1x128x128xbf16>
    %22 = vector.shape_cast %21 : vector<1x128x128xbf16> to vector<128x128xbf16>
    %cst_22 = arith.constant dense<0.000000e+00> : vector<6x128xf32>
    %23 = tpu.matmul %20, %22, %cst_22 {dimension_numbers = #tpu.dot_dimension_numbers<[1], [0], [0], [1], [0, 0, 1, 1], [], []>} : vector<6x128xbf16>, vector<128x128xbf16>, vector<6x128xf32> -> vector<6x128xf32>
    %24 = arith.addf %18, %23 : vector<6x128xf32>
    %25 = vector.extract_strided_slice %9 {offsets = [0, 0], sizes = [6, 128], strides = [1, 1]} : vector<7x128xf32> to vector<6x128xf32>
    %26 = arith.truncf %25 : vector<6x128xf32> to vector<6x128xbf16>
    %c2_23 = arith.constant 2 : index
    %c0_24 = arith.constant 0 : index
    %c0_25 = arith.constant 0 : index
    %27 = vector.load %arg2[%c2_23, %c0_24, %c0_25] : memref<5x128x128xbf16, #tpu.memory_space<vmem>>, vector<1x128x128xbf16>
    %28 = vector.shape_cast %27 : vector<1x128x128xbf16> to vector<128x128xbf16>
    %cst_26 = arith.constant dense<0.000000e+00> : vector<6x128xf32>
    %29 = tpu.matmul %26, %28, %cst_26 {dimension_numbers = #tpu.dot_dimension_numbers<[1], [0], [0], [1], [0, 0, 1, 1], [], []>} : vector<6x128xbf16>, vector<128x128xbf16>, vector<6x128xf32> -> vector<6x128xf32>
    %30 = arith.addf %24, %29 : vector<6x128xf32>
    %31 = vector.extract_strided_slice %11 {offsets = [0, 0], sizes = [6, 128], strides = [1, 1]} : vector<7x128xf32> to vector<6x128xf32>
    %32 = arith.truncf %31 : vector<6x128xf32> to vector<6x128xbf16>
    %c3_27 = arith.constant 3 : index
    %c0_28 = arith.constant 0 : index
    %c0_29 = arith.constant 0 : index
    %33 = vector.load %arg2[%c3_27, %c0_28, %c0_29] : memref<5x128x128xbf16, #tpu.memory_space<vmem>>, vector<1x128x128xbf16>
    %34 = vector.shape_cast %33 : vector<1x128x128xbf16> to vector<128x128xbf16>
    %cst_30 = arith.constant dense<0.000000e+00> : vector<6x128xf32>
    %35 = tpu.matmul %32, %34, %cst_30 {dimension_numbers = #tpu.dot_dimension_numbers<[1], [0], [0], [1], [0, 0, 1, 1], [], []>} : vector<6x128xbf16>, vector<128x128xbf16>, vector<6x128xf32> -> vector<6x128xf32>
    %36 = arith.addf %30, %35 : vector<6x128xf32>
    %37 = vector.extract_strided_slice %5 {offsets = [1, 0], sizes = [6, 128], strides = [1, 1]} : vector<7x128xf32> to vector<6x128xf32>
    %38 = arith.truncf %37 : vector<6x128xf32> to vector<6x128xbf16>
    %c4 = arith.constant 4 : index
    %c0_31 = arith.constant 0 : index
    %c0_32 = arith.constant 0 : index
    %39 = vector.load %arg2[%c4, %c0_31, %c0_32] : memref<5x128x128xbf16, #tpu.memory_space<vmem>>, vector<1x128x128xbf16>
    %40 = vector.shape_cast %39 : vector<1x128x128xbf16> to vector<128x128xbf16>
    %cst_33 = arith.constant dense<0.000000e+00> : vector<6x128xf32>
    %41 = tpu.matmul %38, %40, %cst_33 {dimension_numbers = #tpu.dot_dimension_numbers<[1], [0], [0], [1], [0, 0, 1, 1], [], []>} : vector<6x128xbf16>, vector<128x128xbf16>, vector<6x128xf32> -> vector<6x128xf32>
    %42 = arith.addf %36, %41 : vector<6x128xf32>
    %43 = vector.broadcast %0 : vector<1x128xf32> to vector<6x128xf32>
    %44 = arith.addf %42, %43 : vector<6x128xf32>
    %cst_34 = arith.constant 0.000000e+00 : f32
    %45 = vector.broadcast %cst_34 : f32 to vector<6x128xf32>
    %46 = arith.maximumf %44, %45 : vector<6x128xf32>
    %cst_35 = arith.constant 0.000000e+00 : f32
    %47 = vector.broadcast %cst_35 : f32 to vector<6x128xf32>
    %48 = vector.extract_strided_slice %7 {offsets = [0, 0], sizes = [6, 128], strides = [1, 1]} : vector<7x128xf32> to vector<6x128xf32>
    %49 = arith.truncf %48 : vector<6x128xf32> to vector<6x128xbf16>
    %c0_36 = arith.constant 0 : index
    %c0_37 = arith.constant 0 : index
    %c0_38 = arith.constant 0 : index
    %50 = vector.load %arg2[%c0_36, %c0_37, %c0_38] : memref<5x128x128xbf16, #tpu.memory_space<vmem>>, vector<1x128x128xbf16>
    %51 = vector.shape_cast %50 : vector<1x128x128xbf16> to vector<128x128xbf16>
    %cst_39 = arith.constant dense<0.000000e+00> : vector<6x128xf32>
    %52 = tpu.matmul %49, %51, %cst_39 {dimension_numbers = #tpu.dot_dimension_numbers<[1], [0], [0], [1], [0, 0, 1, 1], [], []>} : vector<6x128xbf16>, vector<128x128xbf16>, vector<6x128xf32> -> vector<6x128xf32>
    %53 = arith.addf %47, %52 : vector<6x128xf32>
    %54 = vector.extract_strided_slice %9 {offsets = [0, 0], sizes = [6, 128], strides = [1, 1]} : vector<7x128xf32> to vector<6x128xf32>
    %55 = arith.truncf %54 : vector<6x128xf32> to vector<6x128xbf16>
    %c1_40 = arith.constant 1 : index
    %c0_41 = arith.constant 0 : index
    %c0_42 = arith.constant 0 : index
    %56 = vector.load %arg2[%c1_40, %c0_41, %c0_42] : memref<5x128x128xbf16, #tpu.memory_space<vmem>>, vector<1x128x128xbf16>
    %57 = vector.shape_cast %56 : vector<1x128x128xbf16> to vector<128x128xbf16>
    %cst_43 = arith.constant dense<0.000000e+00> : vector<6x128xf32>
    %58 = tpu.matmul %55, %57, %cst_43 {dimension_numbers = #tpu.dot_dimension_numbers<[1], [0], [0], [1], [0, 0, 1, 1], [], []>} : vector<6x128xbf16>, vector<128x128xbf16>, vector<6x128xf32> -> vector<6x128xf32>
    %59 = arith.addf %53, %58 : vector<6x128xf32>
    %60 = vector.extract_strided_slice %11 {offsets = [0, 0], sizes = [6, 128], strides = [1, 1]} : vector<7x128xf32> to vector<6x128xf32>
    %61 = arith.truncf %60 : vector<6x128xf32> to vector<6x128xbf16>
    %c2_44 = arith.constant 2 : index
    %c0_45 = arith.constant 0 : index
    %c0_46 = arith.constant 0 : index
    %62 = vector.load %arg2[%c2_44, %c0_45, %c0_46] : memref<5x128x128xbf16, #tpu.memory_space<vmem>>, vector<1x128x128xbf16>
    %63 = vector.shape_cast %62 : vector<1x128x128xbf16> to vector<128x128xbf16>
    %cst_47 = arith.constant dense<0.000000e+00> : vector<6x128xf32>
    %64 = tpu.matmul %61, %63, %cst_47 {dimension_numbers = #tpu.dot_dimension_numbers<[1], [0], [0], [1], [0, 0, 1, 1], [], []>} : vector<6x128xbf16>, vector<128x128xbf16>, vector<6x128xf32> -> vector<6x128xf32>
    %65 = arith.addf %59, %64 : vector<6x128xf32>
    %66 = vector.extract_strided_slice %5 {offsets = [1, 0], sizes = [6, 128], strides = [1, 1]} : vector<7x128xf32> to vector<6x128xf32>
    %67 = arith.truncf %66 : vector<6x128xf32> to vector<6x128xbf16>
    %c3_48 = arith.constant 3 : index
    %c0_49 = arith.constant 0 : index
    %c0_50 = arith.constant 0 : index
    %68 = vector.load %arg2[%c3_48, %c0_49, %c0_50] : memref<5x128x128xbf16, #tpu.memory_space<vmem>>, vector<1x128x128xbf16>
    %69 = vector.shape_cast %68 : vector<1x128x128xbf16> to vector<128x128xbf16>
    %cst_51 = arith.constant dense<0.000000e+00> : vector<6x128xf32>
    %70 = tpu.matmul %67, %69, %cst_51 {dimension_numbers = #tpu.dot_dimension_numbers<[1], [0], [0], [1], [0, 0, 1, 1], [], []>} : vector<6x128xbf16>, vector<128x128xbf16>, vector<6x128xf32> -> vector<6x128xf32>
    %71 = arith.addf %65, %70 : vector<6x128xf32>
    %72 = vector.extract_strided_slice %7 {offsets = [1, 0], sizes = [6, 128], strides = [1, 1]} : vector<7x128xf32> to vector<6x128xf32>
    %73 = arith.truncf %72 : vector<6x128xf32> to vector<6x128xbf16>
    %c4_52 = arith.constant 4 : index
    %c0_53 = arith.constant 0 : index
    %c0_54 = arith.constant 0 : index
    %74 = vector.load %arg2[%c4_52, %c0_53, %c0_54] : memref<5x128x128xbf16, #tpu.memory_space<vmem>>, vector<1x128x128xbf16>
    %75 = vector.shape_cast %74 : vector<1x128x128xbf16> to vector<128x128xbf16>
    %cst_55 = arith.constant dense<0.000000e+00> : vector<6x128xf32>
    %76 = tpu.matmul %73, %75, %cst_55 {dimension_numbers = #tpu.dot_dimension_numbers<[1], [0], [0], [1], [0, 0, 1, 1], [], []>} : vector<6x128xbf16>, vector<128x128xbf16>, vector<6x128xf32> -> vector<6x128xf32>
    %77 = arith.addf %71, %76 : vector<6x128xf32>
    %78 = vector.broadcast %0 : vector<1x128xf32> to vector<6x128xf32>
    %79 = arith.addf %77, %78 : vector<6x128xf32>
    %cst_56 = arith.constant 0.000000e+00 : f32
    %80 = vector.broadcast %cst_56 : f32 to vector<6x128xf32>
    %81 = arith.maximumf %79, %80 : vector<6x128xf32>
    %cst_57 = arith.constant 0.000000e+00 : f32
    %82 = vector.broadcast %cst_57 : f32 to vector<5x128xf32>
    %83 = vector.extract_strided_slice %9 {offsets = [0, 0], sizes = [5, 128], strides = [1, 1]} : vector<7x128xf32> to vector<5x128xf32>
    %84 = arith.truncf %83 : vector<5x128xf32> to vector<5x128xbf16>
    %c0_58 = arith.constant 0 : index
    %c0_59 = arith.constant 0 : index
    %c0_60 = arith.constant 0 : index
    %85 = vector.load %arg2[%c0_58, %c0_59, %c0_60] : memref<5x128x128xbf16, #tpu.memory_space<vmem>>, vector<1x128x128xbf16>
    %86 = vector.shape_cast %85 : vector<1x128x128xbf16> to vector<128x128xbf16>
    %cst_61 = arith.constant dense<0.000000e+00> : vector<5x128xf32>
    %87 = tpu.matmul %84, %86, %cst_61 {dimension_numbers = #tpu.dot_dimension_numbers<[1], [0], [0], [1], [0, 0, 1, 1], [], []>} : vector<5x128xbf16>, vector<128x128xbf16>, vector<5x128xf32> -> vector<5x128xf32>
    %88 = arith.addf %82, %87 : vector<5x128xf32>
    %89 = vector.extract_strided_slice %11 {offsets = [0, 0], sizes = [5, 128], strides = [1, 1]} : vector<7x128xf32> to vector<5x128xf32>
    %90 = arith.truncf %89 : vector<5x128xf32> to vector<5x128xbf16>
    %c1_62 = arith.constant 1 : index
    %c0_63 = arith.constant 0 : index
    %c0_64 = arith.constant 0 : index
    %91 = vector.load %arg2[%c1_62, %c0_63, %c0_64] : memref<5x128x128xbf16, #tpu.memory_space<vmem>>, vector<1x128x128xbf16>
    %92 = vector.shape_cast %91 : vector<1x128x128xbf16> to vector<128x128xbf16>
    %cst_65 = arith.constant dense<0.000000e+00> : vector<5x128xf32>
    %93 = tpu.matmul %90, %92, %cst_65 {dimension_numbers = #tpu.dot_dimension_numbers<[1], [0], [0], [1], [0, 0, 1, 1], [], []>} : vector<5x128xbf16>, vector<128x128xbf16>, vector<5x128xf32> -> vector<5x128xf32>
    %94 = arith.addf %88, %93 : vector<5x128xf32>
    %95 = vector.extract_strided_slice %5 {offsets = [1, 0], sizes = [5, 128], strides = [1, 1]} : vector<7x128xf32> to vector<5x128xf32>
    %96 = arith.truncf %95 : vector<5x128xf32> to vector<5x128xbf16>
    %c2_66 = arith.constant 2 : index
    %c0_67 = arith.constant 0 : index
    %c0_68 = arith.constant 0 : index
    %97 = vector.load %arg2[%c2_66, %c0_67, %c0_68] : memref<5x128x128xbf16, #tpu.memory_space<vmem>>, vector<1x128x128xbf16>
    %98 = vector.shape_cast %97 : vector<1x128x128xbf16> to vector<128x128xbf16>
    %cst_69 = arith.constant dense<0.000000e+00> : vector<5x128xf32>
    %99 = tpu.matmul %96, %98, %cst_69 {dimension_numbers = #tpu.dot_dimension_numbers<[1], [0], [0], [1], [0, 0, 1, 1], [], []>} : vector<5x128xbf16>, vector<128x128xbf16>, vector<5x128xf32> -> vector<5x128xf32>
    %100 = arith.addf %94, %99 : vector<5x128xf32>
    %101 = vector.extract_strided_slice %7 {offsets = [1, 0], sizes = [5, 128], strides = [1, 1]} : vector<7x128xf32> to vector<5x128xf32>
    %102 = arith.truncf %101 : vector<5x128xf32> to vector<5x128xbf16>
    %c3_70 = arith.constant 3 : index
    %c0_71 = arith.constant 0 : index
    %c0_72 = arith.constant 0 : index
    %103 = vector.load %arg2[%c3_70, %c0_71, %c0_72] : memref<5x128x128xbf16, #tpu.memory_space<vmem>>, vector<1x128x128xbf16>
    %104 = vector.shape_cast %103 : vector<1x128x128xbf16> to vector<128x128xbf16>
    %cst_73 = arith.constant dense<0.000000e+00> : vector<5x128xf32>
    %105 = tpu.matmul %102, %104, %cst_73 {dimension_numbers = #tpu.dot_dimension_numbers<[1], [0], [0], [1], [0, 0, 1, 1], [], []>} : vector<5x128xbf16>, vector<128x128xbf16>, vector<5x128xf32> -> vector<5x128xf32>
    %106 = arith.addf %100, %105 : vector<5x128xf32>
    %107 = vector.extract_strided_slice %9 {offsets = [1, 0], sizes = [5, 128], strides = [1, 1]} : vector<7x128xf32> to vector<5x128xf32>
    %108 = arith.truncf %107 : vector<5x128xf32> to vector<5x128xbf16>
    %c4_74 = arith.constant 4 : index
    %c0_75 = arith.constant 0 : index
    %c0_76 = arith.constant 0 : index
    %109 = vector.load %arg2[%c4_74, %c0_75, %c0_76] : memref<5x128x128xbf16, #tpu.memory_space<vmem>>, vector<1x128x128xbf16>
    %110 = vector.shape_cast %109 : vector<1x128x128xbf16> to vector<128x128xbf16>
    %cst_77 = arith.constant dense<0.000000e+00> : vector<5x128xf32>
    %111 = tpu.matmul %108, %110, %cst_77 {dimension_numbers = #tpu.dot_dimension_numbers<[1], [0], [0], [1], [0, 0, 1, 1], [], []>} : vector<5x128xbf16>, vector<128x128xbf16>, vector<5x128xf32> -> vector<5x128xf32>
    %112 = arith.addf %106, %111 : vector<5x128xf32>
    %113 = vector.broadcast %0 : vector<1x128xf32> to vector<5x128xf32>
    %114 = arith.addf %112, %113 : vector<5x128xf32>
    %cst_78 = arith.constant 0.000000e+00 : f32
    %115 = vector.broadcast %cst_78 : f32 to vector<5x128xf32>
    %116 = arith.maximumf %114, %115 : vector<5x128xf32>
    %cst_79 = arith.constant 0.000000e+00 : f32
    %117 = vector.broadcast %cst_79 : f32 to vector<5x128xf32>
    %118 = vector.extract_strided_slice %11 {offsets = [0, 0], sizes = [5, 128], strides = [1, 1]} : vector<7x128xf32> to vector<5x128xf32>
    %119 = arith.truncf %118 : vector<5x128xf32> to vector<5x128xbf16>
    %c0_80 = arith.constant 0 : index
    %c0_81 = arith.constant 0 : index
    %c0_82 = arith.constant 0 : index
    %120 = vector.load %arg2[%c0_80, %c0_81, %c0_82] : memref<5x128x128xbf16, #tpu.memory_space<vmem>>, vector<1x128x128xbf16>
    %121 = vector.shape_cast %120 : vector<1x128x128xbf16> to vector<128x128xbf16>
    %cst_83 = arith.constant dense<0.000000e+00> : vector<5x128xf32>
    %122 = tpu.matmul %119, %121, %cst_83 {dimension_numbers = #tpu.dot_dimension_numbers<[1], [0], [0], [1], [0, 0, 1, 1], [], []>} : vector<5x128xbf16>, vector<128x128xbf16>, vector<5x128xf32> -> vector<5x128xf32>
    %123 = arith.addf %117, %122 : vector<5x128xf32>
    %124 = vector.extract_strided_slice %5 {offsets = [1, 0], sizes = [5, 128], strides = [1, 1]} : vector<7x128xf32> to vector<5x128xf32>
    %125 = arith.truncf %124 : vector<5x128xf32> to vector<5x128xbf16>
    %c1_84 = arith.constant 1 : index
    %c0_85 = arith.constant 0 : index
    %c0_86 = arith.constant 0 : index
    %126 = vector.load %arg2[%c1_84, %c0_85, %c0_86] : memref<5x128x128xbf16, #tpu.memory_space<vmem>>, vector<1x128x128xbf16>
    %127 = vector.shape_cast %126 : vector<1x128x128xbf16> to vector<128x128xbf16>
    %cst_87 = arith.constant dense<0.000000e+00> : vector<5x128xf32>
    %128 = tpu.matmul %125, %127, %cst_87 {dimension_numbers = #tpu.dot_dimension_numbers<[1], [0], [0], [1], [0, 0, 1, 1], [], []>} : vector<5x128xbf16>, vector<128x128xbf16>, vector<5x128xf32> -> vector<5x128xf32>
    %129 = arith.addf %123, %128 : vector<5x128xf32>
    %130 = vector.extract_strided_slice %7 {offsets = [1, 0], sizes = [5, 128], strides = [1, 1]} : vector<7x128xf32> to vector<5x128xf32>
    %131 = arith.truncf %130 : vector<5x128xf32> to vector<5x128xbf16>
    %c2_88 = arith.constant 2 : index
    %c0_89 = arith.constant 0 : index
    %c0_90 = arith.constant 0 : index
    %132 = vector.load %arg2[%c2_88, %c0_89, %c0_90] : memref<5x128x128xbf16, #tpu.memory_space<vmem>>, vector<1x128x128xbf16>
    %133 = vector.shape_cast %132 : vector<1x128x128xbf16> to vector<128x128xbf16>
    %cst_91 = arith.constant dense<0.000000e+00> : vector<5x128xf32>
    %134 = tpu.matmul %131, %133, %cst_91 {dimension_numbers = #tpu.dot_dimension_numbers<[1], [0], [0], [1], [0, 0, 1, 1], [], []>} : vector<5x128xbf16>, vector<128x128xbf16>, vector<5x128xf32> -> vector<5x128xf32>
    %135 = arith.addf %129, %134 : vector<5x128xf32>
    %136 = vector.extract_strided_slice %9 {offsets = [1, 0], sizes = [5, 128], strides = [1, 1]} : vector<7x128xf32> to vector<5x128xf32>
    %137 = arith.truncf %136 : vector<5x128xf32> to vector<5x128xbf16>
    %c3_92 = arith.constant 3 : index
    %c0_93 = arith.constant 0 : index
    %c0_94 = arith.constant 0 : index
    %138 = vector.load %arg2[%c3_92, %c0_93, %c0_94] : memref<5x128x128xbf16, #tpu.memory_space<vmem>>, vector<1x128x128xbf16>
    %139 = vector.shape_cast %138 : vector<1x128x128xbf16> to vector<128x128xbf16>
    %cst_95 = arith.constant dense<0.000000e+00> : vector<5x128xf32>
    %140 = tpu.matmul %137, %139, %cst_95 {dimension_numbers = #tpu.dot_dimension_numbers<[1], [0], [0], [1], [0, 0, 1, 1], [], []>} : vector<5x128xbf16>, vector<128x128xbf16>, vector<5x128xf32> -> vector<5x128xf32>
    %141 = arith.addf %135, %140 : vector<5x128xf32>
    %142 = vector.extract_strided_slice %11 {offsets = [1, 0], sizes = [5, 128], strides = [1, 1]} : vector<7x128xf32> to vector<5x128xf32>
    %143 = arith.truncf %142 : vector<5x128xf32> to vector<5x128xbf16>
    %c4_96 = arith.constant 4 : index
    %c0_97 = arith.constant 0 : index
    %c0_98 = arith.constant 0 : index
    %144 = vector.load %arg2[%c4_96, %c0_97, %c0_98] : memref<5x128x128xbf16, #tpu.memory_space<vmem>>, vector<1x128x128xbf16>
    %145 = vector.shape_cast %144 : vector<1x128x128xbf16> to vector<128x128xbf16>
    %cst_99 = arith.constant dense<0.000000e+00> : vector<5x128xf32>
    %146 = tpu.matmul %143, %145, %cst_99 {dimension_numbers = #tpu.dot_dimension_numbers<[1], [0], [0], [1], [0, 0, 1, 1], [], []>} : vector<5x128xbf16>, vector<128x128xbf16>, vector<5x128xf32> -> vector<5x128xf32>
    %147 = arith.addf %141, %146 : vector<5x128xf32>
    %148 = vector.broadcast %0 : vector<1x128xf32> to vector<5x128xf32>
    %149 = arith.addf %147, %148 : vector<5x128xf32>
    %cst_100 = arith.constant 0.000000e+00 : f32
    %150 = vector.broadcast %cst_100 : f32 to vector<5x128xf32>
    %151 = arith.maximumf %149, %150 : vector<5x128xf32>
    %152 = arith.maximumf %46, %81 : vector<6x128xf32>
    %153 = arith.maximumf %116, %151 : vector<5x128xf32>
    %c1_101 = arith.constant 1 : index
    %c0_102 = arith.constant 0 : index
    %154 = vector.load %arg13[%c1_101, %c0_102] : memref<14x128xf32, #tpu.memory_space<vmem>>, vector<5x128xf32>
    tpu.vector_store %arg13[%c1_101, %c0_102], %153 {strides = array<i32>} : memref<14x128xf32, #tpu.memory_space<vmem>>, vector<5x128xf32>,
    %c7 = arith.constant 7 : index
    %c0_103 = arith.constant 0 : index
    %155 = vector.load %arg13[%c7, %c0_103] : memref<14x128xf32, #tpu.memory_space<vmem>>, vector<6x128xf32>
    tpu.vector_store %arg13[%c7, %c0_103], %152 {strides = array<i32>} : memref<14x128xf32, #tpu.memory_space<vmem>>, vector<6x128xf32>,
    %c0_104 = arith.constant 0 : index
    %c0_105 = arith.constant 0 : index
    %156 = vector.load %arg13[%c0_104, %c0_105] : memref<14x128xf32, #tpu.memory_space<vmem>>, vector<7x128xf32>
    %c7_106 = arith.constant 7 : index
    %c0_107 = arith.constant 0 : index
    %157 = vector.load %arg13[%c7_106, %c0_107] : memref<14x128xf32, #tpu.memory_space<vmem>>, vector<7x128xf32>
    %cst_108 = arith.constant 0.000000e+00 : f32
    %158 = vector.broadcast %cst_108 : f32 to vector<6x128xf32>
    %159 = vector.extract_strided_slice %156 {offsets = [0, 0], sizes = [6, 128], strides = [1, 1]} : vector<7x128xf32> to vector<6x128xf32>
    %160 = arith.truncf %159 : vector<6x128xf32> to vector<6x128xbf16>
    %c0_109 = arith.constant 0 : index
    %c0_110 = arith.constant 0 : index
    %c0_111 = arith.constant 0 : index
    %161 = vector.load %arg4[%c0_109, %c0_110, %c0_111] : memref<3x128x128xbf16, #tpu.memory_space<vmem>>, vector<1x128x128xbf16>
    %162 = vector.shape_cast %161 : vector<1x128x128xbf16> to vector<128x128xbf16>
    %cst_112 = arith.constant dense<0.000000e+00> : vector<6x128xf32>
    %163 = tpu.matmul %160, %162, %cst_112 {dimension_numbers = #tpu.dot_dimension_numbers<[1], [0], [0], [1], [0, 0, 1, 1], [], []>} : vector<6x128xbf16>, vector<128x128xbf16>, vector<6x128xf32> -> vector<6x128xf32>
    %164 = arith.addf %158, %163 : vector<6x128xf32>
    %165 = vector.extract_strided_slice %157 {offsets = [0, 0], sizes = [6, 128], strides = [1, 1]} : vector<7x128xf32> to vector<6x128xf32>
    %166 = arith.truncf %165 : vector<6x128xf32> to vector<6x128xbf16>
    %c1_113 = arith.constant 1 : index
    %c0_114 = arith.constant 0 : index
    %c0_115 = arith.constant 0 : index
    %167 = vector.load %arg4[%c1_113, %c0_114, %c0_115] : memref<3x128x128xbf16, #tpu.memory_space<vmem>>, vector<1x128x128xbf16>
    %168 = vector.shape_cast %167 : vector<1x128x128xbf16> to vector<128x128xbf16>
    %cst_116 = arith.constant dense<0.000000e+00> : vector<6x128xf32>
    %169 = tpu.matmul %166, %168, %cst_116 {dimension_numbers = #tpu.dot_dimension_numbers<[1], [0], [0], [1], [0, 0, 1, 1], [], []>} : vector<6x128xbf16>, vector<128x128xbf16>, vector<6x128xf32> -> vector<6x128xf32>
    %170 = arith.addf %164, %169 : vector<6x128xf32>
    %171 = vector.extract_strided_slice %156 {offsets = [1, 0], sizes = [6, 128], strides = [1, 1]} : vector<7x128xf32> to vector<6x128xf32>
    %172 = arith.truncf %171 : vector<6x128xf32> to vector<6x128xbf16>
    %c2_117 = arith.constant 2 : index
    %c0_118 = arith.constant 0 : index
    %c0_119 = arith.constant 0 : index
    %173 = vector.load %arg4[%c2_117, %c0_118, %c0_119] : memref<3x128x128xbf16, #tpu.memory_space<vmem>>, vector<1x128x128xbf16>
    %174 = vector.shape_cast %173 : vector<1x128x128xbf16> to vector<128x128xbf16>
    %cst_120 = arith.constant dense<0.000000e+00> : vector<6x128xf32>
    %175 = tpu.matmul %172, %174, %cst_120 {dimension_numbers = #tpu.dot_dimension_numbers<[1], [0], [0], [1], [0, 0, 1, 1], [], []>} : vector<6x128xbf16>, vector<128x128xbf16>, vector<6x128xf32> -> vector<6x128xf32>
    %176 = arith.addf %170, %175 : vector<6x128xf32>
    %177 = vector.broadcast %1 : vector<1x128xf32> to vector<6x128xf32>
    %178 = arith.addf %176, %177 : vector<6x128xf32>
    %cst_121 = arith.constant 0.000000e+00 : f32
    %179 = vector.broadcast %cst_121 : f32 to vector<6x128xf32>
    %180 = arith.maximumf %178, %179 : vector<6x128xf32>
    %cst_122 = arith.constant 0.000000e+00 : f32
    %181 = vector.broadcast %cst_122 : f32 to vector<5x128xf32>
    %182 = vector.extract_strided_slice %157 {offsets = [0, 0], sizes = [5, 128], strides = [1, 1]} : vector<7x128xf32> to vector<5x128xf32>
    %183 = arith.truncf %182 : vector<5x128xf32> to vector<5x128xbf16>
    %c0_123 = arith.constant 0 : index
    %c0_124 = arith.constant 0 : index
    %c0_125 = arith.constant 0 : index
    %184 = vector.load %arg4[%c0_123, %c0_124, %c0_125] : memref<3x128x128xbf16, #tpu.memory_space<vmem>>, vector<1x128x128xbf16>
    %185 = vector.shape_cast %184 : vector<1x128x128xbf16> to vector<128x128xbf16>
    %cst_126 = arith.constant dense<0.000000e+00> : vector<5x128xf32>
    %186 = tpu.matmul %183, %185, %cst_126 {dimension_numbers = #tpu.dot_dimension_numbers<[1], [0], [0], [1], [0, 0, 1, 1], [], []>} : vector<5x128xbf16>, vector<128x128xbf16>, vector<5x128xf32> -> vector<5x128xf32>
    %187 = arith.addf %181, %186 : vector<5x128xf32>
    %188 = vector.extract_strided_slice %156 {offsets = [1, 0], sizes = [5, 128], strides = [1, 1]} : vector<7x128xf32> to vector<5x128xf32>
    %189 = arith.truncf %188 : vector<5x128xf32> to vector<5x128xbf16>
    %c1_127 = arith.constant 1 : index
    %c0_128 = arith.constant 0 : index
    %c0_129 = arith.constant 0 : index
    %190 = vector.load %arg4[%c1_127, %c0_128, %c0_129] : memref<3x128x128xbf16, #tpu.memory_space<vmem>>, vector<1x128x128xbf16>
    %191 = vector.shape_cast %190 : vector<1x128x128xbf16> to vector<128x128xbf16>
    %cst_130 = arith.constant dense<0.000000e+00> : vector<5x128xf32>
    %192 = tpu.matmul %189, %191, %cst_130 {dimension_numbers = #tpu.dot_dimension_numbers<[1], [0], [0], [1], [0, 0, 1, 1], [], []>} : vector<5x128xbf16>, vector<128x128xbf16>, vector<5x128xf32> -> vector<5x128xf32>
    %193 = arith.addf %187, %192 : vector<5x128xf32>
    %194 = vector.extract_strided_slice %157 {offsets = [1, 0], sizes = [5, 128], strides = [1, 1]} : vector<7x128xf32> to vector<5x128xf32>
    %195 = arith.truncf %194 : vector<5x128xf32> to vector<5x128xbf16>
    %c2_131 = arith.constant 2 : index
    %c0_132 = arith.constant 0 : index
    %c0_133 = arith.constant 0 : index
    %196 = vector.load %arg4[%c2_131, %c0_132, %c0_133] : memref<3x128x128xbf16, #tpu.memory_space<vmem>>, vector<1x128x128xbf16>
    %197 = vector.shape_cast %196 : vector<1x128x128xbf16> to vector<128x128xbf16>
    %cst_134 = arith.constant dense<0.000000e+00> : vector<5x128xf32>
    %198 = tpu.matmul %195, %197, %cst_134 {dimension_numbers = #tpu.dot_dimension_numbers<[1], [0], [0], [1], [0, 0, 1, 1], [], []>} : vector<5x128xbf16>, vector<128x128xbf16>, vector<5x128xf32> -> vector<5x128xf32>
    %199 = arith.addf %193, %198 : vector<5x128xf32>
    %200 = vector.broadcast %1 : vector<1x128xf32> to vector<5x128xf32>
    %201 = arith.addf %199, %200 : vector<5x128xf32>
    %cst_135 = arith.constant 0.000000e+00 : f32
    %202 = vector.broadcast %cst_135 : f32 to vector<5x128xf32>
    %203 = arith.maximumf %201, %202 : vector<5x128xf32>
    %204 = vector.extract_strided_slice %180 {offsets = [0, 0], sizes = [5, 128], strides = [1, 1]} : vector<6x128xf32> to vector<5x128xf32>
    %205 = arith.maximumf %204, %203 : vector<5x128xf32>
    %206 = vector.extract_strided_slice %205 {offsets = [0, 0], sizes = [1, 128], strides = [1, 1]} : vector<5x128xf32> to vector<1x128xf32>
    %c0_136 = arith.constant 0 : index
    %c0_137 = arith.constant 0 : index
    %207 = vector.load %arg14[%c0_136, %c0_137] : memref<10x128xf32, #tpu.memory_space<vmem>>, vector<1x128xf32>
    tpu.vector_store %arg14[%c0_136, %c0_137], %206 {strides = array<i32>} : memref<10x128xf32, #tpu.memory_space<vmem>>, vector<1x128xf32>,
    %208 = vector.extract_strided_slice %205 {offsets = [1, 0], sizes = [1, 128], strides = [1, 1]} : vector<5x128xf32> to vector<1x128xf32>
    %c2_138 = arith.constant 2 : index
    %c0_139 = arith.constant 0 : index
    %209 = vector.load %arg14[%c2_138, %c0_139] : memref<10x128xf32, #tpu.memory_space<vmem>>, vector<1x128xf32>
    tpu.vector_store %arg14[%c2_138, %c0_139], %208 {strides = array<i32>} : memref<10x128xf32, #tpu.memory_space<vmem>>, vector<1x128xf32>,
    %210 = vector.extract_strided_slice %205 {offsets = [2, 0], sizes = [1, 128], strides = [1, 1]} : vector<5x128xf32> to vector<1x128xf32>
    %c4_140 = arith.constant 4 : index
    %c0_141 = arith.constant 0 : index
    %211 = vector.load %arg14[%c4_140, %c0_141] : memref<10x128xf32, #tpu.memory_space<vmem>>, vector<1x128xf32>
    tpu.vector_store %arg14[%c4_140, %c0_141], %210 {strides = array<i32>} : memref<10x128xf32, #tpu.memory_space<vmem>>, vector<1x128xf32>,
    %212 = vector.extract_strided_slice %205 {offsets = [3, 0], sizes = [1, 128], strides = [1, 1]} : vector<5x128xf32> to vector<1x128xf32>
    %c6 = arith.constant 6 : index
    %c0_142 = arith.constant 0 : index
    %213 = vector.load %arg14[%c6, %c0_142] : memref<10x128xf32, #tpu.memory_space<vmem>>, vector<1x128xf32>
    tpu.vector_store %arg14[%c6, %c0_142], %212 {strides = array<i32>} : memref<10x128xf32, #tpu.memory_space<vmem>>, vector<1x128xf32>,
    %214 = vector.extract_strided_slice %205 {offsets = [4, 0], sizes = [1, 128], strides = [1, 1]} : vector<5x128xf32> to vector<1x128xf32>
    %c8 = arith.constant 8 : index
    %c0_143 = arith.constant 0 : index
    %215 = vector.load %arg14[%c8, %c0_143] : memref<10x128xf32, #tpu.memory_space<vmem>>, vector<1x128xf32>
    tpu.vector_store %arg14[%c8, %c0_143], %214 {strides = array<i32>} : memref<10x128xf32, #tpu.memory_space<vmem>>, vector<1x128xf32>,
    %c4_144 = arith.constant 4 : index
    %c0_145 = arith.constant 0 : index
    %c0_146 = arith.constant 0 : index
    %216 = vector.load %arg1[%c4_144, %c0_145, %c0_146] : memref<8x7x128xf32, #tpu.memory_space<vmem>>, vector<1x7x128xf32>
    %217 = vector.shape_cast %216 : vector<1x7x128xf32> to vector<7x128xf32>
    %c5 = arith.constant 5 : index
    %c0_147 = arith.constant 0 : index
    %c0_148 = arith.constant 0 : index
    %218 = vector.load %arg1[%c5, %c0_147, %c0_148] : memref<8x7x128xf32, #tpu.memory_space<vmem>>, vector<1x7x128xf32>
    %219 = vector.shape_cast %218 : vector<1x7x128xf32> to vector<7x128xf32>
    %c6_149 = arith.constant 6 : index
    %c0_150 = arith.constant 0 : index
    %c0_151 = arith.constant 0 : index
    %220 = vector.load %arg1[%c6_149, %c0_150, %c0_151] : memref<8x7x128xf32, #tpu.memory_space<vmem>>, vector<1x7x128xf32>
    %221 = vector.shape_cast %220 : vector<1x7x128xf32> to vector<7x128xf32>
    %c7_152 = arith.constant 7 : index
    %c0_153 = arith.constant 0 : index
    %c0_154 = arith.constant 0 : index
    %222 = vector.load %arg1[%c7_152, %c0_153, %c0_154] : memref<8x7x128xf32, #tpu.memory_space<vmem>>, vector<1x7x128xf32>
    %223 = vector.shape_cast %222 : vector<1x7x128xf32> to vector<7x128xf32>
    %cst_155 = arith.constant 0.000000e+00 : f32
    %224 = vector.broadcast %cst_155 : f32 to vector<6x128xf32>
    %225 = vector.extract_strided_slice %217 {offsets = [0, 0], sizes = [6, 128], strides = [1, 1]} : vector<7x128xf32> to vector<6x128xf32>
    %226 = arith.truncf %225 : vector<6x128xf32> to vector<6x128xbf16>
    %c0_156 = arith.constant 0 : index
    %c0_157 = arith.constant 0 : index
    %c0_158 = arith.constant 0 : index
    %227 = vector.load %arg2[%c0_156, %c0_157, %c0_158] : memref<5x128x128xbf16, #tpu.memory_space<vmem>>, vector<1x128x128xbf16>
    %228 = vector.shape_cast %227 : vector<1x128x128xbf16> to vector<128x128xbf16>
    %cst_159 = arith.constant dense<0.000000e+00> : vector<6x128xf32>
    %229 = tpu.matmul %226, %228, %cst_159 {dimension_numbers = #tpu.dot_dimension_numbers<[1], [0], [0], [1], [0, 0, 1, 1], [], []>} : vector<6x128xbf16>, vector<128x128xbf16>, vector<6x128xf32> -> vector<6x128xf32>
    %230 = arith.addf %224, %229 : vector<6x128xf32>
    %231 = vector.extract_strided_slice %219 {offsets = [0, 0], sizes = [6, 128], strides = [1, 1]} : vector<7x128xf32> to vector<6x128xf32>
    %232 = arith.truncf %231 : vector<6x128xf32> to vector<6x128xbf16>
    %c1_160 = arith.constant 1 : index
    %c0_161 = arith.constant 0 : index
    %c0_162 = arith.constant 0 : index
    %233 = vector.load %arg2[%c1_160, %c0_161, %c0_162] : memref<5x128x128xbf16, #tpu.memory_space<vmem>>, vector<1x128x128xbf16>
    %234 = vector.shape_cast %233 : vector<1x128x128xbf16> to vector<128x128xbf16>
    %cst_163 = arith.constant dense<0.000000e+00> : vector<6x128xf32>
    %235 = tpu.matmul %232, %234, %cst_163 {dimension_numbers = #tpu.dot_dimension_numbers<[1], [0], [0], [1], [0, 0, 1, 1], [], []>} : vector<6x128xbf16>, vector<128x128xbf16>, vector<6x128xf32> -> vector<6x128xf32>
    %236 = arith.addf %230, %235 : vector<6x128xf32>
    %237 = vector.extract_strided_slice %221 {offsets = [0, 0], sizes = [6, 128], strides = [1, 1]} : vector<7x128xf32> to vector<6x128xf32>
    %238 = arith.truncf %237 : vector<6x128xf32> to vector<6x128xbf16>
    %c2_164 = arith.constant 2 : index
    %c0_165 = arith.constant 0 : index
    %c0_166 = arith.constant 0 : index
    %239 = vector.load %arg2[%c2_164, %c0_165, %c0_166] : memref<5x128x128xbf16, #tpu.memory_space<vmem>>, vector<1x128x128xbf16>
    %240 = vector.shape_cast %239 : vector<1x128x128xbf16> to vector<128x128xbf16>
    %cst_167 = arith.constant dense<0.000000e+00> : vector<6x128xf32>
    %241 = tpu.matmul %238, %240, %cst_167 {dimension_numbers = #tpu.dot_dimension_numbers<[1], [0], [0], [1], [0, 0, 1, 1], [], []>} : vector<6x128xbf16>, vector<128x128xbf16>, vector<6x128xf32> -> vector<6x128xf32>
    %242 = arith.addf %236, %241 : vector<6x128xf32>
    %243 = vector.extract_strided_slice %223 {offsets = [0, 0], sizes = [6, 128], strides = [1, 1]} : vector<7x128xf32> to vector<6x128xf32>
    %244 = arith.truncf %243 : vector<6x128xf32> to vector<6x128xbf16>
    %c3_168 = arith.constant 3 : index
    %c0_169 = arith.constant 0 : index
    %c0_170 = arith.constant 0 : index
    %245 = vector.load %arg2[%c3_168, %c0_169, %c0_170] : memref<5x128x128xbf16, #tpu.memory_space<vmem>>, vector<1x128x128xbf16>
    %246 = vector.shape_cast %245 : vector<1x128x128xbf16> to vector<128x128xbf16>
    %cst_171 = arith.constant dense<0.000000e+00> : vector<6x128xf32>
    %247 = tpu.matmul %244, %246, %cst_171 {dimension_numbers = #tpu.dot_dimension_numbers<[1], [0], [0], [1], [0, 0, 1, 1], [], []>} : vector<6x128xbf16>, vector<128x128xbf16>, vector<6x128xf32> -> vector<6x128xf32>
    %248 = arith.addf %242, %247 : vector<6x128xf32>
    %249 = vector.extract_strided_slice %217 {offsets = [1, 0], sizes = [6, 128], strides = [1, 1]} : vector<7x128xf32> to vector<6x128xf32>
    %250 = arith.truncf %249 : vector<6x128xf32> to vector<6x128xbf16>
    %c4_172 = arith.constant 4 : index
    %c0_173 = arith.constant 0 : index
    %c0_174 = arith.constant 0 : index
    %251 = vector.load %arg2[%c4_172, %c0_173, %c0_174] : memref<5x128x128xbf16, #tpu.memory_space<vmem>>, vector<1x128x128xbf16>
    %252 = vector.shape_cast %251 : vector<1x128x128xbf16> to vector<128x128xbf16>
    %cst_175 = arith.constant dense<0.000000e+00> : vector<6x128xf32>
    %253 = tpu.matmul %250, %252, %cst_175 {dimension_numbers = #tpu.dot_dimension_numbers<[1], [0], [0], [1], [0, 0, 1, 1], [], []>} : vector<6x128xbf16>, vector<128x128xbf16>, vector<6x128xf32> -> vector<6x128xf32>
    %254 = arith.addf %248, %253 : vector<6x128xf32>
    %255 = vector.broadcast %0 : vector<1x128xf32> to vector<6x128xf32>
    %256 = arith.addf %254, %255 : vector<6x128xf32>
    %cst_176 = arith.constant 0.000000e+00 : f32
    %257 = vector.broadcast %cst_176 : f32 to vector<6x128xf32>
    %258 = arith.maximumf %256, %257 : vector<6x128xf32>
    %cst_177 = arith.constant 0.000000e+00 : f32
    %259 = vector.broadcast %cst_177 : f32 to vector<6x128xf32>
    %260 = vector.extract_strided_slice %219 {offsets = [0, 0], sizes = [6, 128], strides = [1, 1]} : vector<7x128xf32> to vector<6x128xf32>
    %261 = arith.truncf %260 : vector<6x128xf32> to vector<6x128xbf16>
    %c0_178 = arith.constant 0 : index
    %c0_179 = arith.constant 0 : index
    %c0_180 = arith.constant 0 : index
    %262 = vector.load %arg2[%c0_178, %c0_179, %c0_180] : memref<5x128x128xbf16, #tpu.memory_space<vmem>>, vector<1x128x128xbf16>
    %263 = vector.shape_cast %262 : vector<1x128x128xbf16> to vector<128x128xbf16>
    %cst_181 = arith.constant dense<0.000000e+00> : vector<6x128xf32>
    %264 = tpu.matmul %261, %263, %cst_181 {dimension_numbers = #tpu.dot_dimension_numbers<[1], [0], [0], [1], [0, 0, 1, 1], [], []>} : vector<6x128xbf16>, vector<128x128xbf16>, vector<6x128xf32> -> vector<6x128xf32>
    %265 = arith.addf %259, %264 : vector<6x128xf32>
    %266 = vector.extract_strided_slice %221 {offsets = [0, 0], sizes = [6, 128], strides = [1, 1]} : vector<7x128xf32> to vector<6x128xf32>
    %267 = arith.truncf %266 : vector<6x128xf32> to vector<6x128xbf16>
    %c1_182 = arith.constant 1 : index
    %c0_183 = arith.constant 0 : index
    %c0_184 = arith.constant 0 : index
    %268 = vector.load %arg2[%c1_182, %c0_183, %c0_184] : memref<5x128x128xbf16, #tpu.memory_space<vmem>>, vector<1x128x128xbf16>
    %269 = vector.shape_cast %268 : vector<1x128x128xbf16> to vector<128x128xbf16>
    %cst_185 = arith.constant dense<0.000000e+00> : vector<6x128xf32>
    %270 = tpu.matmul %267, %269, %cst_185 {dimension_numbers = #tpu.dot_dimension_numbers<[1], [0], [0], [1], [0, 0, 1, 1], [], []>} : vector<6x128xbf16>, vector<128x128xbf16>, vector<6x128xf32> -> vector<6x128xf32>
    %271 = arith.addf %265, %270 : vector<6x128xf32>
    %272 = vector.extract_strided_slice %223 {offsets = [0, 0], sizes = [6, 128], strides = [1, 1]} : vector<7x128xf32> to vector<6x128xf32>
    %273 = arith.truncf %272 : vector<6x128xf32> to vector<6x128xbf16>
    %c2_186 = arith.constant 2 : index
    %c0_187 = arith.constant 0 : index
    %c0_188 = arith.constant 0 : index
    %274 = vector.load %arg2[%c2_186, %c0_187, %c0_188] : memref<5x128x128xbf16, #tpu.memory_space<vmem>>, vector<1x128x128xbf16>
    %275 = vector.shape_cast %274 : vector<1x128x128xbf16> to vector<128x128xbf16>
    %cst_189 = arith.constant dense<0.000000e+00> : vector<6x128xf32>
    %276 = tpu.matmul %273, %275, %cst_189 {dimension_numbers = #tpu.dot_dimension_numbers<[1], [0], [0], [1], [0, 0, 1, 1], [], []>} : vector<6x128xbf16>, vector<128x128xbf16>, vector<6x128xf32> -> vector<6x128xf32>
    %277 = arith.addf %271, %276 : vector<6x128xf32>
    %278 = vector.extract_strided_slice %217 {offsets = [1, 0], sizes = [6, 128], strides = [1, 1]} : vector<7x128xf32> to vector<6x128xf32>
    %279 = arith.truncf %278 : vector<6x128xf32> to vector<6x128xbf16>
    %c3_190 = arith.constant 3 : index
    %c0_191 = arith.constant 0 : index
    %c0_192 = arith.constant 0 : index
    %280 = vector.load %arg2[%c3_190, %c0_191, %c0_192] : memref<5x128x128xbf16, #tpu.memory_space<vmem>>, vector<1x128x128xbf16>
    %281 = vector.shape_cast %280 : vector<1x128x128xbf16> to vector<128x128xbf16>
    %cst_193 = arith.constant dense<0.000000e+00> : vector<6x128xf32>
    %282 = tpu.matmul %279, %281, %cst_193 {dimension_numbers = #tpu.dot_dimension_numbers<[1], [0], [0], [1], [0, 0, 1, 1], [], []>} : vector<6x128xbf16>, vector<128x128xbf16>, vector<6x128xf32> -> vector<6x128xf32>
    %283 = arith.addf %277, %282 : vector<6x128xf32>
    %284 = vector.extract_strided_slice %219 {offsets = [1, 0], sizes = [6, 128], strides = [1, 1]} : vector<7x128xf32> to vector<6x128xf32>
    %285 = arith.truncf %284 : vector<6x128xf32> to vector<6x128xbf16>
    %c4_194 = arith.constant 4 : index
    %c0_195 = arith.constant 0 : index
    %c0_196 = arith.constant 0 : index
    %286 = vector.load %arg2[%c4_194, %c0_195, %c0_196] : memref<5x128x128xbf16, #tpu.memory_space<vmem>>, vector<1x128x128xbf16>
    %287 = vector.shape_cast %286 : vector<1x128x128xbf16> to vector<128x128xbf16>
    %cst_197 = arith.constant dense<0.000000e+00> : vector<6x128xf32>
    %288 = tpu.matmul %285, %287, %cst_197 {dimension_numbers = #tpu.dot_dimension_numbers<[1], [0], [0], [1], [0, 0, 1, 1], [], []>} : vector<6x128xbf16>, vector<128x128xbf16>, vector<6x128xf32> -> vector<6x128xf32>
    %289 = arith.addf %283, %288 : vector<6x128xf32>
    %290 = vector.broadcast %0 : vector<1x128xf32> to vector<6x128xf32>
    %291 = arith.addf %289, %290 : vector<6x128xf32>
    %cst_198 = arith.constant 0.000000e+00 : f32
    %292 = vector.broadcast %cst_198 : f32 to vector<6x128xf32>
    %293 = arith.maximumf %291, %292 : vector<6x128xf32>
    %cst_199 = arith.constant 0.000000e+00 : f32
    %294 = vector.broadcast %cst_199 : f32 to vector<5x128xf32>
    %295 = vector.extract_strided_slice %221 {offsets = [0, 0], sizes = [5, 128], strides = [1, 1]} : vector<7x128xf32> to vector<5x128xf32>
    %296 = arith.truncf %295 : vector<5x128xf32> to vector<5x128xbf16>
    %c0_200 = arith.constant 0 : index
    %c0_201 = arith.constant 0 : index
    %c0_202 = arith.constant 0 : index
    %297 = vector.load %arg2[%c0_200, %c0_201, %c0_202] : memref<5x128x128xbf16, #tpu.memory_space<vmem>>, vector<1x128x128xbf16>
    %298 = vector.shape_cast %297 : vector<1x128x128xbf16> to vector<128x128xbf16>
    %cst_203 = arith.constant dense<0.000000e+00> : vector<5x128xf32>
    %299 = tpu.matmul %296, %298, %cst_203 {dimension_numbers = #tpu.dot_dimension_numbers<[1], [0], [0], [1], [0, 0, 1, 1], [], []>} : vector<5x128xbf16>, vector<128x128xbf16>, vector<5x128xf32> -> vector<5x128xf32>
    %300 = arith.addf %294, %299 : vector<5x128xf32>
    %301 = vector.extract_strided_slice %223 {offsets = [0, 0], sizes = [5, 128], strides = [1, 1]} : vector<7x128xf32> to vector<5x128xf32>
    %302 = arith.truncf %301 : vector<5x128xf32> to vector<5x128xbf16>
    %c1_204 = arith.constant 1 : index
    %c0_205 = arith.constant 0 : index
    %c0_206 = arith.constant 0 : index
    %303 = vector.load %arg2[%c1_204, %c0_205, %c0_206] : memref<5x128x128xbf16, #tpu.memory_space<vmem>>, vector<1x128x128xbf16>
    %304 = vector.shape_cast %303 : vector<1x128x128xbf16> to vector<128x128xbf16>
    %cst_207 = arith.constant dense<0.000000e+00> : vector<5x128xf32>
    %305 = tpu.matmul %302, %304, %cst_207 {dimension_numbers = #tpu.dot_dimension_numbers<[1], [0], [0], [1], [0, 0, 1, 1], [], []>} : vector<5x128xbf16>, vector<128x128xbf16>, vector<5x128xf32> -> vector<5x128xf32>
    %306 = arith.addf %300, %305 : vector<5x128xf32>
    %307 = vector.extract_strided_slice %217 {offsets = [1, 0], sizes = [5, 128], strides = [1, 1]} : vector<7x128xf32> to vector<5x128xf32>
    %308 = arith.truncf %307 : vector<5x128xf32> to vector<5x128xbf16>
    %c2_208 = arith.constant 2 : index
    %c0_209 = arith.constant 0 : index
    %c0_210 = arith.constant 0 : index
    %309 = vector.load %arg2[%c2_208, %c0_209, %c0_210] : memref<5x128x128xbf16, #tpu.memory_space<vmem>>, vector<1x128x128xbf16>
    %310 = vector.shape_cast %309 : vector<1x128x128xbf16> to vector<128x128xbf16>
    %cst_211 = arith.constant dense<0.000000e+00> : vector<5x128xf32>
    %311 = tpu.matmul %308, %310, %cst_211 {dimension_numbers = #tpu.dot_dimension_numbers<[1], [0], [0], [1], [0, 0, 1, 1], [], []>} : vector<5x128xbf16>, vector<128x128xbf16>, vector<5x128xf32> -> vector<5x128xf32>
    %312 = arith.addf %306, %311 : vector<5x128xf32>
    %313 = vector.extract_strided_slice %219 {offsets = [1, 0], sizes = [5, 128], strides = [1, 1]} : vector<7x128xf32> to vector<5x128xf32>
    %314 = arith.truncf %313 : vector<5x128xf32> to vector<5x128xbf16>
    %c3_212 = arith.constant 3 : index
    %c0_213 = arith.constant 0 : index
    %c0_214 = arith.constant 0 : index
    %315 = vector.load %arg2[%c3_212, %c0_213, %c0_214] : memref<5x128x128xbf16, #tpu.memory_space<vmem>>, vector<1x128x128xbf16>
    %316 = vector.shape_cast %315 : vector<1x128x128xbf16> to vector<128x128xbf16>
    %cst_215 = arith.constant dense<0.000000e+00> : vector<5x128xf32>
    %317 = tpu.matmul %314, %316, %cst_215 {dimension_numbers = #tpu.dot_dimension_numbers<[1], [0], [0], [1], [0, 0, 1, 1], [], []>} : vector<5x128xbf16>, vector<128x128xbf16>, vector<5x128xf32> -> vector<5x128xf32>
    %318 = arith.addf %312, %317 : vector<5x128xf32>
    %319 = vector.extract_strided_slice %221 {offsets = [1, 0], sizes = [5, 128], strides = [1, 1]} : vector<7x128xf32> to vector<5x128xf32>
    %320 = arith.truncf %319 : vector<5x128xf32> to vector<5x128xbf16>
    %c4_216 = arith.constant 4 : index
    %c0_217 = arith.constant 0 : index
    %c0_218 = arith.constant 0 : index
    %321 = vector.load %arg2[%c4_216, %c0_217, %c0_218] : memref<5x128x128xbf16, #tpu.memory_space<vmem>>, vector<1x128x128xbf16>
    %322 = vector.shape_cast %321 : vector<1x128x128xbf16> to vector<128x128xbf16>
    %cst_219 = arith.constant dense<0.000000e+00> : vector<5x128xf32>
    %323 = tpu.matmul %320, %322, %cst_219 {dimension_numbers = #tpu.dot_dimension_numbers<[1], [0], [0], [1], [0, 0, 1, 1], [], []>} : vector<5x128xbf16>, vector<128x128xbf16>, vector<5x128xf32> -> vector<5x128xf32>
    %324 = arith.addf %318, %323 : vector<5x128xf32>
    %325 = vector.broadcast %0 : vector<1x128xf32> to vector<5x128xf32>
    %326 = arith.addf %324, %325 : vector<5x128xf32>
    %cst_220 = arith.constant 0.000000e+00 : f32
    %327 = vector.broadcast %cst_220 : f32 to vector<5x128xf32>
    %328 = arith.maximumf %326, %327 : vector<5x128xf32>
    %cst_221 = arith.constant 0.000000e+00 : f32
    %329 = vector.broadcast %cst_221 : f32 to vector<5x128xf32>
    %330 = vector.extract_strided_slice %223 {offsets = [0, 0], sizes = [5, 128], strides = [1, 1]} : vector<7x128xf32> to vector<5x128xf32>
    %331 = arith.truncf %330 : vector<5x128xf32> to vector<5x128xbf16>
    %c0_222 = arith.constant 0 : index
    %c0_223 = arith.constant 0 : index
    %c0_224 = arith.constant 0 : index
    %332 = vector.load %arg2[%c0_222, %c0_223, %c0_224] : memref<5x128x128xbf16, #tpu.memory_space<vmem>>, vector<1x128x128xbf16>
    %333 = vector.shape_cast %332 : vector<1x128x128xbf16> to vector<128x128xbf16>
    %cst_225 = arith.constant dense<0.000000e+00> : vector<5x128xf32>
    %334 = tpu.matmul %331, %333, %cst_225 {dimension_numbers = #tpu.dot_dimension_numbers<[1], [0], [0], [1], [0, 0, 1, 1], [], []>} : vector<5x128xbf16>, vector<128x128xbf16>, vector<5x128xf32> -> vector<5x128xf32>
    %335 = arith.addf %329, %334 : vector<5x128xf32>
    %336 = vector.extract_strided_slice %217 {offsets = [1, 0], sizes = [5, 128], strides = [1, 1]} : vector<7x128xf32> to vector<5x128xf32>
    %337 = arith.truncf %336 : vector<5x128xf32> to vector<5x128xbf16>
    %c1_226 = arith.constant 1 : index
    %c0_227 = arith.constant 0 : index
    %c0_228 = arith.constant 0 : index
    %338 = vector.load %arg2[%c1_226, %c0_227, %c0_228] : memref<5x128x128xbf16, #tpu.memory_space<vmem>>, vector<1x128x128xbf16>
    %339 = vector.shape_cast %338 : vector<1x128x128xbf16> to vector<128x128xbf16>
    %cst_229 = arith.constant dense<0.000000e+00> : vector<5x128xf32>
    %340 = tpu.matmul %337, %339, %cst_229 {dimension_numbers = #tpu.dot_dimension_numbers<[1], [0], [0], [1], [0, 0, 1, 1], [], []>} : vector<5x128xbf16>, vector<128x128xbf16>, vector<5x128xf32> -> vector<5x128xf32>
    %341 = arith.addf %335, %340 : vector<5x128xf32>
    %342 = vector.extract_strided_slice %219 {offsets = [1, 0], sizes = [5, 128], strides = [1, 1]} : vector<7x128xf32> to vector<5x128xf32>
    %343 = arith.truncf %342 : vector<5x128xf32> to vector<5x128xbf16>
    %c2_230 = arith.constant 2 : index
    %c0_231 = arith.constant 0 : index
    %c0_232 = arith.constant 0 : index
    %344 = vector.load %arg2[%c2_230, %c0_231, %c0_232] : memref<5x128x128xbf16, #tpu.memory_space<vmem>>, vector<1x128x128xbf16>
    %345 = vector.shape_cast %344 : vector<1x128x128xbf16> to vector<128x128xbf16>
    %cst_233 = arith.constant dense<0.000000e+00> : vector<5x128xf32>
    %346 = tpu.matmul %343, %345, %cst_233 {dimension_numbers = #tpu.dot_dimension_numbers<[1], [0], [0], [1], [0, 0, 1, 1], [], []>} : vector<5x128xbf16>, vector<128x128xbf16>, vector<5x128xf32> -> vector<5x128xf32>
    %347 = arith.addf %341, %346 : vector<5x128xf32>
    %348 = vector.extract_strided_slice %221 {offsets = [1, 0], sizes = [5, 128], strides = [1, 1]} : vector<7x128xf32> to vector<5x128xf32>
    %349 = arith.truncf %348 : vector<5x128xf32> to vector<5x128xbf16>
    %c3_234 = arith.constant 3 : index
    %c0_235 = arith.constant 0 : index
    %c0_236 = arith.constant 0 : index
    %350 = vector.load %arg2[%c3_234, %c0_235, %c0_236] : memref<5x128x128xbf16, #tpu.memory_space<vmem>>, vector<1x128x128xbf16>
    %351 = vector.shape_cast %350 : vector<1x128x128xbf16> to vector<128x128xbf16>
    %cst_237 = arith.constant dense<0.000000e+00> : vector<5x128xf32>
    %352 = tpu.matmul %349, %351, %cst_237 {dimension_numbers = #tpu.dot_dimension_numbers<[1], [0], [0], [1], [0, 0, 1, 1], [], []>} : vector<5x128xbf16>, vector<128x128xbf16>, vector<5x128xf32> -> vector<5x128xf32>
    %353 = arith.addf %347, %352 : vector<5x128xf32>
    %354 = vector.extract_strided_slice %223 {offsets = [1, 0], sizes = [5, 128], strides = [1, 1]} : vector<7x128xf32> to vector<5x128xf32>
    %355 = arith.truncf %354 : vector<5x128xf32> to vector<5x128xbf16>
    %c4_238 = arith.constant 4 : index
    %c0_239 = arith.constant 0 : index
    %c0_240 = arith.constant 0 : index
    %356 = vector.load %arg2[%c4_238, %c0_239, %c0_240] : memref<5x128x128xbf16, #tpu.memory_space<vmem>>, vector<1x128x128xbf16>
    %357 = vector.shape_cast %356 : vector<1x128x128xbf16> to vector<128x128xbf16>
    %cst_241 = arith.constant dense<0.000000e+00> : vector<5x128xf32>
    %358 = tpu.matmul %355, %357, %cst_241 {dimension_numbers = #tpu.dot_dimension_numbers<[1], [0], [0], [1], [0, 0, 1, 1], [], []>} : vector<5x128xbf16>, vector<128x128xbf16>, vector<5x128xf32> -> vector<5x128xf32>
    %359 = arith.addf %353, %358 : vector<5x128xf32>
    %360 = vector.broadcast %0 : vector<1x128xf32> to vector<5x128xf32>
    %361 = arith.addf %359, %360 : vector<5x128xf32>
    %cst_242 = arith.constant 0.000000e+00 : f32
    %362 = vector.broadcast %cst_242 : f32 to vector<5x128xf32>
    %363 = arith.maximumf %361, %362 : vector<5x128xf32>
    %364 = arith.maximumf %258, %293 : vector<6x128xf32>
    %365 = arith.maximumf %328, %363 : vector<5x128xf32>
    %c1_243 = arith.constant 1 : index
    %c0_244 = arith.constant 0 : index
    %366 = vector.load %arg13[%c1_243, %c0_244] : memref<14x128xf32, #tpu.memory_space<vmem>>, vector<5x128xf32>
    tpu.vector_store %arg13[%c1_243, %c0_244], %365 {strides = array<i32>} : memref<14x128xf32, #tpu.memory_space<vmem>>, vector<5x128xf32>,
    %c7_245 = arith.constant 7 : index
    %c0_246 = arith.constant 0 : index
    %367 = vector.load %arg13[%c7_245, %c0_246] : memref<14x128xf32, #tpu.memory_space<vmem>>, vector<6x128xf32>
    tpu.vector_store %arg13[%c7_245, %c0_246], %364 {strides = array<i32>} : memref<14x128xf32, #tpu.memory_space<vmem>>, vector<6x128xf32>,
    %c0_247 = arith.constant 0 : index
    %c0_248 = arith.constant 0 : index
    %368 = vector.load %arg13[%c0_247, %c0_248] : memref<14x128xf32, #tpu.memory_space<vmem>>, vector<7x128xf32>
    %c7_249 = arith.constant 7 : index
    %c0_250 = arith.constant 0 : index
    %369 = vector.load %arg13[%c7_249, %c0_250] : memref<14x128xf32, #tpu.memory_space<vmem>>, vector<7x128xf32>
    %cst_251 = arith.constant 0.000000e+00 : f32
    %370 = vector.broadcast %cst_251 : f32 to vector<6x128xf32>
    %371 = vector.extract_strided_slice %368 {offsets = [0, 0], sizes = [6, 128], strides = [1, 1]} : vector<7x128xf32> to vector<6x128xf32>
    %372 = arith.truncf %371 : vector<6x128xf32> to vector<6x128xbf16>
    %c0_252 = arith.constant 0 : index
    %c0_253 = arith.constant 0 : index
    %c0_254 = arith.constant 0 : index
    %373 = vector.load %arg4[%c0_252, %c0_253, %c0_254] : memref<3x128x128xbf16, #tpu.memory_space<vmem>>, vector<1x128x128xbf16>
    %374 = vector.shape_cast %373 : vector<1x128x128xbf16> to vector<128x128xbf16>
    %cst_255 = arith.constant dense<0.000000e+00> : vector<6x128xf32>
    %375 = tpu.matmul %372, %374, %cst_255 {dimension_numbers = #tpu.dot_dimension_numbers<[1], [0], [0], [1], [0, 0, 1, 1], [], []>} : vector<6x128xbf16>, vector<128x128xbf16>, vector<6x128xf32> -> vector<6x128xf32>
    %376 = arith.addf %370, %375 : vector<6x128xf32>
    %377 = vector.extract_strided_slice %369 {offsets = [0, 0], sizes = [6, 128], strides = [1, 1]} : vector<7x128xf32> to vector<6x128xf32>
    %378 = arith.truncf %377 : vector<6x128xf32> to vector<6x128xbf16>
    %c1_256 = arith.constant 1 : index
    %c0_257 = arith.constant 0 : index
    %c0_258 = arith.constant 0 : index
    %379 = vector.load %arg4[%c1_256, %c0_257, %c0_258] : memref<3x128x128xbf16, #tpu.memory_space<vmem>>, vector<1x128x128xbf16>
    %380 = vector.shape_cast %379 : vector<1x128x128xbf16> to vector<128x128xbf16>
    %cst_259 = arith.constant dense<0.000000e+00> : vector<6x128xf32>
    %381 = tpu.matmul %378, %380, %cst_259 {dimension_numbers = #tpu.dot_dimension_numbers<[1], [0], [0], [1], [0, 0, 1, 1], [], []>} : vector<6x128xbf16>, vector<128x128xbf16>, vector<6x128xf32> -> vector<6x128xf32>
    %382 = arith.addf %376, %381 : vector<6x128xf32>
    %383 = vector.extract_strided_slice %368 {offsets = [1, 0], sizes = [6, 128], strides = [1, 1]} : vector<7x128xf32> to vector<6x128xf32>
    %384 = arith.truncf %383 : vector<6x128xf32> to vector<6x128xbf16>
    %c2_260 = arith.constant 2 : index
    %c0_261 = arith.constant 0 : index
    %c0_262 = arith.constant 0 : index
    %385 = vector.load %arg4[%c2_260, %c0_261, %c0_262] : memref<3x128x128xbf16, #tpu.memory_space<vmem>>, vector<1x128x128xbf16>
    %386 = vector.shape_cast %385 : vector<1x128x128xbf16> to vector<128x128xbf16>
    %cst_263 = arith.constant dense<0.000000e+00> : vector<6x128xf32>
    %387 = tpu.matmul %384, %386, %cst_263 {dimension_numbers = #tpu.dot_dimension_numbers<[1], [0], [0], [1], [0, 0, 1, 1], [], []>} : vector<6x128xbf16>, vector<128x128xbf16>, vector<6x128xf32> -> vector<6x128xf32>
    %388 = arith.addf %382, %387 : vector<6x128xf32>
    %389 = vector.broadcast %1 : vector<1x128xf32> to vector<6x128xf32>
    %390 = arith.addf %388, %389 : vector<6x128xf32>
    %cst_264 = arith.constant 0.000000e+00 : f32
    %391 = vector.broadcast %cst_264 : f32 to vector<6x128xf32>
    %392 = arith.maximumf %390, %391 : vector<6x128xf32>
    %cst_265 = arith.constant 0.000000e+00 : f32
    %393 = vector.broadcast %cst_265 : f32 to vector<5x128xf32>
    %394 = vector.extract_strided_slice %369 {offsets = [0, 0], sizes = [5, 128], strides = [1, 1]} : vector<7x128xf32> to vector<5x128xf32>
    %395 = arith.truncf %394 : vector<5x128xf32> to vector<5x128xbf16>
    %c0_266 = arith.constant 0 : index
    %c0_267 = arith.constant 0 : index
    %c0_268 = arith.constant 0 : index
    %396 = vector.load %arg4[%c0_266, %c0_267, %c0_268] : memref<3x128x128xbf16, #tpu.memory_space<vmem>>, vector<1x128x128xbf16>
    %397 = vector.shape_cast %396 : vector<1x128x128xbf16> to vector<128x128xbf16>
    %cst_269 = arith.constant dense<0.000000e+00> : vector<5x128xf32>
    %398 = tpu.matmul %395, %397, %cst_269 {dimension_numbers = #tpu.dot_dimension_numbers<[1], [0], [0], [1], [0, 0, 1, 1], [], []>} : vector<5x128xbf16>, vector<128x128xbf16>, vector<5x128xf32> -> vector<5x128xf32>
    %399 = arith.addf %393, %398 : vector<5x128xf32>
    %400 = vector.extract_strided_slice %368 {offsets = [1, 0], sizes = [5, 128], strides = [1, 1]} : vector<7x128xf32> to vector<5x128xf32>
    %401 = arith.truncf %400 : vector<5x128xf32> to vector<5x128xbf16>
    %c1_270 = arith.constant 1 : index
    %c0_271 = arith.constant 0 : index
    %c0_272 = arith.constant 0 : index
    %402 = vector.load %arg4[%c1_270, %c0_271, %c0_272] : memref<3x128x128xbf16, #tpu.memory_space<vmem>>, vector<1x128x128xbf16>
    %403 = vector.shape_cast %402 : vector<1x128x128xbf16> to vector<128x128xbf16>
    %cst_273 = arith.constant dense<0.000000e+00> : vector<5x128xf32>
    %404 = tpu.matmul %401, %403, %cst_273 {dimension_numbers = #tpu.dot_dimension_numbers<[1], [0], [0], [1], [0, 0, 1, 1], [], []>} : vector<5x128xbf16>, vector<128x128xbf16>, vector<5x128xf32> -> vector<5x128xf32>
    %405 = arith.addf %399, %404 : vector<5x128xf32>
    %406 = vector.extract_strided_slice %369 {offsets = [1, 0], sizes = [5, 128], strides = [1, 1]} : vector<7x128xf32> to vector<5x128xf32>
    %407 = arith.truncf %406 : vector<5x128xf32> to vector<5x128xbf16>
    %c2_274 = arith.constant 2 : index
    %c0_275 = arith.constant 0 : index
    %c0_276 = arith.constant 0 : index
    %408 = vector.load %arg4[%c2_274, %c0_275, %c0_276] : memref<3x128x128xbf16, #tpu.memory_space<vmem>>, vector<1x128x128xbf16>
    %409 = vector.shape_cast %408 : vector<1x128x128xbf16> to vector<128x128xbf16>
    %cst_277 = arith.constant dense<0.000000e+00> : vector<5x128xf32>
    %410 = tpu.matmul %407, %409, %cst_277 {dimension_numbers = #tpu.dot_dimension_numbers<[1], [0], [0], [1], [0, 0, 1, 1], [], []>} : vector<5x128xbf16>, vector<128x128xbf16>, vector<5x128xf32> -> vector<5x128xf32>
    %411 = arith.addf %405, %410 : vector<5x128xf32>
    %412 = vector.broadcast %1 : vector<1x128xf32> to vector<5x128xf32>
    %413 = arith.addf %411, %412 : vector<5x128xf32>
    %cst_278 = arith.constant 0.000000e+00 : f32
    %414 = vector.broadcast %cst_278 : f32 to vector<5x128xf32>
    %415 = arith.maximumf %413, %414 : vector<5x128xf32>
    %416 = vector.extract_strided_slice %392 {offsets = [0, 0], sizes = [5, 128], strides = [1, 1]} : vector<6x128xf32> to vector<5x128xf32>
    %417 = arith.maximumf %416, %415 : vector<5x128xf32>
    %418 = vector.extract_strided_slice %417 {offsets = [0, 0], sizes = [1, 128], strides = [1, 1]} : vector<5x128xf32> to vector<1x128xf32>
    %c1_279 = arith.constant 1 : index
    %c0_280 = arith.constant 0 : index
    %419 = vector.load %arg14[%c1_279, %c0_280] : memref<10x128xf32, #tpu.memory_space<vmem>>, vector<1x128xf32>
    tpu.vector_store %arg14[%c1_279, %c0_280], %418 {strides = array<i32>} : memref<10x128xf32, #tpu.memory_space<vmem>>, vector<1x128xf32>,
    %420 = vector.extract_strided_slice %417 {offsets = [1, 0], sizes = [1, 128], strides = [1, 1]} : vector<5x128xf32> to vector<1x128xf32>
    %c3_281 = arith.constant 3 : index
    %c0_282 = arith.constant 0 : index
    %421 = vector.load %arg14[%c3_281, %c0_282] : memref<10x128xf32, #tpu.memory_space<vmem>>, vector<1x128xf32>
    tpu.vector_store %arg14[%c3_281, %c0_282], %420 {strides = array<i32>} : memref<10x128xf32, #tpu.memory_space<vmem>>, vector<1x128xf32>,
    %422 = vector.extract_strided_slice %417 {offsets = [2, 0], sizes = [1, 128], strides = [1, 1]} : vector<5x128xf32> to vector<1x128xf32>
    %c5_283 = arith.constant 5 : index
    %c0_284 = arith.constant 0 : index
    %423 = vector.load %arg14[%c5_283, %c0_284] : memref<10x128xf32, #tpu.memory_space<vmem>>, vector<1x128xf32>
    tpu.vector_store %arg14[%c5_283, %c0_284], %422 {strides = array<i32>} : memref<10x128xf32, #tpu.memory_space<vmem>>, vector<1x128xf32>,
    %424 = vector.extract_strided_slice %417 {offsets = [3, 0], sizes = [1, 128], strides = [1, 1]} : vector<5x128xf32> to vector<1x128xf32>
    %c7_285 = arith.constant 7 : index
    %c0_286 = arith.constant 0 : index
    %425 = vector.load %arg14[%c7_285, %c0_286] : memref<10x128xf32, #tpu.memory_space<vmem>>, vector<1x128xf32>
    tpu.vector_store %arg14[%c7_285, %c0_286], %424 {strides = array<i32>} : memref<10x128xf32, #tpu.memory_space<vmem>>, vector<1x128xf32>,
    %426 = vector.extract_strided_slice %417 {offsets = [4, 0], sizes = [1, 128], strides = [1, 1]} : vector<5x128xf32> to vector<1x128xf32>
    %c9 = arith.constant 9 : index
    %c0_287 = arith.constant 0 : index
    %427 = vector.load %arg14[%c9, %c0_287] : memref<10x128xf32, #tpu.memory_space<vmem>>, vector<1x128xf32>
    tpu.vector_store %arg14[%c9, %c0_287], %426 {strides = array<i32>} : memref<10x128xf32, #tpu.memory_space<vmem>>, vector<1x128xf32>,
    %c0_288 = arith.constant 0 : index
    %c0_289 = arith.constant 0 : index
    %428 = vector.load %arg14[%c0_288, %c0_289] : memref<10x128xf32, #tpu.memory_space<vmem>>, vector<10x128xf32>
    %429 = arith.truncf %428 : vector<10x128xf32> to vector<10x128xbf16>
    %c0_290 = arith.constant 0 : index
    %c0_291 = arith.constant 0 : index
    %430 = vector.load %arg6[%c0_290, %c0_291] : memref<128x1024xbf16, #tpu.memory_space<vmem>>, vector<128x1024xbf16>
    %cst_292 = arith.constant dense<0.000000e+00> : vector<10x1024xf32>
    %431 = tpu.matmul %429, %430, %cst_292 {dimension_numbers = #tpu.dot_dimension_numbers<[1], [0], [0], [1], [0, 0, 1, 1], [], []>} : vector<10x128xbf16>, vector<128x1024xbf16>, vector<10x1024xf32> -> vector<10x1024xf32>
    %c0_293 = arith.constant 0 : index
    %c0_294 = arith.constant 0 : index
    %432 = vector.load %arg7[%c0_293, %c0_294] : memref<1x1024xf32, #tpu.memory_space<vmem>>, vector<1x1024xf32>
    %433 = vector.broadcast %432 : vector<1x1024xf32> to vector<10x1024xf32>
    %434 = arith.addf %431, %433 : vector<10x1024xf32>
    %cst_295 = arith.constant 0.000000e+00 : f32
    %435 = vector.broadcast %cst_295 : f32 to vector<2x128xf32>
    %cst_296 = arith.constant 0.000000e+00 : f32
    %436 = vector.broadcast %cst_296 : f32 to vector<2x128xf32>
    %cst_297 = arith.constant 0.000000e+00 : f32
    %437 = vector.broadcast %cst_297 : f32 to vector<2x128xf32>
    %cst_298 = arith.constant 0.000000e+00 : f32
    %438 = vector.broadcast %cst_298 : f32 to vector<2x128xf32>
    %439 = vector.extract_strided_slice %434 {offsets = [0, 0], sizes = [2, 512], strides = [1, 1]} : vector<10x1024xf32> to vector<2x512xf32>
    %440 = vector.extract_strided_slice %434 {offsets = [8, 512], sizes = [2, 512], strides = [1, 1]} : vector<10x1024xf32> to vector<2x512xf32>
    %441 = arith.truncf %435 : vector<2x128xf32> to vector<2x128xbf16>
    %c0_299 = arith.constant 0 : index
    %c0_300 = arith.constant 0 : index
    %442 = vector.load %arg8[%c0_299, %c0_300] : memref<128x512xbf16, #tpu.memory_space<vmem>>, vector<128x512xbf16>
    %cst_301 = arith.constant dense<0.000000e+00> : vector<2x512xf32>
    %443 = tpu.matmul %441, %442, %cst_301 {dimension_numbers = #tpu.dot_dimension_numbers<[1], [0], [0], [1], [0, 0, 1, 1], [], []>} : vector<2x128xbf16>, vector<128x512xbf16>, vector<2x512xf32> -> vector<2x512xf32>
    %444 = arith.addf %439, %443 : vector<2x512xf32>
    %445 = arith.truncf %437 : vector<2x128xf32> to vector<2x128xbf16>
    %c0_302 = arith.constant 0 : index
    %c0_303 = arith.constant 0 : index
    %446 = vector.load %arg9[%c0_302, %c0_303] : memref<128x512xbf16, #tpu.memory_space<vmem>>, vector<128x512xbf16>
    %cst_304 = arith.constant dense<0.000000e+00> : vector<2x512xf32>
    %447 = tpu.matmul %445, %446, %cst_304 {dimension_numbers = #tpu.dot_dimension_numbers<[1], [0], [0], [1], [0, 0, 1, 1], [], []>} : vector<2x128xbf16>, vector<128x512xbf16>, vector<2x512xf32> -> vector<2x512xf32>
    %448 = arith.addf %440, %447 : vector<2x512xf32>
    %449 = vector.extract_strided_slice %444 {offsets = [0, 0], sizes = [2, 128], strides = [1, 1]} : vector<2x512xf32> to vector<2x128xf32>
    %450 = arith.negf %449 : vector<2x128xf32>
    %451 = math.exp %450 : vector<2x128xf32>
    %cst_305 = arith.constant 1.000000e+00 : f32
    %452 = vector.broadcast %cst_305 : f32 to vector<2x128xf32>
    %453 = arith.addf %452, %451 : vector<2x128xf32>
    %454 = arith.divf %452, %453 : vector<2x128xf32>
    %455 = vector.extract_strided_slice %444 {offsets = [0, 128], sizes = [2, 128], strides = [1, 1]} : vector<2x512xf32> to vector<2x128xf32>
    %456 = arith.negf %455 : vector<2x128xf32>
    %457 = math.exp %456 : vector<2x128xf32>
    %cst_306 = arith.constant 1.000000e+00 : f32
    %458 = vector.broadcast %cst_306 : f32 to vector<2x128xf32>
    %459 = arith.addf %458, %457 : vector<2x128xf32>
    %460 = arith.divf %458, %459 : vector<2x128xf32>
    %461 = vector.extract_strided_slice %444 {offsets = [0, 256], sizes = [2, 128], strides = [1, 1]} : vector<2x512xf32> to vector<2x128xf32>
    %462 = math.tanh %461 : vector<2x128xf32>
    %463 = vector.extract_strided_slice %444 {offsets = [0, 384], sizes = [2, 128], strides = [1, 1]} : vector<2x512xf32> to vector<2x128xf32>
    %464 = arith.negf %463 : vector<2x128xf32>
    %465 = math.exp %464 : vector<2x128xf32>
    %cst_307 = arith.constant 1.000000e+00 : f32
    %466 = vector.broadcast %cst_307 : f32 to vector<2x128xf32>
    %467 = arith.addf %466, %465 : vector<2x128xf32>
    %468 = arith.divf %466, %467 : vector<2x128xf32>
    %469 = arith.mulf %460, %436 : vector<2x128xf32>
    %470 = arith.mulf %454, %462 : vector<2x128xf32>
    %471 = arith.addf %469, %470 : vector<2x128xf32>
    %472 = math.tanh %471 : vector<2x128xf32>
    %473 = arith.mulf %468, %472 : vector<2x128xf32>
    %474 = vector.extract_strided_slice %448 {offsets = [0, 0], sizes = [2, 128], strides = [1, 1]} : vector<2x512xf32> to vector<2x128xf32>
    %475 = arith.negf %474 : vector<2x128xf32>
    %476 = math.exp %475 : vector<2x128xf32>
    %cst_308 = arith.constant 1.000000e+00 : f32
    %477 = vector.broadcast %cst_308 : f32 to vector<2x128xf32>
    %478 = arith.addf %477, %476 : vector<2x128xf32>
    %479 = arith.divf %477, %478 : vector<2x128xf32>
    %480 = vector.extract_strided_slice %448 {offsets = [0, 128], sizes = [2, 128], strides = [1, 1]} : vector<2x512xf32> to vector<2x128xf32>
    %481 = arith.negf %480 : vector<2x128xf32>
    %482 = math.exp %481 : vector<2x128xf32>
    %cst_309 = arith.constant 1.000000e+00 : f32
    %483 = vector.broadcast %cst_309 : f32 to vector<2x128xf32>
    %484 = arith.addf %483, %482 : vector<2x128xf32>
    %485 = arith.divf %483, %484 : vector<2x128xf32>
    %486 = vector.extract_strided_slice %448 {offsets = [0, 256], sizes = [2, 128], strides = [1, 1]} : vector<2x512xf32> to vector<2x128xf32>
    %487 = math.tanh %486 : vector<2x128xf32>
    %488 = vector.extract_strided_slice %448 {offsets = [0, 384], sizes = [2, 128], strides = [1, 1]} : vector<2x512xf32> to vector<2x128xf32>
    %489 = arith.negf %488 : vector<2x128xf32>
    %490 = math.exp %489 : vector<2x128xf32>
    %cst_310 = arith.constant 1.000000e+00 : f32
    %491 = vector.broadcast %cst_310 : f32 to vector<2x128xf32>
    %492 = arith.addf %491, %490 : vector<2x128xf32>
    %493 = arith.divf %491, %492 : vector<2x128xf32>
    %494 = arith.mulf %485, %438 : vector<2x128xf32>
    %495 = arith.mulf %479, %487 : vector<2x128xf32>
    %496 = arith.addf %494, %495 : vector<2x128xf32>
    %497 = math.tanh %496 : vector<2x128xf32>
    %498 = arith.mulf %493, %497 : vector<2x128xf32>
    %499 = vector.extract_strided_slice %434 {offsets = [2, 0], sizes = [2, 512], strides = [1, 1]} : vector<10x1024xf32> to vector<2x512xf32>
    %500 = vector.extract_strided_slice %434 {offsets = [6, 512], sizes = [2, 512], strides = [1, 1]} : vector<10x1024xf32> to vector<2x512xf32>
    %501 = arith.truncf %473 : vector<2x128xf32> to vector<2x128xbf16>
    %c0_311 = arith.constant 0 : index
    %c0_312 = arith.constant 0 : index
    %502 = vector.load %arg8[%c0_311, %c0_312] : memref<128x512xbf16, #tpu.memory_space<vmem>>, vector<128x512xbf16>
    %cst_313 = arith.constant dense<0.000000e+00> : vector<2x512xf32>
    %503 = tpu.matmul %501, %502, %cst_313 {dimension_numbers = #tpu.dot_dimension_numbers<[1], [0], [0], [1], [0, 0, 1, 1], [], []>} : vector<2x128xbf16>, vector<128x512xbf16>, vector<2x512xf32> -> vector<2x512xf32>
    %504 = arith.addf %499, %503 : vector<2x512xf32>
    %505 = arith.truncf %498 : vector<2x128xf32> to vector<2x128xbf16>
    %c0_314 = arith.constant 0 : index
    %c0_315 = arith.constant 0 : index
    %506 = vector.load %arg9[%c0_314, %c0_315] : memref<128x512xbf16, #tpu.memory_space<vmem>>, vector<128x512xbf16>
    %cst_316 = arith.constant dense<0.000000e+00> : vector<2x512xf32>
    %507 = tpu.matmul %505, %506, %cst_316 {dimension_numbers = #tpu.dot_dimension_numbers<[1], [0], [0], [1], [0, 0, 1, 1], [], []>} : vector<2x128xbf16>, vector<128x512xbf16>, vector<2x512xf32> -> vector<2x512xf32>
    %508 = arith.addf %500, %507 : vector<2x512xf32>
    %509 = vector.extract_strided_slice %504 {offsets = [0, 0], sizes = [2, 128], strides = [1, 1]} : vector<2x512xf32> to vector<2x128xf32>
    %510 = arith.negf %509 : vector<2x128xf32>
    %511 = math.exp %510 : vector<2x128xf32>
    %cst_317 = arith.constant 1.000000e+00 : f32
    %512 = vector.broadcast %cst_317 : f32 to vector<2x128xf32>
    %513 = arith.addf %512, %511 : vector<2x128xf32>
    %514 = arith.divf %512, %513 : vector<2x128xf32>
    %515 = vector.extract_strided_slice %504 {offsets = [0, 128], sizes = [2, 128], strides = [1, 1]} : vector<2x512xf32> to vector<2x128xf32>
    %516 = arith.negf %515 : vector<2x128xf32>
    %517 = math.exp %516 : vector<2x128xf32>
    %cst_318 = arith.constant 1.000000e+00 : f32
    %518 = vector.broadcast %cst_318 : f32 to vector<2x128xf32>
    %519 = arith.addf %518, %517 : vector<2x128xf32>
    %520 = arith.divf %518, %519 : vector<2x128xf32>
    %521 = vector.extract_strided_slice %504 {offsets = [0, 256], sizes = [2, 128], strides = [1, 1]} : vector<2x512xf32> to vector<2x128xf32>
    %522 = math.tanh %521 : vector<2x128xf32>
    %523 = vector.extract_strided_slice %504 {offsets = [0, 384], sizes = [2, 128], strides = [1, 1]} : vector<2x512xf32> to vector<2x128xf32>
    %524 = arith.negf %523 : vector<2x128xf32>
    %525 = math.exp %524 : vector<2x128xf32>
    %cst_319 = arith.constant 1.000000e+00 : f32
    %526 = vector.broadcast %cst_319 : f32 to vector<2x128xf32>
    %527 = arith.addf %526, %525 : vector<2x128xf32>
    %528 = arith.divf %526, %527 : vector<2x128xf32>
    %529 = arith.mulf %520, %471 : vector<2x128xf32>
    %530 = arith.mulf %514, %522 : vector<2x128xf32>
    %531 = arith.addf %529, %530 : vector<2x128xf32>
    %532 = math.tanh %531 : vector<2x128xf32>
    %533 = arith.mulf %528, %532 : vector<2x128xf32>
    %534 = vector.extract_strided_slice %508 {offsets = [0, 0], sizes = [2, 128], strides = [1, 1]} : vector<2x512xf32> to vector<2x128xf32>
    %535 = arith.negf %534 : vector<2x128xf32>
    %536 = math.exp %535 : vector<2x128xf32>
    %cst_320 = arith.constant 1.000000e+00 : f32
    %537 = vector.broadcast %cst_320 : f32 to vector<2x128xf32>
    %538 = arith.addf %537, %536 : vector<2x128xf32>
    %539 = arith.divf %537, %538 : vector<2x128xf32>
    %540 = vector.extract_strided_slice %508 {offsets = [0, 128], sizes = [2, 128], strides = [1, 1]} : vector<2x512xf32> to vector<2x128xf32>
    %541 = arith.negf %540 : vector<2x128xf32>
    %542 = math.exp %541 : vector<2x128xf32>
    %cst_321 = arith.constant 1.000000e+00 : f32
    %543 = vector.broadcast %cst_321 : f32 to vector<2x128xf32>
    %544 = arith.addf %543, %542 : vector<2x128xf32>
    %545 = arith.divf %543, %544 : vector<2x128xf32>
    %546 = vector.extract_strided_slice %508 {offsets = [0, 256], sizes = [2, 128], strides = [1, 1]} : vector<2x512xf32> to vector<2x128xf32>
    %547 = math.tanh %546 : vector<2x128xf32>
    %548 = vector.extract_strided_slice %508 {offsets = [0, 384], sizes = [2, 128], strides = [1, 1]} : vector<2x512xf32> to vector<2x128xf32>
    %549 = arith.negf %548 : vector<2x128xf32>
    %550 = math.exp %549 : vector<2x128xf32>
    %cst_322 = arith.constant 1.000000e+00 : f32
    %551 = vector.broadcast %cst_322 : f32 to vector<2x128xf32>
    %552 = arith.addf %551, %550 : vector<2x128xf32>
    %553 = arith.divf %551, %552 : vector<2x128xf32>
    %554 = arith.mulf %545, %496 : vector<2x128xf32>
    %555 = arith.mulf %539, %547 : vector<2x128xf32>
    %556 = arith.addf %554, %555 : vector<2x128xf32>
    %557 = math.tanh %556 : vector<2x128xf32>
    %558 = arith.mulf %553, %557 : vector<2x128xf32>
    %559 = vector.extract_strided_slice %434 {offsets = [4, 0], sizes = [2, 512], strides = [1, 1]} : vector<10x1024xf32> to vector<2x512xf32>
    %560 = vector.extract_strided_slice %434 {offsets = [4, 512], sizes = [2, 512], strides = [1, 1]} : vector<10x1024xf32> to vector<2x512xf32>
    %561 = arith.truncf %533 : vector<2x128xf32> to vector<2x128xbf16>
    %c0_323 = arith.constant 0 : index
    %c0_324 = arith.constant 0 : index
    %562 = vector.load %arg8[%c0_323, %c0_324] : memref<128x512xbf16, #tpu.memory_space<vmem>>, vector<128x512xbf16>
    %cst_325 = arith.constant dense<0.000000e+00> : vector<2x512xf32>
    %563 = tpu.matmul %561, %562, %cst_325 {dimension_numbers = #tpu.dot_dimension_numbers<[1], [0], [0], [1], [0, 0, 1, 1], [], []>} : vector<2x128xbf16>, vector<128x512xbf16>, vector<2x512xf32> -> vector<2x512xf32>
    %564 = arith.addf %559, %563 : vector<2x512xf32>
    %565 = arith.truncf %558 : vector<2x128xf32> to vector<2x128xbf16>
    %c0_326 = arith.constant 0 : index
    %c0_327 = arith.constant 0 : index
    %566 = vector.load %arg9[%c0_326, %c0_327] : memref<128x512xbf16, #tpu.memory_space<vmem>>, vector<128x512xbf16>
    %cst_328 = arith.constant dense<0.000000e+00> : vector<2x512xf32>
    %567 = tpu.matmul %565, %566, %cst_328 {dimension_numbers = #tpu.dot_dimension_numbers<[1], [0], [0], [1], [0, 0, 1, 1], [], []>} : vector<2x128xbf16>, vector<128x512xbf16>, vector<2x512xf32> -> vector<2x512xf32>
    %568 = arith.addf %560, %567 : vector<2x512xf32>
    %569 = vector.extract_strided_slice %564 {offsets = [0, 0], sizes = [2, 128], strides = [1, 1]} : vector<2x512xf32> to vector<2x128xf32>
    %570 = arith.negf %569 : vector<2x128xf32>
    %571 = math.exp %570 : vector<2x128xf32>
    %cst_329 = arith.constant 1.000000e+00 : f32
    %572 = vector.broadcast %cst_329 : f32 to vector<2x128xf32>
    %573 = arith.addf %572, %571 : vector<2x128xf32>
    %574 = arith.divf %572, %573 : vector<2x128xf32>
    %575 = vector.extract_strided_slice %564 {offsets = [0, 128], sizes = [2, 128], strides = [1, 1]} : vector<2x512xf32> to vector<2x128xf32>
    %576 = arith.negf %575 : vector<2x128xf32>
    %577 = math.exp %576 : vector<2x128xf32>
    %cst_330 = arith.constant 1.000000e+00 : f32
    %578 = vector.broadcast %cst_330 : f32 to vector<2x128xf32>
    %579 = arith.addf %578, %577 : vector<2x128xf32>
    %580 = arith.divf %578, %579 : vector<2x128xf32>
    %581 = vector.extract_strided_slice %564 {offsets = [0, 256], sizes = [2, 128], strides = [1, 1]} : vector<2x512xf32> to vector<2x128xf32>
    %582 = math.tanh %581 : vector<2x128xf32>
    %583 = vector.extract_strided_slice %564 {offsets = [0, 384], sizes = [2, 128], strides = [1, 1]} : vector<2x512xf32> to vector<2x128xf32>
    %584 = arith.negf %583 : vector<2x128xf32>
    %585 = math.exp %584 : vector<2x128xf32>
    %cst_331 = arith.constant 1.000000e+00 : f32
    %586 = vector.broadcast %cst_331 : f32 to vector<2x128xf32>
    %587 = arith.addf %586, %585 : vector<2x128xf32>
    %588 = arith.divf %586, %587 : vector<2x128xf32>
    %589 = arith.mulf %580, %531 : vector<2x128xf32>
    %590 = arith.mulf %574, %582 : vector<2x128xf32>
    %591 = arith.addf %589, %590 : vector<2x128xf32>
    %592 = math.tanh %591 : vector<2x128xf32>
    %593 = arith.mulf %588, %592 : vector<2x128xf32>
    %594 = vector.extract_strided_slice %568 {offsets = [0, 0], sizes = [2, 128], strides = [1, 1]} : vector<2x512xf32> to vector<2x128xf32>
    %595 = arith.negf %594 : vector<2x128xf32>
    %596 = math.exp %595 : vector<2x128xf32>
    %cst_332 = arith.constant 1.000000e+00 : f32
    %597 = vector.broadcast %cst_332 : f32 to vector<2x128xf32>
    %598 = arith.addf %597, %596 : vector<2x128xf32>
    %599 = arith.divf %597, %598 : vector<2x128xf32>
    %600 = vector.extract_strided_slice %568 {offsets = [0, 128], sizes = [2, 128], strides = [1, 1]} : vector<2x512xf32> to vector<2x128xf32>
    %601 = arith.negf %600 : vector<2x128xf32>
    %602 = math.exp %601 : vector<2x128xf32>
    %cst_333 = arith.constant 1.000000e+00 : f32
    %603 = vector.broadcast %cst_333 : f32 to vector<2x128xf32>
    %604 = arith.addf %603, %602 : vector<2x128xf32>
    %605 = arith.divf %603, %604 : vector<2x128xf32>
    %606 = vector.extract_strided_slice %568 {offsets = [0, 256], sizes = [2, 128], strides = [1, 1]} : vector<2x512xf32> to vector<2x128xf32>
    %607 = math.tanh %606 : vector<2x128xf32>
    %608 = vector.extract_strided_slice %568 {offsets = [0, 384], sizes = [2, 128], strides = [1, 1]} : vector<2x512xf32> to vector<2x128xf32>
    %609 = arith.negf %608 : vector<2x128xf32>
    %610 = math.exp %609 : vector<2x128xf32>
    %cst_334 = arith.constant 1.000000e+00 : f32
    %611 = vector.broadcast %cst_334 : f32 to vector<2x128xf32>
    %612 = arith.addf %611, %610 : vector<2x128xf32>
    %613 = arith.divf %611, %612 : vector<2x128xf32>
    %614 = arith.mulf %605, %556 : vector<2x128xf32>
    %615 = arith.mulf %599, %607 : vector<2x128xf32>
    %616 = arith.addf %614, %615 : vector<2x128xf32>
    %617 = math.tanh %616 : vector<2x128xf32>
    %618 = arith.mulf %613, %617 : vector<2x128xf32>
    %619 = vector.extract_strided_slice %434 {offsets = [6, 0], sizes = [2, 512], strides = [1, 1]} : vector<10x1024xf32> to vector<2x512xf32>
    %620 = vector.extract_strided_slice %434 {offsets = [2, 512], sizes = [2, 512], strides = [1, 1]} : vector<10x1024xf32> to vector<2x512xf32>
    %621 = arith.truncf %593 : vector<2x128xf32> to vector<2x128xbf16>
    %c0_335 = arith.constant 0 : index
    %c0_336 = arith.constant 0 : index
    %622 = vector.load %arg8[%c0_335, %c0_336] : memref<128x512xbf16, #tpu.memory_space<vmem>>, vector<128x512xbf16>
    %cst_337 = arith.constant dense<0.000000e+00> : vector<2x512xf32>
    %623 = tpu.matmul %621, %622, %cst_337 {dimension_numbers = #tpu.dot_dimension_numbers<[1], [0], [0], [1], [0, 0, 1, 1], [], []>} : vector<2x128xbf16>, vector<128x512xbf16>, vector<2x512xf32> -> vector<2x512xf32>
    %624 = arith.addf %619, %623 : vector<2x512xf32>
    %625 = arith.truncf %618 : vector<2x128xf32> to vector<2x128xbf16>
    %c0_338 = arith.constant 0 : index
    %c0_339 = arith.constant 0 : index
    %626 = vector.load %arg9[%c0_338, %c0_339] : memref<128x512xbf16, #tpu.memory_space<vmem>>, vector<128x512xbf16>
    %cst_340 = arith.constant dense<0.000000e+00> : vector<2x512xf32>
    %627 = tpu.matmul %625, %626, %cst_340 {dimension_numbers = #tpu.dot_dimension_numbers<[1], [0], [0], [1], [0, 0, 1, 1], [], []>} : vector<2x128xbf16>, vector<128x512xbf16>, vector<2x512xf32> -> vector<2x512xf32>
    %628 = arith.addf %620, %627 : vector<2x512xf32>
    %629 = vector.extract_strided_slice %624 {offsets = [0, 0], sizes = [2, 128], strides = [1, 1]} : vector<2x512xf32> to vector<2x128xf32>
    %630 = arith.negf %629 : vector<2x128xf32>
    %631 = math.exp %630 : vector<2x128xf32>
    %cst_341 = arith.constant 1.000000e+00 : f32
    %632 = vector.broadcast %cst_341 : f32 to vector<2x128xf32>
    %633 = arith.addf %632, %631 : vector<2x128xf32>
    %634 = arith.divf %632, %633 : vector<2x128xf32>
    %635 = vector.extract_strided_slice %624 {offsets = [0, 128], sizes = [2, 128], strides = [1, 1]} : vector<2x512xf32> to vector<2x128xf32>
    %636 = arith.negf %635 : vector<2x128xf32>
    %637 = math.exp %636 : vector<2x128xf32>
    %cst_342 = arith.constant 1.000000e+00 : f32
    %638 = vector.broadcast %cst_342 : f32 to vector<2x128xf32>
    %639 = arith.addf %638, %637 : vector<2x128xf32>
    %640 = arith.divf %638, %639 : vector<2x128xf32>
    %641 = vector.extract_strided_slice %624 {offsets = [0, 256], sizes = [2, 128], strides = [1, 1]} : vector<2x512xf32> to vector<2x128xf32>
    %642 = math.tanh %641 : vector<2x128xf32>
    %643 = vector.extract_strided_slice %624 {offsets = [0, 384], sizes = [2, 128], strides = [1, 1]} : vector<2x512xf32> to vector<2x128xf32>
    %644 = arith.negf %643 : vector<2x128xf32>
    %645 = math.exp %644 : vector<2x128xf32>
    %cst_343 = arith.constant 1.000000e+00 : f32
    %646 = vector.broadcast %cst_343 : f32 to vector<2x128xf32>
    %647 = arith.addf %646, %645 : vector<2x128xf32>
    %648 = arith.divf %646, %647 : vector<2x128xf32>
    %649 = arith.mulf %640, %591 : vector<2x128xf32>
    %650 = arith.mulf %634, %642 : vector<2x128xf32>
    %651 = arith.addf %649, %650 : vector<2x128xf32>
    %652 = math.tanh %651 : vector<2x128xf32>
    %653 = arith.mulf %648, %652 : vector<2x128xf32>
    %654 = vector.extract_strided_slice %628 {offsets = [0, 0], sizes = [2, 128], strides = [1, 1]} : vector<2x512xf32> to vector<2x128xf32>
    %655 = arith.negf %654 : vector<2x128xf32>
    %656 = math.exp %655 : vector<2x128xf32>
    %cst_344 = arith.constant 1.000000e+00 : f32
    %657 = vector.broadcast %cst_344 : f32 to vector<2x128xf32>
    %658 = arith.addf %657, %656 : vector<2x128xf32>
    %659 = arith.divf %657, %658 : vector<2x128xf32>
    %660 = vector.extract_strided_slice %628 {offsets = [0, 128], sizes = [2, 128], strides = [1, 1]} : vector<2x512xf32> to vector<2x128xf32>
    %661 = arith.negf %660 : vector<2x128xf32>
    %662 = math.exp %661 : vector<2x128xf32>
    %cst_345 = arith.constant 1.000000e+00 : f32
    %663 = vector.broadcast %cst_345 : f32 to vector<2x128xf32>
    %664 = arith.addf %663, %662 : vector<2x128xf32>
    %665 = arith.divf %663, %664 : vector<2x128xf32>
    %666 = vector.extract_strided_slice %628 {offsets = [0, 256], sizes = [2, 128], strides = [1, 1]} : vector<2x512xf32> to vector<2x128xf32>
    %667 = math.tanh %666 : vector<2x128xf32>
    %668 = vector.extract_strided_slice %628 {offsets = [0, 384], sizes = [2, 128], strides = [1, 1]} : vector<2x512xf32> to vector<2x128xf32>
    %669 = arith.negf %668 : vector<2x128xf32>
    %670 = math.exp %669 : vector<2x128xf32>
    %cst_346 = arith.constant 1.000000e+00 : f32
    %671 = vector.broadcast %cst_346 : f32 to vector<2x128xf32>
    %672 = arith.addf %671, %670 : vector<2x128xf32>
    %673 = arith.divf %671, %672 : vector<2x128xf32>
    %674 = arith.mulf %665, %616 : vector<2x128xf32>
    %675 = arith.mulf %659, %667 : vector<2x128xf32>
    %676 = arith.addf %674, %675 : vector<2x128xf32>
    %677 = math.tanh %676 : vector<2x128xf32>
    %678 = arith.mulf %673, %677 : vector<2x128xf32>
    %679 = vector.extract_strided_slice %434 {offsets = [8, 0], sizes = [2, 512], strides = [1, 1]} : vector<10x1024xf32> to vector<2x512xf32>
    %680 = vector.extract_strided_slice %434 {offsets = [0, 512], sizes = [2, 512], strides = [1, 1]} : vector<10x1024xf32> to vector<2x512xf32>
    %681 = arith.truncf %653 : vector<2x128xf32> to vector<2x128xbf16>
    %c0_347 = arith.constant 0 : index
    %c0_348 = arith.constant 0 : index
    %682 = vector.load %arg8[%c0_347, %c0_348] : memref<128x512xbf16, #tpu.memory_space<vmem>>, vector<128x512xbf16>
    %cst_349 = arith.constant dense<0.000000e+00> : vector<2x512xf32>
    %683 = tpu.matmul %681, %682, %cst_349 {dimension_numbers = #tpu.dot_dimension_numbers<[1], [0], [0], [1], [0, 0, 1, 1], [], []>} : vector<2x128xbf16>, vector<128x512xbf16>, vector<2x512xf32> -> vector<2x512xf32>
    %684 = arith.addf %679, %683 : vector<2x512xf32>
    %685 = arith.truncf %678 : vector<2x128xf32> to vector<2x128xbf16>
    %c0_350 = arith.constant 0 : index
    %c0_351 = arith.constant 0 : index
    %686 = vector.load %arg9[%c0_350, %c0_351] : memref<128x512xbf16, #tpu.memory_space<vmem>>, vector<128x512xbf16>
    %cst_352 = arith.constant dense<0.000000e+00> : vector<2x512xf32>
    %687 = tpu.matmul %685, %686, %cst_352 {dimension_numbers = #tpu.dot_dimension_numbers<[1], [0], [0], [1], [0, 0, 1, 1], [], []>} : vector<2x128xbf16>, vector<128x512xbf16>, vector<2x512xf32> -> vector<2x512xf32>
    %688 = arith.addf %680, %687 : vector<2x512xf32>
    %689 = vector.extract_strided_slice %684 {offsets = [0, 0], sizes = [2, 128], strides = [1, 1]} : vector<2x512xf32> to vector<2x128xf32>
    %690 = arith.negf %689 : vector<2x128xf32>
    %691 = math.exp %690 : vector<2x128xf32>
    %cst_353 = arith.constant 1.000000e+00 : f32
    %692 = vector.broadcast %cst_353 : f32 to vector<2x128xf32>
    %693 = arith.addf %692, %691 : vector<2x128xf32>
    %694 = arith.divf %692, %693 : vector<2x128xf32>
    %695 = vector.extract_strided_slice %684 {offsets = [0, 128], sizes = [2, 128], strides = [1, 1]} : vector<2x512xf32> to vector<2x128xf32>
    %696 = arith.negf %695 : vector<2x128xf32>
    %697 = math.exp %696 : vector<2x128xf32>
    %cst_354 = arith.constant 1.000000e+00 : f32
    %698 = vector.broadcast %cst_354 : f32 to vector<2x128xf32>
    %699 = arith.addf %698, %697 : vector<2x128xf32>
    %700 = arith.divf %698, %699 : vector<2x128xf32>
    %701 = vector.extract_strided_slice %684 {offsets = [0, 256], sizes = [2, 128], strides = [1, 1]} : vector<2x512xf32> to vector<2x128xf32>
    %702 = math.tanh %701 : vector<2x128xf32>
    %703 = vector.extract_strided_slice %684 {offsets = [0, 384], sizes = [2, 128], strides = [1, 1]} : vector<2x512xf32> to vector<2x128xf32>
    %704 = arith.negf %703 : vector<2x128xf32>
    %705 = math.exp %704 : vector<2x128xf32>
    %cst_355 = arith.constant 1.000000e+00 : f32
    %706 = vector.broadcast %cst_355 : f32 to vector<2x128xf32>
    %707 = arith.addf %706, %705 : vector<2x128xf32>
    %708 = arith.divf %706, %707 : vector<2x128xf32>
    %709 = arith.mulf %700, %651 : vector<2x128xf32>
    %710 = arith.mulf %694, %702 : vector<2x128xf32>
    %711 = arith.addf %709, %710 : vector<2x128xf32>
    %712 = math.tanh %711 : vector<2x128xf32>
    %713 = arith.mulf %708, %712 : vector<2x128xf32>
    %714 = vector.extract_strided_slice %688 {offsets = [0, 0], sizes = [2, 128], strides = [1, 1]} : vector<2x512xf32> to vector<2x128xf32>
    %715 = arith.negf %714 : vector<2x128xf32>
    %716 = math.exp %715 : vector<2x128xf32>
    %cst_356 = arith.constant 1.000000e+00 : f32
    %717 = vector.broadcast %cst_356 : f32 to vector<2x128xf32>
    %718 = arith.addf %717, %716 : vector<2x128xf32>
    %719 = arith.divf %717, %718 : vector<2x128xf32>
    %720 = vector.extract_strided_slice %688 {offsets = [0, 128], sizes = [2, 128], strides = [1, 1]} : vector<2x512xf32> to vector<2x128xf32>
    %721 = arith.negf %720 : vector<2x128xf32>
    %722 = math.exp %721 : vector<2x128xf32>
    %cst_357 = arith.constant 1.000000e+00 : f32
    %723 = vector.broadcast %cst_357 : f32 to vector<2x128xf32>
    %724 = arith.addf %723, %722 : vector<2x128xf32>
    %725 = arith.divf %723, %724 : vector<2x128xf32>
    %726 = vector.extract_strided_slice %688 {offsets = [0, 256], sizes = [2, 128], strides = [1, 1]} : vector<2x512xf32> to vector<2x128xf32>
    %727 = math.tanh %726 : vector<2x128xf32>
    %728 = vector.extract_strided_slice %688 {offsets = [0, 384], sizes = [2, 128], strides = [1, 1]} : vector<2x512xf32> to vector<2x128xf32>
    %729 = arith.negf %728 : vector<2x128xf32>
    %730 = math.exp %729 : vector<2x128xf32>
    %cst_358 = arith.constant 1.000000e+00 : f32
    %731 = vector.broadcast %cst_358 : f32 to vector<2x128xf32>
    %732 = arith.addf %731, %730 : vector<2x128xf32>
    %733 = arith.divf %731, %732 : vector<2x128xf32>
    %734 = arith.mulf %725, %676 : vector<2x128xf32>
    %735 = arith.mulf %719, %727 : vector<2x128xf32>
    %736 = arith.addf %734, %735 : vector<2x128xf32>
    %737 = math.tanh %736 : vector<2x128xf32>
    %738 = arith.mulf %733, %737 : vector<2x128xf32>
    %739 = tpu.concatenate %713, %738 in 1 : vector<2x128xf32>, vector<2x128xf32> -> vector<2x256xf32>
    %740 = arith.truncf %739 : vector<2x256xf32> to vector<2x256xbf16>
    %c0_359 = arith.constant 0 : index
    %c0_360 = arith.constant 0 : index
    %741 = vector.load %arg10[%c0_359, %c0_360] : memref<256x128xbf16, #tpu.memory_space<vmem>>, vector<256x128xbf16>
    %cst_361 = arith.constant dense<0.000000e+00> : vector<2x128xf32>
    %742 = tpu.matmul %740, %741, %cst_361 {dimension_numbers = #tpu.dot_dimension_numbers<[1], [0], [0], [1], [0, 0, 1, 1], [], []>} : vector<2x256xbf16>, vector<256x128xbf16>, vector<2x128xf32> -> vector<2x128xf32>
    %c0_362 = arith.constant 0 : index
    %c0_363 = arith.constant 0 : index
    %743 = vector.load %arg11[%c0_362, %c0_363] : memref<1x128xf32, #tpu.memory_space<vmem>>, vector<1x128xf32>
    %744 = vector.broadcast %743 : vector<1x128xf32> to vector<2x128xf32>
    %745 = arith.addf %742, %744 : vector<2x128xf32>
    %c0_364 = arith.constant 0 : index
    %c0_365 = arith.constant 0 : index
    %746 = vector.load %arg12[%c0_364, %c0_365] : memref<2x128xf32, #tpu.memory_space<vmem>>, vector<2x128xf32>
    tpu.vector_store %arg12[%c0_364, %c0_365], %745 {strides = array<i32>} : memref<2x128xf32, #tpu.memory_space<vmem>>, vector<2x128xf32>,
    return
  }
  func.func @transform_0(%arg0: i32) -> (i32, i32, i32) {
    %c0_i32 = arith.constant 0 : i32
    %c0_i32_0 = arith.constant 0 : i32
    %c0_i32_1 = arith.constant 0 : i32
    %c0_i32_2 = arith.constant 0 : i32
    return %c0_i32, %c0_i32_0, %c0_i32_1 : i32, i32, i32
  }
  func.func @transform_1(%arg0: i32) -> (i32, i32, i32) {
    %c0_i32 = arith.constant 0 : i32
    %c0_i32_0 = arith.constant 0 : i32
    %c0_i32_1 = arith.constant 0 : i32
    %c0_i32_2 = arith.constant 0 : i32
    return %c0_i32, %c0_i32_0, %c0_i32_1 : i32, i32, i32
  }
  func.func @transform_2(%arg0: i32) -> (i32, i32) {
    %c0_i32 = arith.constant 0 : i32
    %c0_i32_0 = arith.constant 0 : i32
    %c0_i32_1 = arith.constant 0 : i32
    return %c0_i32, %c0_i32_0 : i32, i32
  }
  func.func @transform_3(%arg0: i32) -> (i32, i32, i32) {
    %c0_i32 = arith.constant 0 : i32
    %c0_i32_0 = arith.constant 0 : i32
    %c0_i32_1 = arith.constant 0 : i32
    %c0_i32_2 = arith.constant 0 : i32
    return %c0_i32, %c0_i32_0, %c0_i32_1 : i32, i32, i32
  }
  func.func @transform_4(%arg0: i32) -> (i32, i32) {
    %c0_i32 = arith.constant 0 : i32
    %c0_i32_0 = arith.constant 0 : i32
    %c0_i32_1 = arith.constant 0 : i32
    return %c0_i32, %c0_i32_0 : i32, i32
  }
  func.func @transform_5(%arg0: i32) -> (i32, i32) {
    %c0_i32 = arith.constant 0 : i32
    %c0_i32_0 = arith.constant 0 : i32
    %c0_i32_1 = arith.constant 0 : i32
    return %c0_i32, %c0_i32_0 : i32, i32
  }
  func.func @transform_6(%arg0: i32) -> (i32, i32) {
    %c0_i32 = arith.constant 0 : i32
    %c0_i32_0 = arith.constant 0 : i32
    %c0_i32_1 = arith.constant 0 : i32
    return %c0_i32, %c0_i32_0 : i32, i32
  }
  func.func @transform_7(%arg0: i32) -> (i32, i32) {
    %c0_i32 = arith.constant 0 : i32
    %c0_i32_0 = arith.constant 0 : i32
    %c0_i32_1 = arith.constant 0 : i32
    return %c0_i32, %c0_i32_0 : i32, i32
  }
  func.func @transform_8(%arg0: i32) -> (i32, i32) {
    %c0_i32 = arith.constant 0 : i32
    %c0_i32_0 = arith.constant 0 : i32
    %c0_i32_1 = arith.constant 0 : i32
    return %c0_i32, %c0_i32_0 : i32, i32
  }
  func.func @transform_9(%arg0: i32) -> (i32, i32) {
    %c0_i32 = arith.constant 0 : i32
    %c0_i32_0 = arith.constant 0 : i32
    %c0_i32_1 = arith.constant 0 : i32
    return %c0_i32, %c0_i32_0 : i32, i32
  }
  func.func @transform_10(%arg0: i32) -> (i32, i32) {
    %c0_i32 = arith.constant 0 : i32
    %c0_i32_0 = arith.constant 0 : i32
    %c0_i32_1 = arith.constant 0 : i32
    return %c0_i32, %c0_i32_0 : i32, i32
  }
  func.func @transform_11(%arg0: i32) -> (i32, i32) {
    %c0_i32 = arith.constant 0 : i32
    %c0_i32_0 = arith.constant 0 : i32
    %c0_i32_1 = arith.constant 0 : i32
    return %c0_i32, %c0_i32_0 : i32, i32
  }
}

</mosaic_0001>

<bundles_post_ra>
// kernel: efficient_char_crnn_forward.1
= control target key start
LH: loop header
LB: loop body
LE: loop exit
PB: predicated region body
PF: predicated region fallthrough
CT: control target
= control target key end

     0   :  { %s8693_s0 = inlined_call_operand.vmem [shape: f32[8,7,128], index: 0, kind: input, shape index: {}]   ;;  %s8694_s1 = inlined_call_operand.vmem [shape: bf16[5,128,128], index: 1, kind: input, shape index: {}]   ;;  %s8695_s2 = inlined_call_operand.vmem [shape: f32[1,128], index: 2, kind: input, shape index: {}]   ;;  %s8696_s3 = inlined_call_operand.vmem [shape: bf16[3,128,128], index: 3, kind: input, shape index: {}]   ;;  %s8697_s4 = inlined_call_operand.vmem [shape: f32[1,128], index: 4, kind: input, shape index: {}]   ;;  %s8698_s5 = inlined_call_operand.vmem [shape: bf16[128,1024], index: 5, kind: input, shape index: {}]   ;;  %s8699_s6 = inlined_call_operand.vmem [shape: f32[1,1024], index: 6, kind: input, shape index: {}]   ;;  %s8700_s7 = inlined_call_operand.vmem [shape: bf16[128,512], index: 7, kind: input, shape index: {}]   ;;  %s8701_s8 = inlined_call_operand.vmem [shape: bf16[128,512], index: 8, kind: input, shape index: {}]   ;;  %s8702_s9 = inlined_call_operand.vmem [shape: bf16[256,128], index: 9, kind: input, shape index: {}]   ;;  %s8703_s10 = inlined_call_operand.vmem [shape: f32[1,128], index: 10, kind: input, shape index: {}]   ;;  %s8704_s11 = inlined_call_operand.hbm [shape: f32[2,128], index: 11, kind: output, shape index: {}]  }
   0x1   :  { %v6192_v0 = vld [vmem:[%s8694_s1 + $0x78] sm:$0xff]  ;;  %v6214_v4 = vld [vmem:[%s8694_s1 + $0x70] sm:$0xff]  ;;  %v6238_v8 = vld [vmem:[%s8694_s1 + $0x68] sm:$0xff] }
   0x2   :  { %v6197_v1 = vld [vmem:[%s8694_s1 + $0x38] sm:$0xff]  ;;  %134 = vmatpush.bf16.msra.mxu0 %v6192_v0  ;;  %v6219_v5 = vld [vmem:[%s8694_s1 + $0x30] sm:$0xff]  ;;  %v6243_v9 = vld [vmem:[%s8694_s1 + $0x28] sm:$0xff] }
   0x3   :  { %v6202_v2 = vld [vmem:[%s8694_s1 + $0xb8] sm:$0xff]  ;;  %195 = vmatpush.bf16.msra.mxu1 %v6197_v1  ;;  %v6226_v6 = vld [vmem:[%s8694_s1 + $0xb0] sm:$0xff]  ;;  %v6250_v10 = vld [vmem:[%s8694_s1 + $0xa8] sm:$0xff] }
   0x4   :  { %v6207_v3 = vld [vmem:[%s8694_s1 + $0xf8] sm:$0xff]  ;;  %274 = vmatpush.bf16.msra.mxu2 %v6202_v2  ;;  %v6231_v7 = vld [vmem:[%s8694_s1 + $0xf0] sm:$0xff]  ;;  %v6255_v11 = vld [vmem:[%s8694_s1 + $0xe8] sm:$0xff] }
   0x5   :  { %354 = vmatpush.bf16.msra.mxu3 %v6207_v3  ;;  %v6262_v12 = vld [vmem:[%s8694_s1 + $0x60] sm:$0xff] }
   0x6   :  { %135 = vmatpush.bf16.msra.mxu0 %v6214_v4  ;;  %v6267_v13 = vld [vmem:[%s8694_s1 + $0x20] sm:$0xff] }
   0x7   :  { %196 = vmatpush.bf16.msra.mxu1 %v6219_v5  ;;  %v6274_v14 = vld [vmem:[%s8694_s1 + $0xa0] sm:$0xff] }
   0x8   :  { %275 = vmatpush.bf16.msra.mxu2 %v6226_v6  ;;  %v6279_v15 = vld [vmem:[%s8694_s1 + $0xe0] sm:$0xff] }
   0x9   :  { %355 = vmatpush.bf16.msra.mxu3 %v6231_v7 }
   0xa   :  { %136 = vmatpush.bf16.msra.mxu0 %v6238_v8 }
   0xb   :  { %197 = vmatpush.bf16.msra.mxu1 %v6243_v9 }
   0xc   :  { %276 = vmatpush.bf16.msra.mxu2 %v6250_v10 }
   0xd   :  { %356 = vmatpush.bf16.msra.mxu3 %v6255_v11 }
   0xe   :  { %16 = vsyncpa [#allocation5], 0  ;;  %137 = vmatpush.bf16.msra.mxu0 %v6262_v12  ;;  %v6286_v16 = vld [vmem:[%s8694_s1 + $0x58] sm:$0xff]  ;;  %v6310_v20 = vld [vmem:[%s8694_s1 + $0x50] sm:$0xff]  ;;  %s6128_s28 = smov [#allocation4]   ;;  %s4336_s30 = sshll.u32 %s8704_s11, 4  ;;  %s4337_s30 = int_to_ptr.hbm [resolvable:$true] %s4336_s30 }
   0xf   :  { %198 = vmatpush.bf16.msra.mxu1 %v6267_v13  ;;  %v6291_v17 = vld [vmem:[%s8694_s1 + $0x18] sm:$0xff]  ;;  %v6315_v21 = vld [vmem:[%s8694_s1 + $0x10] sm:$0xff]  ;;  %v6334_v24 = vld [vmem:[%s8694_s1 + $0x48] sm:$0xff] }
  0x10   :  { %277 = vmatpush.bf16.msra.mxu2 %v6274_v14  ;;  %v6298_v18 = vld [vmem:[%s8694_s1 + $0x98] sm:$0xff]  ;;  %v6322_v22 = vld [vmem:[%s8694_s1 + $0x90] sm:$0xff]  ;;  %v6339_v25 = vld [vmem:[%s8694_s1 + $0x8] sm:$0xff] }
  0x11   :  { %357 = vmatpush.bf16.msra.mxu3 %v6279_v15  ;;  %v6303_v19 = vld [vmem:[%s8694_s1 + $0xd8] sm:$0xff]  ;;  %v6327_v23 = vld [vmem:[%s8694_s1 + $0xd0] sm:$0xff]  ;;  %v6346_v26 = vld [vmem:[%s8694_s1 + $0x88] sm:$0xff] }
  0x12   :  { %138 = vmatpush.bf16.msra.mxu0 %v6286_v16  ;;  %v6351_v27 = vld [vmem:[%s8694_s1 + $0xc8] sm:$0xff]  ;;  %v6358_v28 = vld [vmem:[%s8694_s1 + $0x40] sm:$0xff]  ;;  %v4346_v33 = vld [vmem:[%s8693_s0 + $0x10] sm:$0x7f] }
  0x13   :  { %199 = vmatpush.bf16.msra.mxu1 %v6291_v17  ;;  %v6363_v29 = vld [vmem:[%s8694_s1] sm:$0xff]  ;;  %v4345_v32 = vld [vmem:[%s8693_s0 + $0x8] sm:$0x7f]  ;;  %v6386_v34 = vld [vmem:[%s8694_s1 + $0x138] sm:$0xff]  ;;  %v6398_v38 = vpack.c.bf16 %v4346_v33, %v4346_v33 }
  0x14   :  { %278 = vmatpush.bf16.msra.mxu2 %v6298_v18  ;;  %v6368_v30 = vld [vmem:[%s8694_s1 + $0x80] sm:$0xff]  ;;  %v4347_v35 = vld [vmem:[%s8693_s0 + $0x18] sm:$0x7f]  ;;  %v6396_v37 = vpack.c.bf16 %v4345_v32, %v4345_v32  ;;  %v6409_v41 = vld [vmem:[%s8694_s1 + $0x130] sm:$0xff] }
  0x15   :  { %358 = vmatpush.bf16.msra.mxu3 %v6303_v19  ;;  %v6375_v31 = vld [vmem:[%s8694_s1 + $0xc0] sm:$0xff]  ;;  %v6402_v39 = vpack.c.bf16 %v4347_v35, %v4347_v35  ;;  %v6421_v42 = vld [vmem:[%s8694_s1 + $0x128] sm:$0xff]  ;;  %v6439_v44 = vld [vmem:[%s8694_s1 + $0x118] sm:$0xff]  ;;  %v595_v56 = vshll.u32 %v6398_v38, 16  ;;  %v593_v57 = vshrl.u32 %v6398_v38, 16 }
  0x16   :  { %139 = vmatpush.bf16.msra.mxu0 %v6310_v20  ;;  %v44_v36 = vld [vmem:[%s8693_s0] sm:$0x7f]  ;;  %v6448_v45 = vld [vmem:[%s8694_s1 + $0x110] sm:$0xff]  ;;  %v6457_v46 = vld [vmem:[%s8694_s1 + $0x108] sm:$0xff]  ;;  %v517_v52 = vshll.u32 %v6396_v37, 16  ;;  %v515_v53 = vshrl.u32 %v6396_v37, 16 }
  0x17   :  { %200 = vmatpush.bf16.msra.mxu1 %v6315_v21  ;;  %v51_v40 = vpack.c.bf16 %v44_v36, %v44_v36  ;;  %v6430_v43 = vld [vmem:[%s8694_s1 + $0x120] sm:$0xff]  ;;  %v597_v58 = vrot.slane %v595_v56, 1  ;;  %v673_v60 = vshll.u32 %v6402_v39, 16  ;;  %v671_v61 = vshrl.u32 %v6402_v39, 16  ;;  %v5704_v33 = vld [vmem:[%s8696_s3 + $0x10] sm:$0xff]  ;;  %v5703_v36 = vld [vmem:[%s8696_s3 + $0x8] sm:$0xff] }
  0x18   :  { %279 = vmatpush.bf16.msra.mxu2 %v6322_v22  ;;  %v6466_v50 = vld [vmem:[%s8694_s1 + $0x100] sm:$0xff]  ;;  %v519_v54 = vrot.slane %v517_v52, 1 }
  0x19   :  { %359 = vmatpush.bf16.msra.mxu3 %v6327_v23  ;;  %v388_v47 = vshll.u32 %v51_v40, 16  ;;  %v386_v48 = vshrl.u32 %v51_v40, 16  ;;  %v598_v59 = vor.u32 %v597_v58, %v593_v57  ;;  %v675_v62 = vrot.slane %v673_v60, 1  ;;  %v5722_v56 = vld [vmem:[%s8696_s3 + $0xa0] sm:$0xff] }
  0x1a   :  { %140 = vmatpush.bf16.msra.mxu0 %v6334_v24  ;;  %v6512_v55 = vor.u32 %v519_v54, %v515_v53 }
  0x1b   :  { %201 = vmatpush.bf16.msra.mxu1 %v6339_v25  ;;  %v390_v49 = vrot.slane %v388_v47, 1  ;;  %v676_v63 = vor.u32 %v675_v62, %v671_v61  ;;  %v5720_v62 = vld [vmem:[%s8696_s3 + $0x90] sm:$0xff] }
  0x1c   :  { %280 = vmatpush.bf16.msra.mxu2 %v6346_v26 }
  0x1d   :  { %360 = vmatpush.bf16.msra.mxu3 %v6351_v27  ;;  %v6472_v51 = vor.u32 %v390_v49, %v386_v48 }
  0x1e   :  { %141 = vmatpush.bf16.msra.mxu0 %v6358_v28 }
  0x1f   :  { %202 = vmatpush.bf16.msra.mxu1 %v6363_v29 }
  0x20   :  { %281 = vmatpush.bf16.msra.mxu2 %v6368_v30 }
  0x21   :  { %361 = vmatpush.bf16.msra.mxu3 %v6375_v31  ;;  %142 = vmatmul.bf16.vlgmr.msra.gmra.mxu0 %v6396_v37 }
  0x22   :  { %441 = vmatpush.bf16.msrb.mxu0 %v6386_v34  ;;  %203 = vmatmul.bf16.vlgmr.msra.gmra.mxu1 %v51_v40 }
  0x23   :  { %460 = vmatpush.bf16.msrb.mxu1 %v6192_v0  ;;  %282 = vmatmul.bf16.vlgmr.msra.gmra.mxu2 %v6398_v38 }
  0x24   :  { %473 = vmatpush.bf16.msrb.mxu2 %v6197_v1  ;;  %362 = vmatmul.bf16.vlgmr.msra.gmra.mxu3 %v6402_v39 }
  0x25   :  { %486 = vmatpush.bf16.msrb.mxu3 %v6202_v2 }
  0x26   :  { %442 = vmatpush.bf16.msrb.mxu0 %v6409_v41 }
  0x27   :  { %461 = vmatpush.bf16.msrb.mxu1 %v6214_v4 }
  0x28   :  { %474 = vmatpush.bf16.msrb.mxu2 %v6219_v5 }
  0x29   :  { %487 = vmatpush.bf16.msrb.mxu3 %v6226_v6 }
  0x2a   :  { %443 = vmatpush.bf16.msrb.mxu0 %v6421_v42 }
  0x2b   :  { %462 = vmatpush.bf16.msrb.mxu1 %v6238_v8 }
  0x2c   :  { %475 = vmatpush.bf16.msrb.mxu2 %v6243_v9 }
  0x2d   :  { %488 = vmatpush.bf16.msrb.mxu3 %v6250_v10 }
  0x2e   :  { %444 = vmatpush.bf16.msrb.mxu0 %v6430_v43 }
  0x2f   :  { %463 = vmatpush.bf16.msrb.mxu1 %v6262_v12 }
  0x30   :  { %476 = vmatpush.bf16.msrb.mxu2 %v6267_v13 }
  0x31   :  { %489 = vmatpush.bf16.msrb.mxu3 %v6274_v14 }
  0x32   :  { %445 = vmatpush.bf16.msrb.mxu0 %v6439_v44 }
  0x33   :  { %464 = vmatpush.bf16.msrb.mxu1 %v6286_v16 }
  0x34   :  { %477 = vmatpush.bf16.msrb.mxu2 %v6291_v17 }
  0x35   :  { %490 = vmatpush.bf16.msrb.mxu3 %v6298_v18 }
  0x36   :  { %446 = vmatpush.bf16.msrb.mxu0 %v6448_v45 }
  0x37   :  { %465 = vmatpush.bf16.msrb.mxu1 %v6310_v20 }
  0x38   :  { %478 = vmatpush.bf16.msrb.mxu2 %v6315_v21 }
  0x39   :  { %491 = vmatpush.bf16.msrb.mxu3 %v6322_v22 }
  0x3a   :  { %447 = vmatpush.bf16.msrb.mxu0 %v6457_v46 }
  0x3b   :  { %466 = vmatpush.bf16.msrb.mxu1 %v6334_v24 }
  0x3c   :  { %479 = vmatpush.bf16.msrb.mxu2 %v6339_v25 }
  0x3d   :  { %492 = vmatpush.bf16.msrb.mxu3 %v6346_v26 }
  0x3e   :  { %448 = vmatpush.bf16.msrb.mxu0 %v6466_v50 }
  0x3f   :  { %467 = vmatpush.bf16.msrb.mxu1 %v6358_v28 }
  0x40   :  { %480 = vmatpush.bf16.msrb.mxu2 %v6363_v29 }
  0x41   :  { %493 = vmatpush.bf16.msrb.mxu3 %v6368_v30  ;;  %449 = vmatmul.bf16.vlgmr.msrb.gmra.mxu0 %v6472_v51 }
  0x42   :  { %500 = vmatpush.bf16.msra.mxu0 %v6207_v3  ;;  %468 = vmatmul.bf16.vlgmr.msrb.gmra.mxu1 %v6398_v38 }
  0x43   :  { %522 = vmatpush.bf16.msra.mxu1 %v6386_v34  ;;  %481 = vmatmul.bf16.vlgmr.msrb.gmra.mxu2 %v6396_v37 }
  0x44   :  { %538 = vmatpush.bf16.msra.mxu2 %v6192_v0  ;;  %494 = vmatmul.bf16.vlgmr.msrb.gmra.mxu3 %v6402_v39 }
  0x45   :  { %551 = vmatpush.bf16.msra.mxu3 %v6197_v1 }
  0x46   :  { %501 = vmatpush.bf16.msra.mxu0 %v6231_v7 }
  0x47   :  { %523 = vmatpush.bf16.msra.mxu1 %v6409_v41 }
  0x48   :  { %539 = vmatpush.bf16.msra.mxu2 %v6214_v4 }
  0x49   :  { %552 = vmatpush.bf16.msra.mxu3 %v6219_v5 }
  0x4a   :  { %502 = vmatpush.bf16.msra.mxu0 %v6255_v11 }
  0x4b   :  { %524 = vmatpush.bf16.msra.mxu1 %v6421_v42 }
  0x4c   :  { %540 = vmatpush.bf16.msra.mxu2 %v6238_v8 }
  0x4d   :  { %553 = vmatpush.bf16.msra.mxu3 %v6243_v9 }
  0x4e   :  { %503 = vmatpush.bf16.msra.mxu0 %v6279_v15 }
  0x4f   :  { %525 = vmatpush.bf16.msra.mxu1 %v6430_v43 }
  0x50   :  { %541 = vmatpush.bf16.msra.mxu2 %v6262_v12 }
  0x51   :  { %554 = vmatpush.bf16.msra.mxu3 %v6267_v13 }
  0x52   :  { %504 = vmatpush.bf16.msra.mxu0 %v6303_v19 }
  0x53   :  { %526 = vmatpush.bf16.msra.mxu1 %v6439_v44 }
  0x54   :  { %542 = vmatpush.bf16.msra.mxu2 %v6286_v16 }
  0x55   :  { %555 = vmatpush.bf16.msra.mxu3 %v6291_v17 }
  0x56   :  { %505 = vmatpush.bf16.msra.mxu0 %v6327_v23 }
  0x57   :  { %527 = vmatpush.bf16.msra.mxu1 %v6448_v45 }
  0x58   :  { %543 = vmatpush.bf16.msra.mxu2 %v6310_v20 }
  0x59   :  { %556 = vmatpush.bf16.msra.mxu3 %v6315_v21 }
  0x5a   :  { %506 = vmatpush.bf16.msra.mxu0 %v6351_v27 }
  0x5b   :  { %528 = vmatpush.bf16.msra.mxu1 %v6457_v46 }
  0x5c   :  { %544 = vmatpush.bf16.msra.mxu2 %v6334_v24 }
  0x5d   :  { %557 = vmatpush.bf16.msra.mxu3 %v6339_v25 }
  0x5e   :  { %507 = vmatpush.bf16.msra.mxu0 %v6375_v31 }
  0x5f   :  { %529 = vmatpush.bf16.msra.mxu1 %v6466_v50 }
  0x60   :  { %545 = vmatpush.bf16.msra.mxu2 %v6358_v28 }
  0x61   :  { %558 = vmatpush.bf16.msra.mxu3 %v6363_v29  ;;  %508 = vmatmul.bf16.vlgmr.msra.gmra.mxu0 %v6472_v51 }
  0x62   :  { %564 = vmatpush.bf16.msrb.mxu0 %v6202_v2  ;;  %530 = vmatmul.bf16.vlgmr.msra.gmra.mxu1 %v6512_v55 }
  0x63   :  { %578 = vmatpush.bf16.msrb.mxu1 %v6207_v3  ;;  %546 = vmatmul.bf16.vlgmr.msra.gmra.mxu2 %v6402_v39 }
  0x64   :  { %600 = vmatpush.bf16.msrb.mxu2 %v6386_v34  ;;  %559 = vmatmul.bf16.vlgmr.msra.gmra.mxu3 %v6398_v38 }
  0x65   :  { %616 = vmatpush.bf16.msrb.mxu3 %v6192_v0 }
  0x66   :  { %565 = vmatpush.bf16.msrb.mxu0 %v6226_v6 }
  0x67   :  { %579 = vmatpush.bf16.msrb.mxu1 %v6231_v7 }
  0x68   :  { %601 = vmatpush.bf16.msrb.mxu2 %v6409_v41 }
  0x69   :  { %617 = vmatpush.bf16.msrb.mxu3 %v6214_v4 }
  0x6a   :  { %566 = vmatpush.bf16.msrb.mxu0 %v6250_v10 }
  0x6b   :  { %580 = vmatpush.bf16.msrb.mxu1 %v6255_v11 }
  0x6c   :  { %602 = vmatpush.bf16.msrb.mxu2 %v6421_v42 }
  0x6d   :  { %618 = vmatpush.bf16.msrb.mxu3 %v6238_v8  ;;  %v5715_v8 = vld [vmem:[%s8696_s3 + $0x68] sm:$0xff] }
  0x6e   :  { %567 = vmatpush.bf16.msrb.mxu0 %v6274_v14 }
  0x6f   :  { %581 = vmatpush.bf16.msrb.mxu1 %v6279_v15 }
  0x70   :  { %603 = vmatpush.bf16.msrb.mxu2 %v6430_v43 }
  0x71   :  { %619 = vmatpush.bf16.msrb.mxu3 %v6262_v12  ;;  %v5713_v12 = vld [vmem:[%s8696_s3 + $0x58] sm:$0xff] }
  0x72   :  { %568 = vmatpush.bf16.msrb.mxu0 %v6298_v18 }
  0x73   :  { %582 = vmatpush.bf16.msrb.mxu1 %v6303_v19 }
  0x74   :  { %604 = vmatpush.bf16.msrb.mxu2 %v6439_v44 }
  0x75   :  { %620 = vmatpush.bf16.msrb.mxu3 %v6286_v16 }
  0x76   :  { %569 = vmatpush.bf16.msrb.mxu0 %v6322_v22 }
  0x77   :  { %583 = vmatpush.bf16.msrb.mxu1 %v6327_v23 }
  0x78   :  { %605 = vmatpush.bf16.msrb.mxu2 %v6448_v45 }
  0x79   :  { %621 = vmatpush.bf16.msrb.mxu3 %v6310_v20 }
  0x7a   :  { %570 = vmatpush.bf16.msrb.mxu0 %v6346_v26 }
  0x7b   :  { %584 = vmatpush.bf16.msrb.mxu1 %v6351_v27 }
  0x7c   :  { %606 = vmatpush.bf16.msrb.mxu2 %v6457_v46 }
  0x7d   :  { %622 = vmatpush.bf16.msrb.mxu3 %v6334_v24  ;;  %v5708_v24 = vld [vmem:[%s8696_s3 + $0x30] sm:$0xff] }
  0x7e   :  { %571 = vmatpush.bf16.msrb.mxu0 %v6368_v30 }
  0x7f   :  { %585 = vmatpush.bf16.msrb.mxu1 %v6375_v31 }
  0x80   :  { %607 = vmatpush.bf16.msrb.mxu2 %v6466_v50 }
  0x81   :  { %623 = vmatpush.bf16.msrb.mxu3 %v6358_v28  ;;  %572 = vmatmul.bf16.vlgmr.msrb.gmra.mxu0 %v6472_v51 }
  0x82   :  { %629 = vmatpush.bf16.msra.mxu0 %v6197_v1  ;;  %586 = vmatmul.bf16.vlgmr.msrb.gmra.mxu1 %v6512_v55 }
  0x83   :  { %642 = vmatpush.bf16.msra.mxu1 %v6202_v2  ;;  %608 = vmatmul.bf16.vlgmr.msrb.gmra.mxu2 %v598_v59  ;;  %v5717_v2 = vld [vmem:[%s8696_s3 + $0x78] sm:$0xff] }
  0x84   :  { %656 = vmatpush.bf16.msra.mxu2 %v6207_v3  ;;  %624 = vmatmul.bf16.vlgmr.msrb.gmra.mxu3 %v6472_v51  ;;  %v5716_v3 = vld [vmem:[%s8696_s3 + $0x70] sm:$0xff] }
  0x85   :  { %678 = vmatpush.bf16.msra.mxu3 %v6386_v34 }
  0x86   :  { %630 = vmatpush.bf16.msra.mxu0 %v6219_v5 }
  0x87   :  { %643 = vmatpush.bf16.msra.mxu1 %v6226_v6 }
  0x88   :  { %657 = vmatpush.bf16.msra.mxu2 %v6231_v7 }
  0x89   :  { %679 = vmatpush.bf16.msra.mxu3 %v6409_v41 }
  0x8a   :  { %631 = vmatpush.bf16.msra.mxu0 %v6243_v9  ;;  %v5714_v9 = vld [vmem:[%s8696_s3 + $0x60] sm:$0xff] }
  0x8b   :  { %644 = vmatpush.bf16.msra.mxu1 %v6250_v10 }
  0x8c   :  { %658 = vmatpush.bf16.msra.mxu2 %v6255_v11 }
  0x8d   :  { %680 = vmatpush.bf16.msra.mxu3 %v6421_v42  ;;  %v5702_v42 = vld [vmem:[%s8696_s3] sm:$0xff] }
  0x8e   :  { %632 = vmatpush.bf16.msra.mxu0 %v6267_v13  ;;  %v5712_v13 = vld [vmem:[%s8696_s3 + $0x50] sm:$0xff] }
  0x8f   :  { %645 = vmatpush.bf16.msra.mxu1 %v6274_v14  ;;  %v5711_v14 = vld [vmem:[%s8696_s3 + $0x48] sm:$0xff] }
  0x90   :  { %659 = vmatpush.bf16.msra.mxu2 %v6279_v15 }
  0x91   :  { %681 = vmatpush.bf16.msra.mxu3 %v6430_v43 }
  0x92   :  { %633 = vmatpush.bf16.msra.mxu0 %v6291_v17  ;;  %v6126_v17 = vmov 0.0  }
  0x93   :  { %646 = vmatpush.bf16.msra.mxu1 %v6298_v18  ;;  %42 = vst [vmem:[#allocation2] sm:$0xff] %v6126_v17  ;;  %v5710_v18 = vld [vmem:[%s8696_s3 + $0x40] sm:$0xff] }
  0x94   :  { %660 = vmatpush.bf16.msra.mxu2 %v6303_v19  ;;  %43 = vst [vmem:[#allocation2 + $0x8] sm:$0x3f] %v6126_v17  ;;  %v5709_v19 = vld [vmem:[%s8696_s3 + $0x38] sm:$0xff] }
  0x95   :  { %682 = vmatpush.bf16.msra.mxu3 %v6439_v44  ;;  %v5724_v44 = vld [vmem:[%s8696_s3 + $0xb0] sm:$0xff] }
  0x96   :  { %634 = vmatpush.bf16.msra.mxu0 %v6315_v21 }
  0x97   :  { %647 = vmatpush.bf16.msra.mxu1 %v6322_v22 }
  0x98   :  { %661 = vmatpush.bf16.msra.mxu2 %v6327_v23 }
  0x99   :  { %683 = vmatpush.bf16.msra.mxu3 %v6448_v45 }
  0x9a   :  { %635 = vmatpush.bf16.msra.mxu0 %v6339_v25  ;;  %v5707_v25 = vld [vmem:[%s8696_s3 + $0x28] sm:$0xff] }
  0x9b   :  { %648 = vmatpush.bf16.msra.mxu1 %v6346_v26  ;;  %v5706_v26 = vld [vmem:[%s8696_s3 + $0x20] sm:$0xff] }
  0x9c   :  { %662 = vmatpush.bf16.msra.mxu2 %v6351_v27 }
  0x9d   :  { %684 = vmatpush.bf16.msra.mxu3 %v6457_v46 }
  0x9e   :  { %636 = vmatpush.bf16.msra.mxu0 %v6363_v29  ;;  %v143_v0 = vpop.f32.mrf.mxu0 }
  0x9f   :  { %649 = vmatpush.bf16.msra.mxu1 %v6368_v30  ;;  %v204_v1 = vpop.f32.mrf.mxu1  ;;  %v5705_v30 = vld [vmem:[%s8696_s3 + $0x18] sm:$0xff] }
  0xa0   :  { %663 = vmatpush.bf16.msra.mxu2 %v6375_v31  ;;  %v205_v29 = vadd.f32 %v204_v1, %v143_v0  ;;  %v5725_v31 = vld [vmem:[%s8696_s3 + $0xb8] sm:$0xff]  ;;  %v5718_v0 = vld [vmem:[%s8696_s3 + $0x80] sm:$0xff] }
  0xa1   :  { %685 = vmatpush.bf16.msra.mxu3 %v6466_v50  ;;  %637 = vmatmul.bf16.vlgmr.msra.gmra.mxu0 %v6402_v39  ;;  %v6644_v39 = vld [vmem:[%s8695_s2] ss:$0 sm:$0xff]  ;;  %s4334_s2 = sshll.u32 %s6128_s28, 4  ;;  %s4335_s2 = int_to_ptr.vmem [resolvable:$true] %s4334_s2 }
  0xa2   :  { %650 = vmatmul.bf16.vlgmr.msra.gmra.mxu1 %v6512_v55  ;;  %783 = vmatpush.bf16.msrb.mxu0 %v5717_v2  ;;  %v5723_v55 = vld [vmem:[%s8696_s3 + $0xa8] sm:$0xff] }
  0xa3   :  { %664 = vmatmul.bf16.vlgmr.msra.gmra.mxu2 %v598_v59  ;;  %844 = vmatpush.bf16.msrb.mxu1 %v5709_v19  ;;  %v5721_v59 = vld [vmem:[%s8696_s3 + $0x98] sm:$0xff] }
  0xa4   :  { %686 = vmatmul.bf16.vlgmr.msra.gmra.mxu3 %v676_v63  ;;  %930 = vmatpush.bf16.msrb.mxu2 %v5725_v31  ;;  %v5719_v63 = vld [vmem:[%s8696_s3 + $0x88] sm:$0xff] }
  0xa5   :  { %949 = vmatpush.bf16.msrb.mxu3 %v5717_v2  ;;  %v6682_v2 = vld [vmem:[%s8694_s1 + $0x78] sm:$0xff] }
  0xa6   :  { %v283_v4 = vpop.f32.mrf.mxu2  ;;  %v145_v6 = vpop.f32.mrf.mxu0  ;;  %784 = vmatpush.bf16.msrb.mxu0 %v5716_v3 }
  0xa7   :  { %v363_v5 = vpop.f32.mrf.mxu3  ;;  %v206_v7 = vpop.f32.mrf.mxu1  ;;  %845 = vmatpush.bf16.msrb.mxu1 %v5708_v24  ;;  %v287_v32 = vadd.f32 %v283_v4, %v205_v29  ;;  %v6688_v4 = vld [vmem:[%s8694_s1 + $0x38] sm:$0xff] }
  0xa8   :  { %931 = vmatpush.bf16.msrb.mxu2 %v5724_v44  ;;  %v6700_v7 = vld [vmem:[%s8694_s1 + $0x30] sm:$0xff] }
  0xa9   :  { %950 = vmatpush.bf16.msrb.mxu3 %v5716_v3  ;;  %v367_v35 = vadd.f32 %v363_v5, %v287_v32  ;;  %v6694_v5 = vld [vmem:[%s8694_s1 + $0x70] sm:$0xff]  ;;  %v6799_v32 = vld [vmem:[%s8694_s1 + $0x40] sm:$0xff] }
  0xaa   :  { %785 = vmatpush.bf16.msrb.mxu0 %v5715_v8 }
  0xab   :  { %846 = vmatpush.bf16.msrb.mxu1 %v5707_v25 }
  0xac   :  { %932 = vmatpush.bf16.msrb.mxu2 %v5723_v55 }
  0xad   :  { %951 = vmatpush.bf16.msrb.mxu3 %v5715_v8 }
  0xae   :  { %v285_v10 = vpop.f32.mrf.mxu2  ;;  %786 = vmatpush.bf16.msrb.mxu0 %v5714_v9 }
  0xaf   :  { %v365_v11 = vpop.f32.mrf.mxu3  ;;  %847 = vmatpush.bf16.msrb.mxu1 %v5706_v26  ;;  %v6707_v10 = vld [vmem:[%s8694_s1 + $0x68] sm:$0xff] }
  0xb0   :  { %933 = vmatpush.bf16.msrb.mxu2 %v5722_v56 }
  0xb1   :  { %952 = vmatpush.bf16.msrb.mxu3 %v5714_v9 }
  0xb2   :  { %787 = vmatpush.bf16.msrb.mxu0 %v5713_v12 }
  0xb3   :  { %848 = vmatpush.bf16.msrb.mxu1 %v5705_v30 }
  0xb4   :  { %934 = vmatpush.bf16.msrb.mxu2 %v5721_v59 }
  0xb5   :  { %953 = vmatpush.bf16.msrb.mxu3 %v5713_v12  ;;  %v6713_v12 = vld [vmem:[%s8694_s1 + $0x28] sm:$0xff] }
  0xb6   :  { %788 = vmatpush.bf16.msrb.mxu0 %v5712_v13 }
  0xb7   :  { %849 = vmatpush.bf16.msrb.mxu1 %v5704_v33 }
  0xb8   :  { %935 = vmatpush.bf16.msrb.mxu2 %v5720_v62 }
  0xb9   :  { %954 = vmatpush.bf16.msrb.mxu3 %v5712_v13  ;;  %v6718_v13 = vld [vmem:[%s8694_s1 + $0xb8] sm:$0xff] }
  0xba   :  { %789 = vmatpush.bf16.msrb.mxu0 %v5711_v14 }
  0xbb   :  { %850 = vmatpush.bf16.msrb.mxu1 %v5703_v36 }
  0xbc   :  { %936 = vmatpush.bf16.msrb.mxu2 %v5719_v63 }
  0xbd   :  { %955 = vmatpush.bf16.msrb.mxu3 %v5711_v14  ;;  %v6724_v14 = vld [vmem:[%s8694_s1 + $0x60] sm:$0xff] }
  0xbe   :  { %v450_v15 = vpop.f32.mrf.mxu0  ;;  %790 = vmatpush.bf16.msrb.mxu0 %v5710_v18 }
  0xbf   :  { %v469_v16 = vpop.f32.mrf.mxu1  ;;  %v454_v38 = vadd.f32 %v450_v15, %v367_v35  ;;  %851 = vmatpush.bf16.msrb.mxu1 %v5702_v42  ;;  %v6805_v35 = vld [vmem:[%s8694_s1] sm:$0xff] }
  0xc0   :  { %937 = vmatpush.bf16.msrb.mxu2 %v5718_v0 }
  0xc1   :  { %956 = vmatpush.bf16.msrb.mxu3 %v5710_v18  ;;  %v458_v45 = vadd.f32 %v6644_v39, %v454_v38  ;;  %v6736_v18 = vld [vmem:[%s8694_s1 + $0xb0] sm:$0xff] }
  0xc2   :  { %962 = vmatpush.bf16.msra.mxu0 %v5709_v19  ;;  %v6741_v19 = vld [vmem:[%s8694_s1 + $0x58] sm:$0xff] }
  0xc3   :  { %983 = vmatpush.bf16.msra.mxu1 %v5725_v31  ;;  %v459_v48 = vmax.f32 %v458_v45, 0.0 }
  0xc4   :  { %1095 = vmatpush.bf16.msra.mxu2 %v6682_v2 }
  0xc5   :  { %1156 = vmatpush.bf16.msra.mxu3 %v6688_v4 }
  0xc6   :  { %v482_v20 = vpop.f32.mrf.mxu2  ;;  %v452_v22 = vpop.f32.mrf.mxu0  ;;  %963 = vmatpush.bf16.msra.mxu0 %v5708_v24 }
  0xc7   :  { %v495_v21 = vpop.f32.mrf.mxu3  ;;  %v471_v23 = vpop.f32.mrf.mxu1  ;;  %v483_v34 = vadd.f32 %v482_v20, %v469_v16  ;;  %984 = vmatpush.bf16.msra.mxu1 %v5724_v44  ;;  %v6731_v16 = vld [vmem:[%s8694_s1 + $0x20] sm:$0xff]  ;;  %v6747_v20 = vld [vmem:[%s8694_s1 + $0x18] sm:$0xff]  ;;  %v6759_v22 = vld [vmem:[%s8694_s1 + $0x50] sm:$0xff] }
  0xc8   :  { %1096 = vmatpush.bf16.msra.mxu2 %v6694_v5  ;;  %v6765_v23 = vld [vmem:[%s8694_s1 + $0x10] sm:$0xff] }
  0xc9   :  { %v499_v37 = vadd.f32 %v495_v21, %v483_v34  ;;  %1157 = vmatpush.bf16.msra.mxu3 %v6700_v7  ;;  %v6753_v21 = vld [vmem:[%s8694_s1 + $0xa8] sm:$0xff] }
  0xca   :  { %964 = vmatpush.bf16.msra.mxu0 %v5707_v25  ;;  %v6774_v25 = vld [vmem:[%s8694_s1 + $0xa0] sm:$0xff] }
  0xcb   :  { %985 = vmatpush.bf16.msra.mxu1 %v5723_v55 }
  0xcc   :  { %1097 = vmatpush.bf16.msra.mxu2 %v6707_v10 }
  0xcd   :  { %1158 = vmatpush.bf16.msra.mxu3 %v6713_v12 }
  0xce   :  { %v484_v27 = vpop.f32.mrf.mxu2  ;;  %965 = vmatpush.bf16.msra.mxu0 %v5706_v26  ;;  %v6781_v26 = vld [vmem:[%s8694_s1 + $0x48] sm:$0xff] }
  0xcf   :  { %v497_v28 = vpop.f32.mrf.mxu3  ;;  %986 = vmatpush.bf16.msra.mxu1 %v5722_v56  ;;  %v6786_v27 = vld [vmem:[%s8694_s1 + $0x8] sm:$0xff]  ;;  %v6834_v56 = vld [vmem:[%s8694_s1 + $0xf8] sm:$0xff] }
  0xd0   :  { %1098 = vmatpush.bf16.msra.mxu2 %v6724_v14  ;;  %v6791_v28 = vld [vmem:[%s8694_s1 + $0x98] sm:$0xff] }
  0xd1   :  { %1159 = vmatpush.bf16.msra.mxu3 %v6731_v16 }
  0xd2   :  { %966 = vmatpush.bf16.msra.mxu0 %v5705_v30 }
  0xd3   :  { %987 = vmatpush.bf16.msra.mxu1 %v5721_v59  ;;  %v6841_v59 = vld [vmem:[%s8694_s1 + $0xf0] sm:$0xff] }
  0xd4   :  { %1099 = vmatpush.bf16.msra.mxu2 %v6741_v19 }
  0xd5   :  { %1160 = vmatpush.bf16.msra.mxu3 %v6747_v20 }
  0xd6   :  { %967 = vmatpush.bf16.msra.mxu0 %v5704_v33 }
  0xd7   :  { %988 = vmatpush.bf16.msra.mxu1 %v5720_v62 }
  0xd8   :  { %1100 = vmatpush.bf16.msra.mxu2 %v6759_v22 }
  0xd9   :  { %1161 = vmatpush.bf16.msra.mxu3 %v6765_v23 }
  0xda   :  { %968 = vmatpush.bf16.msra.mxu0 %v5703_v36  ;;  %v6810_v36 = vld [vmem:[%s8694_s1 + $0x90] sm:$0xff] }
  0xdb   :  { %989 = vmatpush.bf16.msra.mxu1 %v5719_v63  ;;  %v6847_v63 = vld [vmem:[%s8694_s1 + $0x138] sm:$0xff] }
  0xdc   :  { %1101 = vmatpush.bf16.msra.mxu2 %v6781_v26 }
  0xdd   :  { %1162 = vmatpush.bf16.msra.mxu3 %v6786_v27 }
  0xde   :  { %v509_v40 = vpop.f32.mrf.mxu0  ;;  %969 = vmatpush.bf16.msra.mxu0 %v5702_v42  ;;  %v6817_v42 = vld [vmem:[%s8694_s1 + $0x88] sm:$0xff] }
  0xdf   :  { %v531_v41 = vpop.f32.mrf.mxu1  ;;  %v513_v43 = vadd.f32 %v509_v40, %v499_v37  ;;  %990 = vmatpush.bf16.msra.mxu1 %v5718_v0 }
  0xe0   :  { %1102 = vmatpush.bf16.msra.mxu2 %v6799_v32 }
  0xe1   :  { %v535_v46 = vadd.f32 %v531_v41, %v513_v43  ;;  %1163 = vmatpush.bf16.msra.mxu3 %v6805_v35 }
  0xe3   :  { %v536_v47 = vadd.f32 %v6644_v39, %v535_v46 }
  0xe5   :  { %v537_v49 = vmax.f32 %v536_v47, 0.0 }
  0xe6   :  { %v6654_v50 = vpop.f32.mrf.mxu2  ;;  %v511_v52 = vpop.f32.mrf.mxu0 }
  0xe7   :  { %v6656_v51 = vpop.f32.mrf.mxu3  ;;  %v533_v53 = vpop.f32.mrf.mxu1  ;;  %v694_v54 = vmax.f32 %v459_v48, %v537_v49  ;;  %v6824_v48 = vld [vmem:[%s8694_s1 + $0x80] sm:$0xff] }
  0xe8   :  { %v561_v24 = vadd.f32 %v6656_v51, %v6654_v50 }
  0xe9   :  { %697 = vst [vmem:[#allocation2 + $0x7] sm:$0x3f] %v694_v54 }
  0xee   :  { %v549_v57 = vpop.f32.mrf.mxu2 }
  0xef   :  { %v562_v58 = vpop.f32.mrf.mxu3 }
  0xf0   :  { %v699_v60 = vld [vmem:[#allocation2 + $0x7] sm:$0x7f] }
  0xf1   :  { %v6667_v61 = vpack.c.bf16 %v699_v60, %v699_v60 }
  0xf3   :  { %791 = vmatmul.bf16.vlgmr.msrb.gmra.mxu0 %v6667_v61 }
  0xf4   :  { %1234 = vmatpush.bf16.msrb.mxu0 %v6718_v13 }
  0xf8   :  { %1235 = vmatpush.bf16.msrb.mxu0 %v6736_v18 }
  0xfc   :  { %1236 = vmatpush.bf16.msrb.mxu0 %v6753_v21 }
  0xfe   :  { %v573_v1 = vpop.f32.mrf.mxu0 }
  0xff   :  { %v587_v3 = vpop.f32.mrf.mxu1  ;;  %v577_v29 = vadd.f32 %v573_v1, %v561_v24  ;;  %v6853_v1 = vld [vmem:[%s8694_s1 + $0xe8] sm:$0xff]  ;;  %v6886_v24 = vld [vmem:[%s8694_s1 + $0xd8] sm:$0xff] }
 0x100   :  { %1237 = vmatpush.bf16.msrb.mxu0 %v6774_v25 }
 0x101   :  { %v591_v33 = vadd.f32 %v587_v3, %v577_v29  ;;  %v978_v3 = vshll.u32 %v6667_v61, 16 }
 0x103   :  { %970 = vmatmul.bf16.vlgmr.msra.gmra.mxu0 %v6667_v61 }
 0x104   :  { %1238 = vmatpush.bf16.msrb.mxu0 %v6791_v28 }
 0x106   :  { %v609_v6 = vpop.f32.mrf.mxu2  ;;  %v575_v9 = vpop.f32.mrf.mxu0 }
 0x107   :  { %v625_v8 = vpop.f32.mrf.mxu3  ;;  %v589_v11 = vpop.f32.mrf.mxu1  ;;  %v613_v37 = vadd.f32 %v609_v6, %v591_v33  ;;  %v6861_v6 = vld [vmem:[%s8694_s1 + $0x130] sm:$0xff]  ;;  %v980_v9 = vrot.slane %v978_v3, 1  ;;  %v4700_v33 = vld [vmem:[%s8693_s0 + $0x20] sm:$0x7f] }
 0x108   :  { %1239 = vmatpush.bf16.msrb.mxu0 %v6810_v36  ;;  %v6875_v11 = vld [vmem:[%s8694_s1 + $0x128] sm:$0xff] }
 0x109   :  { %v614_v46 = vadd.f32 %v6644_v39, %v613_v37 }
 0x10b   :  { %v615_v50 = vmax.f32 %v614_v46, 0.0 }
 0x10c   :  { %1240 = vmatpush.bf16.msrb.mxu0 %v6817_v42 }
 0x10e   :  { %v611_v15 = vpop.f32.mrf.mxu2 }
 0x10f   :  { %v627_v17 = vpop.f32.mrf.mxu3  ;;  %v976_v15 = vshrl.u32 %v6667_v61, 16  ;;  %v6895_v61 = vld [vmem:[%s8694_s1 + $0x120] sm:$0xff] }
 0x110   :  { %1241 = vmatpush.bf16.msrb.mxu0 %v6824_v48  ;;  %v4702_v17 = vld [vmem:[%s8693_s0 + $0x30] sm:$0x7f] }
 0x111   :  { %v6888_v29 = vpack.c.bf16 %v4702_v17, %v4702_v17 }
 0x113   :  { %1242 = vmatmul.bf16.vlgmr.msrb.gmra.mxu0 %v6888_v29  ;;  %v1550_v3 = vshll.u32 %v6888_v29, 16 }
 0x114   :  { %1428 = vmatpush.bf16.msra.mxu0 %v6688_v4 }
 0x115   :  { %v1552_v17 = vrot.slane %v1550_v3, 1  ;;  %v5767_v3 = vld [vmem:[%s8696_s3 + $0x8] sm:$0xff] }
 0x118   :  { %1429 = vmatpush.bf16.msra.mxu0 %v6700_v7 }
 0x11c   :  { %1430 = vmatpush.bf16.msra.mxu0 %v6713_v12 }
 0x11e   :  { %v638_v30 = vpop.f32.mrf.mxu0 }
 0x11f   :  { %v651_v31 = vpop.f32.mrf.mxu1  ;;  %v639_v34 = vadd.f32 %v638_v30, %v625_v8  ;;  %v6868_v8 = vld [vmem:[%s8694_s1 + $0xe0] sm:$0xff]  ;;  %v981_v30 = vor.u32 %v980_v9, %v976_v15  ;;  %v1548_v15 = vshrl.u32 %v6888_v29, 16 }
 0x120   :  { %1431 = vmatpush.bf16.msra.mxu0 %v6731_v16 }
 0x121   :  { %v655_v38 = vadd.f32 %v651_v31, %v639_v34  ;;  %v4701_v31 = vld [vmem:[%s8693_s0 + $0x28] sm:$0x7f]  ;;  %v6908_v34 = vld [vmem:[%s8694_s1 + $0xd0] sm:$0xff] }
 0x122   :  { %v6911_v37 = vpack.c.bf16 %v4701_v31, %v4701_v31 }
 0x124   :  { %1432 = vmatpush.bf16.msra.mxu0 %v6747_v20 }
 0x126   :  { %v665_v40 = vpop.f32.mrf.mxu2  ;;  %v640_v44 = vpop.f32.mrf.mxu0 }
 0x127   :  { %v687_v41 = vpop.f32.mrf.mxu3  ;;  %v669_v43 = vadd.f32 %v665_v40, %v655_v38  ;;  %v653_v45 = vpop.f32.mrf.mxu1  ;;  %v1013_v38 = vpack.c.bf16 %v4700_v33, %v4700_v33  ;;  %v6919_v40 = vld [vmem:[%s8694_s1 + $0x118] sm:$0xff]  ;;  %v6940_v44 = vld [vmem:[%s8694_s1 + $0xc0] sm:$0xff] }
 0x128   :  { %1433 = vmatpush.bf16.msra.mxu0 %v6765_v23  ;;  %v4703_v45 = vld [vmem:[%s8693_s0 + $0x38] sm:$0x7f] }
 0x129   :  { %v691_v47 = vadd.f32 %v687_v41, %v669_v43  ;;  %v6925_v41 = vld [vmem:[%s8694_s1 + $0xc8] sm:$0xff]  ;;  %v6933_v43 = vld [vmem:[%s8694_s1 + $0x110] sm:$0xff]  ;;  %v1346_v46 = vshll.u32 %v1013_v38, 16 }
 0x12b   :  { %v692_v49 = vadd.f32 %v6644_v39, %v691_v47  ;;  %v6950_v47 = vld [vmem:[%s8694_s1 + $0x108] sm:$0xff] }
 0x12c   :  { %1434 = vmatpush.bf16.msra.mxu0 %v6786_v27 }
 0x12d   :  { %v693_v51 = vmax.f32 %v692_v49, 0.0  ;;  %v6952_v49 = vpack.c.bf16 %v4703_v45, %v4703_v45 }
 0x12e   :  { %v667_v52 = vpop.f32.mrf.mxu2 }
 0x12f   :  { %v689_v53 = vpop.f32.mrf.mxu3  ;;  %v695_v54 = vmax.f32 %v615_v50, %v693_v51  ;;  %v1344_v50 = vshrl.u32 %v1013_v38, 16  ;;  %v1348_v51 = vrot.slane %v1346_v46, 1  ;;  %v6962_v52 = vld [vmem:[%s8694_s1 + $0x100] sm:$0xff]  ;;  %v5772_v46 = vld [vmem:[%s8696_s3 + $0x30] sm:$0xff] }
 0x130   :  { %1435 = vmatpush.bf16.msra.mxu0 %v6805_v35 }
 0x131   :  { %696 = vst [vmem:[#allocation2 + $0x1] sm:$0x1f] %v695_v54  ;;  %v6968_v53 = vor.u32 %v1348_v51, %v1344_v50  ;;  %v1472_v54 = vshll.u32 %v6911_v37, 16  ;;  %v5770_v50 = vld [vmem:[%s8696_s3 + $0x20] sm:$0xff] }
 0x133   :  { %1436 = vmatmul.bf16.vlgmr.msra.gmra.mxu0 %v6911_v37 }
 0x134   :  { %1493 = vmatpush.bf16.msrb.mxu0 %v6682_v2 }
 0x138   :  { %v698_v55 = vld [vmem:[#allocation2] sm:$0x7f]  ;;  %1494 = vmatpush.bf16.msrb.mxu0 %v6694_v5 }
 0x139   :  { %v700_v57 = vpack.c.bf16 %v698_v55, %v698_v55 }
 0x13b   :  { %852 = vmatmul.bf16.vlgmr.msrb.gmra.mxu1 %v700_v57  ;;  %v877_v58 = vshll.u32 %v700_v57, 16  ;;  %v875_v60 = vshrl.u32 %v700_v57, 16  ;;  %v1470_v57 = vshrl.u32 %v6911_v37, 16 }
 0x13c   :  { %1313 = vmatpush.bf16.msrb.mxu1 %v6834_v56  ;;  %1495 = vmatpush.bf16.msrb.mxu0 %v6707_v10 }
 0x13d   :  { %v879_v62 = vrot.slane %v877_v58, 1  ;;  %v1474_v58 = vrot.slane %v1472_v54, 1 }
 0x13f   :  { %v880_v0 = vor.u32 %v879_v62, %v875_v60  ;;  %v7012_v60 = vor.u32 %v1474_v58, %v1470_v57  ;;  %v5768_v58 = vld [vmem:[%s8696_s3 + $0x10] sm:$0xff] }
 0x140   :  { %1314 = vmatpush.bf16.msrb.mxu1 %v6841_v59  ;;  %1496 = vmatpush.bf16.msrb.mxu0 %v6724_v14 }
 0x141   :  { %938 = vmatmul.bf16.vlgmr.msrb.gmra.mxu2 %v880_v0  ;;  %957 = vmatmul.bf16.vlgmr.msrb.gmra.mxu3 %v880_v0 }
 0x142   :  { %1399 = vmatpush.bf16.msrb.mxu2 %v6847_v63  ;;  %1415 = vmatpush.bf16.msrb.mxu3 %v6682_v2 }
 0x144   :  { %1315 = vmatpush.bf16.msrb.mxu1 %v6853_v1  ;;  %1497 = vmatpush.bf16.msrb.mxu0 %v6741_v19 }
 0x146   :  { %1400 = vmatpush.bf16.msrb.mxu2 %v6861_v6  ;;  %1416 = vmatpush.bf16.msrb.mxu3 %v6694_v5 }
 0x148   :  { %1316 = vmatpush.bf16.msrb.mxu1 %v6868_v8  ;;  %1498 = vmatpush.bf16.msrb.mxu0 %v6759_v22 }
 0x14a   :  { %1401 = vmatpush.bf16.msrb.mxu2 %v6875_v11  ;;  %1417 = vmatpush.bf16.msrb.mxu3 %v6707_v10 }
 0x14b   :  { %991 = vmatmul.bf16.vlgmr.msra.gmra.mxu1 %v981_v30  ;;  %v1553_v30 = vor.u32 %v1552_v17, %v1548_v15 }
 0x14c   :  { %1317 = vmatpush.bf16.msrb.mxu1 %v6886_v24  ;;  %1499 = vmatpush.bf16.msrb.mxu0 %v6781_v26 }
 0x14e   :  { %1402 = vmatpush.bf16.msrb.mxu2 %v6895_v61  ;;  %1418 = vmatpush.bf16.msrb.mxu3 %v6724_v14 }
 0x150   :  { %1318 = vmatpush.bf16.msrb.mxu1 %v6908_v34  ;;  %1500 = vmatpush.bf16.msrb.mxu0 %v6799_v32 }
 0x151   :  { %1103 = vmatmul.bf16.vlgmr.msra.gmra.mxu2 %v6911_v37  ;;  %1164 = vmatmul.bf16.vlgmr.msra.gmra.mxu3 %v1013_v38  ;;  %v5775_v38 = vld [vmem:[%s8696_s3 + $0x48] sm:$0xff] }
 0x152   :  { %1403 = vmatpush.bf16.msrb.mxu2 %v6919_v40  ;;  %1419 = vmatpush.bf16.msrb.mxu3 %v6741_v19 }
 0x153   :  { %1501 = vmatmul.bf16.vlgmr.msrb.gmra.mxu0 %v6952_v49 }
 0x154   :  { %1319 = vmatpush.bf16.msrb.mxu1 %v6925_v41  ;;  %1555 = vmatpush.bf16.msra.mxu0 %v6847_v63 }
 0x156   :  { %1404 = vmatpush.bf16.msrb.mxu2 %v6933_v43  ;;  %1420 = vmatpush.bf16.msrb.mxu3 %v6759_v22 }
 0x158   :  { %1320 = vmatpush.bf16.msrb.mxu1 %v6940_v44  ;;  %1556 = vmatpush.bf16.msra.mxu0 %v6861_v6 }
 0x15a   :  { %1405 = vmatpush.bf16.msrb.mxu2 %v6950_v47  ;;  %1421 = vmatpush.bf16.msrb.mxu3 %v6781_v26 }
 0x15b   :  { %1321 = vmatmul.bf16.vlgmr.msrb.gmra.mxu1 %v6952_v49 }
 0x15c   :  { %1441 = vmatpush.bf16.msra.mxu1 %v6718_v13  ;;  %1557 = vmatpush.bf16.msra.mxu0 %v6875_v11 }
 0x15e   :  { %1406 = vmatpush.bf16.msrb.mxu2 %v6962_v52  ;;  %1422 = vmatpush.bf16.msrb.mxu3 %v6799_v32 }
 0x160   :  { %1442 = vmatpush.bf16.msra.mxu1 %v6736_v18  ;;  %1558 = vmatpush.bf16.msra.mxu0 %v6895_v61 }
 0x161   :  { %1407 = vmatmul.bf16.vlgmr.msrb.gmra.mxu2 %v6968_v53  ;;  %1423 = vmatmul.bf16.vlgmr.msrb.gmra.mxu3 %v6888_v29 }
 0x162   :  { %1455 = vmatpush.bf16.msra.mxu2 %v6834_v56  ;;  %1477 = vmatpush.bf16.msra.mxu3 %v6847_v63 }
 0x164   :  { %1443 = vmatpush.bf16.msra.mxu1 %v6753_v21  ;;  %1559 = vmatpush.bf16.msra.mxu0 %v6919_v40 }
 0x166   :  { %1456 = vmatpush.bf16.msra.mxu2 %v6841_v59  ;;  %1478 = vmatpush.bf16.msra.mxu3 %v6861_v6 }
 0x168   :  { %1444 = vmatpush.bf16.msra.mxu1 %v6774_v25  ;;  %1560 = vmatpush.bf16.msra.mxu0 %v6933_v43 }
 0x16a   :  { %1457 = vmatpush.bf16.msra.mxu2 %v6853_v1  ;;  %1479 = vmatpush.bf16.msra.mxu3 %v6875_v11 }
 0x16c   :  { %1445 = vmatpush.bf16.msra.mxu1 %v6791_v28  ;;  %1561 = vmatpush.bf16.msra.mxu0 %v6950_v47 }
 0x16e   :  { %1458 = vmatpush.bf16.msra.mxu2 %v6868_v8  ;;  %1480 = vmatpush.bf16.msra.mxu3 %v6895_v61 }
 0x170   :  { %1446 = vmatpush.bf16.msra.mxu1 %v6810_v36  ;;  %v7002_v55 = vpop.f32.mrf.mxu0  ;;  %1562 = vmatpush.bf16.msra.mxu0 %v6962_v52 }
 0x172   :  { %1459 = vmatpush.bf16.msra.mxu2 %v6886_v24  ;;  %1481 = vmatpush.bf16.msra.mxu3 %v6919_v40 }
 0x173   :  { %1563 = vmatmul.bf16.vlgmr.msra.gmra.mxu0 %v1553_v30 }
 0x174   :  { %1447 = vmatpush.bf16.msra.mxu1 %v6817_v42  ;;  %1611 = vmatpush.bf16.msrb.mxu0 %v6834_v56 }
 0x176   :  { %1460 = vmatpush.bf16.msra.mxu2 %v6908_v34  ;;  %1482 = vmatpush.bf16.msra.mxu3 %v6933_v43 }
 0x178   :  { %1448 = vmatpush.bf16.msra.mxu1 %v6824_v48  ;;  %v794_v62 = vpop.f32.mrf.mxu0  ;;  %1612 = vmatpush.bf16.msrb.mxu0 %v6841_v59 }
 0x17a   :  { %1461 = vmatpush.bf16.msra.mxu2 %v6925_v41  ;;  %1483 = vmatpush.bf16.msra.mxu3 %v6950_v47 }
 0x17b   :  { %1449 = vmatmul.bf16.vlgmr.msra.gmra.mxu1 %v6952_v49 }
 0x17c   :  { %1506 = vmatpush.bf16.msrb.mxu1 %v6688_v4  ;;  %1613 = vmatpush.bf16.msrb.mxu0 %v6853_v1 }
 0x17e   :  { %1462 = vmatpush.bf16.msra.mxu2 %v6940_v44  ;;  %1484 = vmatpush.bf16.msra.mxu3 %v6962_v52 }
 0x180   :  { %1507 = vmatpush.bf16.msrb.mxu1 %v6700_v7  ;;  %v7028_v0 = vpop.f32.mrf.mxu0  ;;  %1614 = vmatpush.bf16.msrb.mxu0 %v6868_v8 }
 0x181   :  { %1463 = vmatmul.bf16.vlgmr.msra.gmra.mxu2 %v6968_v53  ;;  %1485 = vmatmul.bf16.vlgmr.msra.gmra.mxu3 %v7012_v60 }
 0x182   :  { %1519 = vmatpush.bf16.msrb.mxu2 %v6718_v13  ;;  %1533 = vmatpush.bf16.msrb.mxu3 %v6834_v56 }
 0x184   :  { %1508 = vmatpush.bf16.msrb.mxu1 %v6713_v12  ;;  %1615 = vmatpush.bf16.msrb.mxu0 %v6886_v24 }
 0x186   :  { %1520 = vmatpush.bf16.msrb.mxu2 %v6736_v18  ;;  %1534 = vmatpush.bf16.msrb.mxu3 %v6841_v59 }
 0x188   :  { %1509 = vmatpush.bf16.msrb.mxu1 %v6731_v16  ;;  %v973_v9 = vpop.f32.mrf.mxu0  ;;  %1616 = vmatpush.bf16.msrb.mxu0 %v6908_v34 }
 0x18a   :  { %1521 = vmatpush.bf16.msrb.mxu2 %v6753_v21  ;;  %1535 = vmatpush.bf16.msrb.mxu3 %v6853_v1 }
 0x18c   :  { %1510 = vmatpush.bf16.msrb.mxu1 %v6747_v20  ;;  %1617 = vmatpush.bf16.msrb.mxu0 %v6925_v41 }
 0x18e   :  { %1522 = vmatpush.bf16.msrb.mxu2 %v6774_v25  ;;  %1536 = vmatpush.bf16.msrb.mxu3 %v6868_v8  ;;  %v5776_v8 = vld [vmem:[%s8696_s3 + $0x50] sm:$0xff] }
 0x190   :  { %1511 = vmatpush.bf16.msrb.mxu1 %v6765_v23  ;;  %1618 = vmatpush.bf16.msrb.mxu0 %v6940_v44 }
 0x192   :  { %1523 = vmatpush.bf16.msrb.mxu2 %v6791_v28  ;;  %1537 = vmatpush.bf16.msrb.mxu3 %v6886_v24 }
 0x193   :  { %1619 = vmatmul.bf16.vlgmr.msrb.gmra.mxu0 %v1553_v30 }
 0x194   :  { %1512 = vmatpush.bf16.msrb.mxu1 %v6786_v27 }
 0x196   :  { %1524 = vmatpush.bf16.msrb.mxu2 %v6810_v36  ;;  %1538 = vmatpush.bf16.msrb.mxu3 %v6908_v34 }
 0x198   :  { %1513 = vmatpush.bf16.msrb.mxu1 %v6805_v35 }
 0x19a   :  { %1525 = vmatpush.bf16.msrb.mxu2 %v6817_v42  ;;  %1539 = vmatpush.bf16.msrb.mxu3 %v6925_v41 }
 0x19b   :  { %1514 = vmatmul.bf16.vlgmr.msrb.gmra.mxu1 %v6888_v29 }
 0x19c   :  { %1571 = vmatpush.bf16.msra.mxu1 %v6682_v2 }
 0x19e   :  { %1526 = vmatpush.bf16.msrb.mxu2 %v6824_v48  ;;  %1540 = vmatpush.bf16.msrb.mxu3 %v6940_v44  ;;  %v5773_v44 = vld [vmem:[%s8696_s3 + $0x38] sm:$0xff] }
 0x1a0   :  { %1572 = vmatpush.bf16.msra.mxu1 %v6694_v5  ;;  %v5780_v5 = vld [vmem:[%s8696_s3 + $0x70] sm:$0xff] }
 0x1a1   :  { %1527 = vmatmul.bf16.vlgmr.msrb.gmra.mxu2 %v6968_v53  ;;  %1541 = vmatmul.bf16.vlgmr.msrb.gmra.mxu3 %v7012_v60 }
 0x1a2   :  { %1584 = vmatpush.bf16.msra.mxu2 %v6688_v4  ;;  %1597 = vmatpush.bf16.msra.mxu3 %v6718_v13  ;;  %v5781_v4 = vld [vmem:[%s8696_s3 + $0x78] sm:$0xff] }
 0x1a4   :  { %1573 = vmatpush.bf16.msra.mxu1 %v6707_v10 }
 0x1a6   :  { %1585 = vmatpush.bf16.msra.mxu2 %v6700_v7  ;;  %1598 = vmatpush.bf16.msra.mxu3 %v6736_v18  ;;  %v7101_v18 = vld [vmem:[%s8697_s4] ss:$0 sm:$0xff] }
 0x1a8   :  { %1574 = vmatpush.bf16.msra.mxu1 %v6724_v14 }
 0x1aa   :  { %1586 = vmatpush.bf16.msra.mxu2 %v6713_v12  ;;  %1599 = vmatpush.bf16.msra.mxu3 %v6753_v21  ;;  %v1628_v12 = vshll.u32 %v6952_v49, 16 }
 0x1ac   :  { %1575 = vmatpush.bf16.msra.mxu1 %v6741_v19  ;;  %v1630_v21 = vrot.slane %v1628_v12, 1 }
 0x1ae   :  { %1587 = vmatpush.bf16.msra.mxu2 %v6731_v16  ;;  %1600 = vmatpush.bf16.msra.mxu3 %v6774_v25 }
 0x1b0   :  { %1576 = vmatpush.bf16.msra.mxu1 %v6759_v22 }
 0x1b2   :  { %1588 = vmatpush.bf16.msra.mxu2 %v6747_v20  ;;  %1601 = vmatpush.bf16.msra.mxu3 %v6791_v28  ;;  %v1626_v20 = vshrl.u32 %v6952_v49, 16 }
 0x1b4   :  { %1577 = vmatpush.bf16.msra.mxu1 %v6781_v26  ;;  %v7107_v26 = vpop.f32.mrf.mxu0 }
 0x1b6   :  { %1589 = vmatpush.bf16.msra.mxu2 %v6765_v23  ;;  %1602 = vmatpush.bf16.msra.mxu3 %v6810_v36 }
 0x1b8   :  { %1578 = vmatpush.bf16.msra.mxu1 %v6799_v32  ;;  %v853_v2 = vpop.f32.mrf.mxu1  ;;  %v1631_v32 = vor.u32 %v1630_v21, %v1626_v20 }
 0x1b9   :  { %v854_v10 = vadd.f32 %v853_v2, %v7002_v55 }
 0x1ba   :  { %1590 = vmatpush.bf16.msra.mxu2 %v6786_v27  ;;  %1603 = vmatpush.bf16.msra.mxu3 %v6817_v42  ;;  %v5779_v27 = vld [vmem:[%s8696_s3 + $0x68] sm:$0xff] }
 0x1bb   :  { %1579 = vmatmul.bf16.vlgmr.msra.gmra.mxu1 %v6968_v53  ;;  %v5769_v53 = vld [vmem:[%s8696_s3 + $0x18] sm:$0xff] }
 0x1bc   :  { %1633 = vmatpush.bf16.msrb.mxu1 %v6847_v63  ;;  %v5777_v63 = vld [vmem:[%s8696_s3 + $0x58] sm:$0xff] }
 0x1be   :  { %1591 = vmatpush.bf16.msra.mxu2 %v6805_v35  ;;  %1604 = vmatpush.bf16.msra.mxu3 %v6824_v48  ;;  %v5778_v35 = vld [vmem:[%s8696_s3 + $0x60] sm:$0xff] }
 0x1c0   :  { %1634 = vmatpush.bf16.msrb.mxu1 %v6861_v6  ;;  %v855_v7 = vpop.f32.mrf.mxu1  ;;  %v1245_v6 = vpop.f32.mrf.mxu0 }
 0x1c1   :  { %1592 = vmatmul.bf16.vlgmr.msra.gmra.mxu2 %v6952_v49  ;;  %1605 = vmatmul.bf16.vlgmr.msra.gmra.mxu3 %v7012_v60  ;;  %v5771_v49 = vld [vmem:[%s8696_s3 + $0x28] sm:$0xff]  ;;  %v5785_v6 = vld [vmem:[%s8696_s3 + $0x98] sm:$0xff] }
 0x1c2   :  { %1737 = vmatpush.bf16.msrb.mxu2 %v5781_v4  ;;  %1798 = vmatpush.bf16.msrb.mxu3 %v5773_v44 }
 0x1c4   :  { %1635 = vmatpush.bf16.msrb.mxu1 %v6875_v11  ;;  %v939_v13 = vpop.f32.mrf.mxu2  ;;  %v958_v14 = vpop.f32.mrf.mxu3 }
 0x1c5   :  { %v943_v16 = vadd.f32 %v939_v13, %v854_v10  ;;  %v972_v19 = vadd.f32 %v7028_v0, %v958_v14 }
 0x1c6   :  { %1738 = vmatpush.bf16.msrb.mxu2 %v5780_v5  ;;  %1799 = vmatpush.bf16.msrb.mxu3 %v5772_v46 }
 0x1c7   :  { %v947_v23 = vadd.f32 %v7101_v18, %v943_v16 }
 0x1c8   :  { %1636 = vmatpush.bf16.msrb.mxu1 %v6895_v61  ;;  %v992_v22 = vpop.f32.mrf.mxu1  ;;  %v1437_v61 = vpop.f32.mrf.mxu0 }
 0x1c9   :  { %v996_v25 = vadd.f32 %v992_v22, %v972_v19  ;;  %v948_v48 = vmax.f32 %v947_v23, 0.0 }
 0x1ca   :  { %1739 = vmatpush.bf16.msrb.mxu2 %v5779_v27  ;;  %1800 = vmatpush.bf16.msrb.mxu3 %v5771_v49 }
 0x1cb   :  { %v997_v28 = vadd.f32 %v7101_v18, %v996_v25 }
 0x1cc   :  { %1637 = vmatpush.bf16.msrb.mxu1 %v6919_v40  ;;  %v941_v36 = vpop.f32.mrf.mxu2  ;;  %v960_v42 = vpop.f32.mrf.mxu3 }
 0x1cd   :  { %v998_v56 = vmax.f32 %v997_v28, 0.0 }
 0x1ce   :  { %1740 = vmatpush.bf16.msrb.mxu2 %v5778_v35  ;;  %1801 = vmatpush.bf16.msrb.mxu3 %v5770_v50 }
 0x1cf   :  { %v999_v59 = vmax.f32 %v948_v48, %v998_v56 }
 0x1d0   :  { %1638 = vmatpush.bf16.msrb.mxu1 %v6933_v43  ;;  %v994_v1 = vpop.f32.mrf.mxu1  ;;  %v1439_v37 = vpop.f32.mrf.mxu0  ;;  %v5774_v43 = vld [vmem:[%s8696_s3 + $0x40] sm:$0xff] }
 0x1d1   :  { %1000 = vst [vmem:[#allocation3] sm:$0x1] %v999_v59  ;;  %v5786_v1 = vld [vmem:[%s8696_s3 + $0xa0] sm:$0xff] }
 0x1d2   :  { %1001 = vst [vmem:[#allocation3 + $0x1] sm:$0x2] %v999_v59  ;;  %1741 = vmatpush.bf16.msrb.mxu2 %v5777_v63  ;;  %1802 = vmatpush.bf16.msrb.mxu3 %v5769_v53 }
 0x1d3   :  { %1002 = vst [vmem:[#allocation3 + $0x2] sm:$0x4] %v999_v59 }
 0x1d4   :  { %1639 = vmatpush.bf16.msrb.mxu1 %v6950_v47  ;;  %1003 = vst [vmem:[#allocation3 + $0x3] sm:$0x8] %v999_v59  ;;  %v1104_v11 = vpop.f32.mrf.mxu2  ;;  %v1165_v24 = vpop.f32.mrf.mxu3 }
 0x1d5   :  { %1004 = vst [vmem:[#allocation3 + $0x4] sm:$0x10] %v999_v59  ;;  %v1166_v51 = vadd.f32 %v1165_v24, %v1104_v11  ;;  %v5784_v11 = vld [vmem:[%s8696_s3 + $0x90] sm:$0xff] }
 0x1d6   :  { %1742 = vmatpush.bf16.msrb.mxu2 %v5776_v8  ;;  %1803 = vmatpush.bf16.msrb.mxu3 %v5768_v58 }
 0x1d7   :  { %v1247_v55 = vadd.f32 %v7107_v26, %v1166_v51 }
 0x1d8   :  { %1640 = vmatpush.bf16.msrb.mxu1 %v6962_v52  ;;  %v1322_v29 = vpop.f32.mrf.mxu1  ;;  %v7144_v54 = vpop.f32.mrf.mxu0 }
 0x1d9   :  { %v1326_v60 = vadd.f32 %v1322_v29, %v1247_v55 }
 0x1da   :  { %1743 = vmatpush.bf16.msrb.mxu2 %v5775_v38  ;;  %1804 = vmatpush.bf16.msrb.mxu3 %v5767_v3 }
 0x1db   :  { %1641 = vmatmul.bf16.vlgmr.msrb.gmra.mxu1 %v1631_v32  ;;  %v5789_v32 = vld [vmem:[%s8696_s3 + $0xb8] sm:$0xff] }
 0x1dc   :  { %1899 = vmatpush.bf16.msra.mxu1 %v5781_v4  ;;  %v1106_v31 = vpop.f32.mrf.mxu2  ;;  %v1167_v33 = vpop.f32.mrf.mxu3  ;;  %v5766_v4 = vld [vmem:[%s8696_s3] sm:$0xff]  ;;  %1883 = vmatpush.bf16.msra.mxu0 %v5789_v32 }
 0x1dd   :  { %v5783_v31 = vld [vmem:[%s8696_s3 + $0x88] sm:$0xff] }
 0x1de   :  { %1744 = vmatpush.bf16.msrb.mxu2 %v5774_v43  ;;  %1805 = vmatpush.bf16.msrb.mxu3 %v5766_v4 }
 0x1e0   :  { %1900 = vmatpush.bf16.msra.mxu1 %v5780_v5  ;;  %v1324_v34 = vpop.f32.mrf.mxu1  ;;  %v1504_v9 = vpop.f32.mrf.mxu0 }
 0x1e1   :  { %v5782_v34 = vld [vmem:[%s8696_s3 + $0x80] sm:$0xff] }
 0x1e2   :  { %1912 = vmatpush.bf16.msra.mxu2 %v5773_v44  ;;  %1933 = vmatpush.bf16.msra.mxu3 %v5789_v32  ;;  %v5839_v32 = vld [vmem:[%s8698_s5 + $0x18c] sm:$0xf] }
 0x1e4   :  { %1901 = vmatpush.bf16.msra.mxu1 %v5779_v27  ;;  %v1408_v40 = vpop.f32.mrf.mxu2  ;;  %v1424_v41 = vpop.f32.mrf.mxu3 }
 0x1e5   :  { %v1438_v57 = vadd.f32 %v1437_v61, %v1424_v41  ;;  %v1412_v15 = vadd.f32 %v1408_v40, %v1326_v60 }
 0x1e6   :  { %1913 = vmatpush.bf16.msra.mxu2 %v5772_v46 }
 0x1e7   :  { %v1413_v5 = vadd.f32 %v6644_v39, %v1412_v15 }
 0x1e8   :  { %1902 = vmatpush.bf16.msra.mxu1 %v5778_v35  ;;  %v5788_v35 = vld [vmem:[%s8696_s3 + $0xb0] sm:$0xff] }
 0x1e9   :  { %v1414_v12 = vmax.f32 %v1413_v5, 0.0  ;;  %1884 = vmatpush.bf16.msra.mxu0 %v5788_v35  ;;  %1934 = vmatpush.bf16.msra.mxu3 %v5788_v35  ;;  %v5284_v5 = vld [vmem:[%s8698_s5 + $0x1e0] sm:$0xf0] }
 0x1ea   :  { %1914 = vmatpush.bf16.msra.mxu2 %v5771_v49 }
 0x1ec   :  { %1903 = vmatpush.bf16.msra.mxu1 %v5777_v63  ;;  %v1410_v45 = vpop.f32.mrf.mxu2  ;;  %v1426_v47 = vpop.f32.mrf.mxu3  ;;  %v5787_v63 = vld [vmem:[%s8696_s3 + $0xa8] sm:$0xff] }
 0x1ed   :  { %1885 = vmatpush.bf16.msra.mxu0 %v5787_v63  ;;  %1935 = vmatpush.bf16.msra.mxu3 %v5787_v63  ;;  %v5220_v63 = vld [vmem:[%s8698_s5 + $0x160] sm:$0xf0] }
 0x1ee   :  { %1915 = vmatpush.bf16.msra.mxu2 %v5770_v50 }
 0x1f0   :  { %1904 = vmatpush.bf16.msra.mxu1 %v5776_v8  ;;  %v1564_v20 = vpop.f32.mrf.mxu0 }
 0x1f1   :  { %1886 = vmatpush.bf16.msra.mxu0 %v5786_v1  ;;  %1936 = vmatpush.bf16.msra.mxu3 %v5786_v1  ;;  %v5226_v1 = vld [vmem:[%s8698_s5 + $0x148] sm:$0xf] }
 0x1f2   :  { %1916 = vmatpush.bf16.msra.mxu2 %v5769_v53 }
 0x1f4   :  { %1905 = vmatpush.bf16.msra.mxu1 %v5775_v38 }
 0x1f5   :  { %1887 = vmatpush.bf16.msra.mxu0 %v5785_v6  ;;  %1937 = vmatpush.bf16.msra.mxu3 %v5785_v6 }
 0x1f6   :  { %1917 = vmatpush.bf16.msra.mxu2 %v5768_v58 }
 0x1f8   :  { %1906 = vmatpush.bf16.msra.mxu1 %v5774_v43  ;;  %v1450_v52 = vpop.f32.mrf.mxu1  ;;  %v1566_v25 = vpop.f32.mrf.mxu0 }
 0x1f9   :  { %v1454_v0 = vadd.f32 %v1450_v52, %v1438_v57  ;;  %1888 = vmatpush.bf16.msra.mxu0 %v5784_v11  ;;  %1938 = vmatpush.bf16.msra.mxu3 %v5784_v11  ;;  %v5831_v11 = vld [vmem:[%s8698_s5 + $0x14c] sm:$0xf] }
 0x1fa   :  { %1918 = vmatpush.bf16.msra.mxu2 %v5767_v3 }
 0x1fd   :  { %1889 = vmatpush.bf16.msra.mxu0 %v5783_v31  ;;  %1939 = vmatpush.bf16.msra.mxu3 %v5783_v31 }
 0x1fe   :  { %1919 = vmatpush.bf16.msra.mxu2 %v5766_v4 }
 0x200   :  { %v1452_v62 = vpop.f32.mrf.mxu1 }
 0x201   :  { %1890 = vmatpush.bf16.msra.mxu0 %v5782_v34  ;;  %1940 = vmatpush.bf16.msra.mxu3 %v5782_v34  ;;  %v5826_v34 = vld [vmem:[%s8698_s5 + $0x11c] sm:$0xf0] }
 0x204   :  { %v1464_v17 = vpop.f32.mrf.mxu2  ;;  %v1486_v2 = vpop.f32.mrf.mxu3 }
 0x205   :  { %v1468_v30 = vadd.f32 %v1464_v17, %v1454_v0  ;;  %v5282_v17 = vld [vmem:[%s8698_s5 + $0x1c0] sm:$0xf] }
 0x207   :  { %v1490_v7 = vadd.f32 %v1486_v2, %v1468_v30  ;;  %v5850_v30 = vld [vmem:[%s8698_s5 + $0x1dc] sm:$0xf0]  ;;  %v5846_v2 = vld [vmem:[%s8698_s5 + $0x1c4] sm:$0xf] }
 0x208   :  { %v5283_v4 = vor.u32 %v5850_v30, %v5282_v17  ;;  %v5806_v17 = vld [vmem:[%s8698_s5 + $0x84] sm:$0xf] }
 0x209   :  { %v1491_v10 = vadd.f32 %v6644_v39, %v1490_v7  ;;  %v5290_v7 = vld [vmem:[%s8698_s5 + $0x1c8] sm:$0xf] }
 0x20a   :  { %2360 = vmatpush.bf16.msrb.mxu0 %v5283_v4  ;;  %v5130_v4 = vld [vmem:[%s8698_s5 + $0x88] sm:$0xf] }
 0x20b   :  { %v1492_v13 = vmax.f32 %v1491_v10, 0.0  ;;  %v5851_v10 = vld [vmem:[%s8698_s5 + $0x1e4] sm:$0xf0] }
 0x20c   :  { %v1466_v14 = vpop.f32.mrf.mxu2  ;;  %v1488_v19 = vpop.f32.mrf.mxu3 }
 0x20d   :  { %v1649_v16 = vmax.f32 %v1414_v12, %v1492_v13  ;;  %v5287_v12 = vor.u32 %v5846_v2, %v5284_v5  ;;  %v5291_v13 = vor.u32 %v5851_v10, %v5290_v7  ;;  %v5847_v14 = vld [vmem:[%s8698_s5 + $0x1cc] sm:$0xf]  ;;  %v5250_v19 = vld [vmem:[%s8698_s5 + $0x180] sm:$0xf]  ;;  %v5124_v2 = vld [vmem:[%s8698_s5 + $0xa0] sm:$0xf0] }
 0x20e   :  { %v5811_v5 = vld [vmem:[%s8698_s5 + $0xa4] sm:$0xf0]  ;;  %v5807_v7 = vld [vmem:[%s8698_s5 + $0x8c] sm:$0xf] }
 0x20f   :  { %1652 = vst [vmem:[#allocation2 + $0x7] sm:$0x3f] %v1649_v16  ;;  %v5292_v16 = vld [vmem:[%s8698_s5 + $0x1e8] sm:$0xf0]  ;;  %2374 = vmatpush.bf16.msrb.mxu1 %v5287_v12 }
 0x210   :  { %v1620_v48 = vpop.f32.mrf.mxu0  ;;  %v5132_v10 = vld [vmem:[%s8698_s5 + $0xa8] sm:$0xf0] }
 0x216   :  { %v1654_v22 = vld [vmem:[#allocation2 + $0x7] sm:$0x7f] }
 0x217   :  { %v7158_v23 = vpack.c.bf16 %v1654_v22, %v1654_v22  ;;  %v5838_v22 = vld [vmem:[%s8698_s5 + $0x184] sm:$0xf] }
 0x218   :  { %v1515_v21 = vpop.f32.mrf.mxu1  ;;  %v1622_v59 = vpop.f32.mrf.mxu0 }
 0x219   :  { %1745 = vmatmul.bf16.vlgmr.msrb.gmra.mxu2 %v7158_v23  ;;  %v1516_v61 = vadd.f32 %v1515_v21, %v7144_v54  ;;  %v1928_v3 = vshll.u32 %v7158_v23, 16  ;;  %v1926_v15 = vshrl.u32 %v7158_v23, 16  ;;  %v5842_v21 = vld [vmem:[%s8698_s5 + $0x19c] sm:$0xf0]  ;;  %v5830_v59 = vld [vmem:[%s8698_s5 + $0x144] sm:$0xf] }
 0x21a   :  { %2388 = vmatpush.bf16.msrb.mxu2 %v5291_v13  ;;  %v5251_v25 = vor.u32 %v5842_v21, %v5250_v19  ;;  %v5127_v13 = vor.u32 %v5806_v17, %v5124_v2  ;;  %v5090_v21 = vld [vmem:[%s8698_s5 + $0x40] sm:$0xf]  ;;  %v5836_v17 = vld [vmem:[%s8698_s5 + $0x16c] sm:$0xf0]  ;;  %v5236_v2 = vld [vmem:[%s8698_s5 + $0x170] sm:$0xf0] }
 0x21b   :  { %v1930_v9 = vrot.slane %v1928_v3, 1 }
 0x21c   :  { %2361 = vmatpush.bf16.msrb.mxu0 %v5251_v25 }
 0x220   :  { %v1517_v26 = vpop.f32.mrf.mxu1 }
 0x224   :  { %v1528_v27 = vpop.f32.mrf.mxu2  ;;  %v1542_v28 = vpop.f32.mrf.mxu3 }
 0x225   :  { %v1532_v33 = vadd.f32 %v1528_v27, %v1516_v61  ;;  %v5258_v27 = vld [vmem:[%s8698_s5 + $0x188] sm:$0xf]  ;;  %v5223_v61 = vor.u32 %v5830_v59, %v5220_v63  ;;  %v5794_v59 = vld [vmem:[%s8698_s5 + $0x1c] sm:$0xf0]  ;;  %v5790_v63 = vld [vmem:[%s8698_s5 + $0x4] sm:$0xf] }
 0x227   :  { %v1546_v41 = vadd.f32 %v1542_v28, %v1532_v33  ;;  %v5843_v28 = vld [vmem:[%s8698_s5 + $0x1a4] sm:$0xf0]  ;;  %v5186_v33 = vld [vmem:[%s8698_s5 + $0x100] sm:$0xf] }
 0x228   :  { %v5259_v35 = vor.u32 %v5843_v28, %v5258_v27  ;;  %v5098_v27 = vld [vmem:[%s8698_s5 + $0x48] sm:$0xf] }
 0x229   :  { %1920 = vmatmul.bf16.vlgmr.msra.gmra.mxu2 %v7158_v23  ;;  %v1568_v44 = vadd.f32 %v1564_v20, %v1546_v41  ;;  %v5295_v20 = vor.u32 %v5847_v14, %v5292_v16  ;;  %v5252_v23 = vld [vmem:[%s8698_s5 + $0x1a0] sm:$0xf0]  ;;  %v5194_v41 = vld [vmem:[%s8698_s5 + $0x108] sm:$0xf]  ;;  %v5131_v14 = vor.u32 %v5811_v5, %v5130_v4  ;;  %v5135_v16 = vor.u32 %v5807_v7, %v5132_v10  ;;  %v5242_v4 = vld [vmem:[%s8698_s5 + $0x158] sm:$0xf] }
 0x22a   :  { %v5255_v26 = vor.u32 %v5838_v22, %v5252_v23  ;;  %2389 = vmatpush.bf16.msrb.mxu2 %v5259_v35  ;;  %v5802_v22 = vld [vmem:[%s8698_s5 + $0x5c] sm:$0xf0]  ;;  %v5798_v23 = vld [vmem:[%s8698_s5 + $0x44] sm:$0xf]  ;;  %v5803_v28 = vld [vmem:[%s8698_s5 + $0x64] sm:$0xf0] }
 0x22b   :  { %v1569_v47 = vadd.f32 %v6644_v39, %v1568_v44  ;;  %v5823_v44 = vld [vmem:[%s8698_s5 + $0x10c] sm:$0xf]  ;;  %v5091_v25 = vor.u32 %v5802_v22, %v5090_v21  ;;  %v5099_v35 = vor.u32 %v5803_v28, %v5098_v27  ;;  %v5837_v5 = vld [vmem:[%s8698_s5 + $0x174] sm:$0xf0]  ;;  %v5828_v21 = vld [vmem:[%s8698_s5 + $0x12c] sm:$0xf0] }
 0x22c   :  { %v1530_v36 = vpop.f32.mrf.mxu2  ;;  %v1544_v42 = vpop.f32.mrf.mxu3  ;;  %2375 = vmatpush.bf16.msrb.mxu1 %v5255_v26  ;;  %v5092_v26 = vld [vmem:[%s8698_s5 + $0x60] sm:$0xf0]  ;;  %v5824_v22 = vld [vmem:[%s8698_s5 + $0x114] sm:$0xf]  ;;  %v5829_v27 = vld [vmem:[%s8698_s5 + $0x134] sm:$0xf0] }
 0x22d   :  { %v1570_v51 = vmax.f32 %v1569_v47, 0.0  ;;  %v5260_v36 = vld [vmem:[%s8698_s5 + $0x1a8] sm:$0xf0]  ;;  %v5218_v42 = vld [vmem:[%s8698_s5 + $0x140] sm:$0xf] }
 0x230   :  { %2376 = vmatpush.bf16.msrb.mxu1 %v5223_v61 }
 0x238   :  { %v1580_v56 = vpop.f32.mrf.mxu1 }
 0x240   :  { %v1582_v8 = vpop.f32.mrf.mxu1 }
 0x241   :  { %v5835_v8 = vld [vmem:[%s8698_s5 + $0x164] sm:$0xf0] }
 0x242   :  { %v5227_v31 = vor.u32 %v5835_v8, %v5226_v1  ;;  %v5066_v8 = vld [vmem:[%s8698_s5 + $0x8] sm:$0xf] }
 0x244   :  { %v1593_v24 = vpop.f32.mrf.mxu2  ;;  %v1606_v29 = vpop.f32.mrf.mxu3  ;;  %2390 = vmatpush.bf16.msrb.mxu2 %v5227_v31  ;;  %v5791_v31 = vld [vmem:[%s8698_s5 + $0xc] sm:$0xf] }
 0x245   :  { %v1594_v37 = vadd.f32 %v1593_v24, %v1580_v56  ;;  %v5263_v56 = vor.u32 %v5839_v32, %v5260_v36  ;;  %v5228_v24 = vld [vmem:[%s8698_s5 + $0x168] sm:$0xf0]  ;;  %v5095_v32 = vor.u32 %v5798_v23, %v5092_v26  ;;  %v5210_v26 = vld [vmem:[%s8698_s5 + $0x118] sm:$0xf] }
 0x246   :  { %v5799_v36 = vld [vmem:[%s8698_s5 + $0x4c] sm:$0xf] }
 0x247   :  { %v1610_v43 = vadd.f32 %v1606_v29, %v1594_v37  ;;  %v5822_v37 = vld [vmem:[%s8698_s5 + $0x104] sm:$0xf] }
 0x249   :  { %v1624_v45 = vadd.f32 %v1620_v48, %v1610_v43  ;;  %v5834_v48 = vld [vmem:[%s8698_s5 + $0x15c] sm:$0xf0]  ;;  %v5827_v43 = vld [vmem:[%s8698_s5 + $0x124] sm:$0xf0] }
 0x24a   :  { %v5219_v6 = vor.u32 %v5834_v48, %v5218_v42  ;;  %v5100_v42 = vld [vmem:[%s8698_s5 + $0x68] sm:$0xf0] }
 0x24b   :  { %v5103_v48 = vor.u32 %v5799_v36, %v5100_v42  ;;  %v5212_v36 = vld [vmem:[%s8698_s5 + $0x138] sm:$0xf0] }
 0x24c   :  { %v1595_v38 = vpop.f32.mrf.mxu2  ;;  %v1608_v40 = vpop.f32.mrf.mxu3  ;;  %2362 = vmatpush.bf16.msrb.mxu0 %v5219_v6  ;;  %v5060_v6 = vld [vmem:[%s8698_s5 + $0x20] sm:$0xf0] }
 0x24d   :  { %v5231_v38 = vor.u32 %v5831_v11, %v5228_v24  ;;  %v5188_v40 = vld [vmem:[%s8698_s5 + $0x120] sm:$0xf0]  ;;  %v5795_v11 = vld [vmem:[%s8698_s5 + $0x24] sm:$0xf0]  ;;  %v5063_v24 = vor.u32 %v5790_v63, %v5060_v6  ;;  %v5178_v6 = vld [vmem:[%s8698_s5 + $0xd8] sm:$0xf] }
 0x24e   :  { %v5191_v47 = vor.u32 %v5822_v37, %v5188_v40  ;;  %v5067_v61 = vor.u32 %v5795_v11, %v5066_v8  ;;  %v5848_v40 = vld [vmem:[%s8698_s5 + $0x1d4] sm:$0xf]  ;;  %v5821_v8 = vld [vmem:[%s8698_s5 + $0xf4] sm:$0xf0] }
 0x250   :  { %2377 = vmatpush.bf16.msrb.mxu1 %v5191_v47  ;;  %v5849_v47 = vld [vmem:[%s8698_s5 + $0x1dc] sm:$0xf] }
 0x258   :  { %v1642_v46 = vpop.f32.mrf.mxu1 }
 0x259   :  { %v1646_v49 = vadd.f32 %v1642_v46, %v1624_v45  ;;  %v5196_v45 = vld [vmem:[%s8698_s5 + $0x128] sm:$0xf0]  ;;  %v5187_v46 = vor.u32 %v5826_v34, %v5186_v33  ;;  %v5298_v34 = vld [vmem:[%s8698_s5 + $0x1d0] sm:$0xf] }
 0x25a   :  { %v5068_v33 = vld [vmem:[%s8698_s5 + $0x28] sm:$0xf0] }
 0x25b   :  { %v1647_v50 = vadd.f32 %v6644_v39, %v1646_v49  ;;  %v1931_v39 = vor.u32 %v1930_v9, %v1926_v15  ;;  %v5195_v49 = vor.u32 %v5827_v43, %v5194_v41  ;;  %2363 = vmatpush.bf16.msrb.mxu0 %v5187_v46  ;;  %v5122_v15 = vld [vmem:[%s8698_s5 + $0x80] sm:$0xf]  ;;  %v5071_v37 = vor.u32 %v5791_v31, %v5068_v33  ;;  %v5300_v41 = vld [vmem:[%s8698_s5 + $0x1f0] sm:$0xf0]  ;;  %v5853_v46 = vld [vmem:[%s8698_s5 + $0x1f4] sm:$0xf0] }
 0x25c   :  { %v5180_v31 = vld [vmem:[%s8698_s5 + $0xf8] sm:$0xf0] }
 0x25d   :  { %v1648_v52 = vmax.f32 %v1647_v50, 0.0  ;;  %v5154_v50 = vld [vmem:[%s8698_s5 + $0xc0] sm:$0xf]  ;;  %2391 = vmatpush.bf16.msrb.mxu2 %v5195_v49 }
 0x25f   :  { %v1650_v53 = vmax.f32 %v1570_v51, %v1648_v52  ;;  %v5818_v51 = vld [vmem:[%s8698_s5 + $0xdc] sm:$0xf0]  ;;  %v5814_v52 = vld [vmem:[%s8698_s5 + $0xc4] sm:$0xf] }
 0x260   :  { %v1644_v54 = vpop.f32.mrf.mxu1 }
 0x261   :  { %1651 = vst [vmem:[#allocation2 + $0x1] sm:$0x1f] %v1650_v53  ;;  %v5199_v53 = vor.u32 %v5823_v44, %v5196_v45  ;;  %v5156_v54 = vld [vmem:[%s8698_s5 + $0xe0] sm:$0xf0]  ;;  %v5303_v44 = vor.u32 %v5848_v40, %v5300_v41  ;;  %v5306_v45 = vld [vmem:[%s8698_s5 + $0x1d8] sm:$0xf] }
 0x262   :  { %v5159_v3 = vor.u32 %v5814_v52, %v5156_v54  ;;  %v5307_v49 = vor.u32 %v5853_v46, %v5306_v45  ;;  %v5844_v52 = vld [vmem:[%s8698_s5 + $0x1ac] sm:$0xf0]  ;;  %v5140_v41 = vld [vmem:[%s8698_s5 + $0xb0] sm:$0xf0] }
 0x264   :  { %2378 = vmatpush.bf16.msrb.mxu1 %v5159_v3  ;;  %v5276_v3 = vld [vmem:[%s8698_s5 + $0x1b8] sm:$0xf0] }
 0x268   :  { %v1653_v55 = vld [vmem:[#allocation2] sm:$0x7f]  ;;  %2379 = vmatpush.bf16.msrb.mxu1 %v5127_v13  ;;  %v5244_v13 = vld [vmem:[%s8698_s5 + $0x178] sm:$0xf0] }
 0x269   :  { %v1655_v57 = vpack.c.bf16 %v1653_v55, %v1653_v55  ;;  %v5162_v55 = vld [vmem:[%s8698_s5 + $0xc8] sm:$0xf] }
 0x26b   :  { %1806 = vmatmul.bf16.vlgmr.msrb.gmra.mxu3 %v1655_v57  ;;  %v1830_v58 = vshll.u32 %v1655_v57, 16  ;;  %v1828_v60 = vshrl.u32 %v1655_v57, 16  ;;  %v5819_v57 = vld [vmem:[%s8698_s5 + $0xe4] sm:$0xf0] }
 0x26c   :  { %2402 = vmatpush.bf16.msrb.mxu3 %v5295_v20  ;;  %v5163_v9 = vor.u32 %v5819_v57, %v5162_v55  ;;  %2380 = vmatpush.bf16.msrb.mxu1 %v5095_v32  ;;  %v5840_v55 = vld [vmem:[%s8698_s5 + $0x194] sm:$0xf]  ;;  %v5211_v32 = vor.u32 %v5829_v27, %v5210_v26 }
 0x26d   :  { %v1832_v62 = vrot.slane %v1830_v58, 1  ;;  %v5815_v58 = vld [vmem:[%s8698_s5 + $0xcc] sm:$0xf]  ;;  %v5268_v57 = vld [vmem:[%s8698_s5 + $0x1b0] sm:$0xf0] }
 0x26e   :  { %2392 = vmatpush.bf16.msrb.mxu2 %v5163_v9 }
 0x26f   :  { %v1833_v0 = vor.u32 %v1832_v62, %v1828_v60  ;;  %v5164_v60 = vld [vmem:[%s8698_s5 + $0xe8] sm:$0xf0]  ;;  %v5155_v62 = vor.u32 %v5818_v51, %v5154_v50  ;;  %v5308_v50 = vld [vmem:[%s8698_s5 + $0x1f8] sm:$0xf0]  ;;  %v5266_v51 = vld [vmem:[%s8698_s5 + $0x190] sm:$0xf] }
 0x270   :  { %2403 = vmatpush.bf16.msrb.mxu3 %v5263_v56  ;;  %v5167_v30 = vor.u32 %v5815_v58, %v5164_v60  ;;  %v5058_v56 = vld [vmem:[%s8698_s5] sm:$0xf]  ;;  %2381 = vmatpush.bf16.msrb.mxu1 %v5063_v24  ;;  %v5267_v54 = vor.u32 %v5844_v52, %v5266_v51  ;;  %v5274_v58 = vld [vmem:[%s8698_s5 + $0x198] sm:$0xf]  ;;  %v5271_v60 = vor.u32 %v5840_v55, %v5268_v57  ;;  %v5804_v52 = vld [vmem:[%s8698_s5 + $0x6c] sm:$0xf0] }
 0x271   :  { %1891 = vmatmul.bf16.vlgmr.msra.gmra.mxu0 %v1833_v0  ;;  %1907 = vmatmul.bf16.vlgmr.msra.gmra.mxu1 %v1833_v0  ;;  %v5059_v1 = vor.u32 %v5794_v59, %v5058_v56  ;;  %v5820_v56 = vld [vmem:[%s8698_s5 + $0xec] sm:$0xf0]  ;;  %v5816_v59 = vld [vmem:[%s8698_s5 + $0xd4] sm:$0xf]  ;;  %v5179_v24 = vor.u32 %v5821_v8, %v5178_v6  ;;  %v5434_v6 = vld [vmem:[%s8700_s7 + $0xe8] sm:$0xf] }
 0x272   :  { %2364 = vmatpush.bf16.msrb.mxu0 %v5155_v62  ;;  %2393 = vmatpush.bf16.msrb.mxu2 %v5131_v14  ;;  %v5845_v62 = vld [vmem:[%s8698_s5 + $0x1b4] sm:$0xf0]  ;;  %v5243_v14 = vor.u32 %v5837_v5, %v5242_v4  ;;  %v5792_v4 = vld [vmem:[%s8698_s5 + $0x14] sm:$0xf] }
 0x273   :  { %v5275_v9 = vor.u32 %v5845_v62, %v5274_v58  ;;  %v5114_v58 = vld [vmem:[%s8698_s5 + $0x58] sm:$0xf]  ;;  %v5801_v62 = vld [vmem:[%s8698_s5 + $0x5c] sm:$0xf]  ;;  %v5076_v5 = vld [vmem:[%s8698_s5 + $0x30] sm:$0xf0] }
 0x274   :  { %2404 = vmatpush.bf16.msrb.mxu3 %v5231_v38  ;;  %v5852_v38 = vld [vmem:[%s8698_s5 + $0x1ec] sm:$0xf0]  ;;  %2430 = vmatpush.bf16.msra.mxu1 %v5303_v44  ;;  %v5813_v44 = vld [vmem:[%s8698_s5 + $0xb4] sm:$0xf0] }
 0x275   :  { %v5299_v43 = vor.u32 %v5852_v38, %v5298_v34  ;;  %v5138_v34 = vld [vmem:[%s8698_s5 + $0x90] sm:$0xf]  ;;  %v5808_v38 = vld [vmem:[%s8698_s5 + $0x94] sm:$0xf]  ;;  %v5885_v8 = vld [vmem:[%s8700_s7 + $0xf4] sm:$0xf0] }
 0x276   :  { %2394 = vmatpush.bf16.msrb.mxu2 %v5099_v35  ;;  %v5825_v35 = vld [vmem:[%s8698_s5 + $0x11c] sm:$0xf]  ;;  %v5143_v45 = vor.u32 %v5808_v38, %v5140_v41  ;;  %v5410_v38 = vld [vmem:[%s8700_s7 + $0xc0] sm:$0xf]  ;;  %v7619_v41 = vor.u32 %v5885_v8, %v5434_v6  ;;  %v5865_v6 = vld [vmem:[%s8700_s7 + $0x54] sm:$0xf0] }
 0x277   :  { %v5215_v42 = vor.u32 %v5825_v35, %v5212_v36  ;;  %v5863_v8 = vld [vmem:[%s8700_s7 + $0x4c] sm:$0xf] }
 0x278   :  { %2405 = vmatpush.bf16.msrb.mxu3 %v5199_v53  ;;  %v5311_v53 = vor.u32 %v5849_v47, %v5308_v50  ;;  %2431 = vmatpush.bf16.msra.mxu1 %v5271_v60  ;;  %v5809_v47 = vld [vmem:[%s8698_s5 + $0x9c] sm:$0xf]  ;;  %v5106_v50 = vld [vmem:[%s8698_s5 + $0x50] sm:$0xf]  ;;  %v5805_v60 = vld [vmem:[%s8698_s5 + $0x74] sm:$0xf0] }
 0x279   :  { %v5107_v55 = vor.u32 %v5804_v52, %v5106_v50  ;;  %v5420_v50 = vld [vmem:[%s8700_s7 + $0xd8] sm:$0xf0] }
 0x27a   :  { %2395 = vmatpush.bf16.msrb.mxu2 %v5067_v61  ;;  %v5817_v61 = vld [vmem:[%s8698_s5 + $0xdc] sm:$0xf] }
 0x27b   :  { %1941 = vmatmul.bf16.vlgmr.msra.gmra.mxu3 %v1931_v39  ;;  %v5810_v39 = vld [vmem:[%s8698_s5 + $0x9c] sm:$0xf0]  ;;  %v5183_v33 = vor.u32 %v5817_v61, %v5180_v31  ;;  %v5436_v61 = vld [vmem:[%s8700_s7 + $0xf8] sm:$0xf0] }
 0x27c   :  { %v5123_v12 = vor.u32 %v5810_v39, %v5122_v15  ;;  %2406 = vmatpush.bf16.msrb.mxu3 %v5167_v30  ;;  %v5234_v39 = vld [vmem:[%s8698_s5 + $0x150] sm:$0xf]  ;;  %v5832_v30 = vld [vmem:[%s8698_s5 + $0x154] sm:$0xf] }
 0x27d   :  { %v5235_v7 = vor.u32 %v5836_v17, %v5234_v39  ;;  %v5239_v10 = vor.u32 %v5832_v30, %v5236_v2  ;;  %v5074_v39 = vld [vmem:[%s8698_s5 + $0x10] sm:$0xf] }
 0x27e   :  { %2365 = vmatpush.bf16.msrb.mxu0 %v5123_v12  ;;  %2444 = vmatpush.bf16.msra.mxu2 %v5307_v49  ;;  %v5833_v12 = vld [vmem:[%s8698_s5 + $0x15c] sm:$0xf]  ;;  %v5796_v17 = vld [vmem:[%s8698_s5 + $0x2c] sm:$0xf0] }
 0x27f   :  { %2432 = vmatpush.bf16.msra.mxu1 %v5239_v10  ;;  %v5148_v49 = vld [vmem:[%s8698_s5 + $0xb8] sm:$0xf0]  ;;  %v5797_v10 = vld [vmem:[%s8698_s5 + $0x34] sm:$0xf0] }
 0x280   :  { %2407 = vmatpush.bf16.msrb.mxu3 %v5135_v16  ;;  %v5247_v16 = vor.u32 %v5833_v12, %v5244_v13  ;;  %v5151_v51 = vor.u32 %v5809_v47, %v5148_v49  ;;  %v5793_v12 = vld [vmem:[%s8698_s5 + $0x1c] sm:$0xf]  ;;  %v5881_v47 = vld [vmem:[%s8700_s7 + $0xd4] sm:$0xf0]  ;;  %v5879_v49 = vld [vmem:[%s8700_s7 + $0xcc] sm:$0xf] }
 0x281   :  { %v5084_v13 = vld [vmem:[%s8698_s5 + $0x38] sm:$0xf0] }
 0x282   :  { %2366 = vmatpush.bf16.msrb.mxu0 %v5091_v25  ;;  %2445 = vmatpush.bf16.msra.mxu2 %v5275_v9  ;;  %v5204_v25 = vld [vmem:[%s8698_s5 + $0x130] sm:$0xf0]  ;;  %v5115_v9 = vor.u32 %v5805_v60, %v5114_v58  ;;  %v5874_v58 = vld [vmem:[%s8700_s7 + $0xa4] sm:$0xf] }
 0x283   :  { %v5207_v28 = vor.u32 %v5824_v22, %v5204_v25  ;;  %v5396_v60 = vld [vmem:[%s8700_s7 + $0xb0] sm:$0xf0] }
 0x284   :  { %2408 = vmatpush.bf16.msrb.mxu3 %v5103_v48  ;;  %v5170_v48 = vld [vmem:[%s8698_s5 + $0xd0] sm:$0xf] }
 0x285   :  { %2433 = vmatpush.bf16.msra.mxu1 %v5207_v28  ;;  %v5171_v63 = vor.u32 %v5820_v56, %v5170_v48 }
 0x286   :  { %2367 = vmatpush.bf16.msrb.mxu0 %v5059_v1  ;;  %2446 = vmatpush.bf16.msra.mxu2 %v5243_v14  ;;  %v5172_v1 = vld [vmem:[%s8698_s5 + $0xf0] sm:$0xf0]  ;;  %v5075_v14 = vor.u32 %v5796_v17, %v5074_v39  ;;  %v7685_v39 = vor.u32 %v5874_v58, %v5396_v60  ;;  %v5378_v17 = vld [vmem:[%s8700_s7 + $0x80] sm:$0xf]  ;;  %v5856_v60 = vld [vmem:[%s8700_s7 + $0xc] sm:$0xf0] }
 0x287   :  { %v5175_v11 = vor.u32 %v5816_v59, %v5172_v1  ;;  %v5428_v1 = vld [vmem:[%s8700_s7 + $0xf0] sm:$0xf0] }
 0x288   :  { %2409 = vmatpush.bf16.msrb.mxu3 %v5071_v37  ;;  %v5812_v37 = vld [vmem:[%s8698_s5 + $0xac] sm:$0xf0] }
 0x289   :  { %2434 = vmatpush.bf16.msra.mxu1 %v5175_v11  ;;  %v5139_v40 = vor.u32 %v5812_v37, %v5138_v34 }
 0x28a   :  { %2416 = vmatpush.bf16.msra.mxu0 %v5299_v43  ;;  %2447 = vmatpush.bf16.msra.mxu2 %v5211_v32  ;;  %v5146_v43 = vld [vmem:[%s8698_s5 + $0x98] sm:$0xf] }
 0x28b   :  { %v5147_v46 = vor.u32 %v5813_v44, %v5146_v43  ;;  %v5878_v44 = vld [vmem:[%s8700_s7 + $0xc4] sm:$0xf] }
 0x28c   :  { %2458 = vmatpush.bf16.msra.mxu3 %v5311_v53  ;;  %v5800_v53 = vld [vmem:[%s8698_s5 + $0x54] sm:$0xf] }
 0x28d   :  { %2435 = vmatpush.bf16.msra.mxu1 %v5143_v45  ;;  %v5412_v45 = vld [vmem:[%s8700_s7 + $0xd0] sm:$0xf0] }
 0x28e   :  { %2417 = vmatpush.bf16.msra.mxu0 %v5267_v54  ;;  %2448 = vmatpush.bf16.msra.mxu2 %v5179_v24  ;;  %v5108_v54 = vld [vmem:[%s8698_s5 + $0x70] sm:$0xf0]  ;;  %v5883_v24 = vld [vmem:[%s8700_s7 + $0xec] sm:$0xf]  ;;  %v7649_v52 = vor.u32 %v5878_v44, %v5412_v45  ;;  %v5858_v44 = vld [vmem:[%s8700_s7 + $0x24] sm:$0xf] }
 0x28f   :  { %v5111_v57 = vor.u32 %v5800_v53, %v5108_v54  ;;  %v7621_v43 = vor.u32 %v5883_v24, %v5436_v61  ;;  %v5394_v53 = vld [vmem:[%s8700_s7 + $0xa0] sm:$0xf]  ;;  %v5876_v54 = vld [vmem:[%s8700_s7 + $0xac] sm:$0xf0]  ;;  %v5332_v45 = vld [vmem:[%s8700_s7 + $0x30] sm:$0xf0] }
 0x290   :  { %v7836_v58 = vor.u32 %v5858_v44, %v5332_v45  ;;  %v5911_v44 = vld [vmem:[%s8701_s8 + $0xcc] sm:$0xf]  ;;  %v5548_v45 = vld [vmem:[%s8701_s8 + $0xd8] sm:$0xf0] }
 0x291   :  { %2436 = vmatpush.bf16.msra.mxu1 %v5111_v57  ;;  %v7661_v57 = vor.u32 %v5879_v49, %v5420_v50  ;;  %v5859_v49 = vld [vmem:[%s8700_s7 + $0x2c] sm:$0xf]  ;;  %v5340_v50 = vld [vmem:[%s8700_s7 + $0x38] sm:$0xf0] }
 0x292   :  { %2418 = vmatpush.bf16.msra.mxu0 %v5235_v7  ;;  %2449 = vmatpush.bf16.msra.mxu2 %v5147_v46  ;;  %v5082_v7 = vld [vmem:[%s8698_s5 + $0x18] sm:$0xf]  ;;  %v5418_v46 = vld [vmem:[%s8700_s7 + $0xc8] sm:$0xf] }
 0x296   :  { %2450 = vmatpush.bf16.msra.mxu2 %v5115_v9  ;;  %v5404_v9 = vld [vmem:[%s8700_s7 + $0xb8] sm:$0xf0] }
 0x29c   :  { %v7263_v29 = vpop.f32.mrf.mxu2 }
 0x2a4   :  { %v1748_v0 = vpop.f32.mrf.mxu2 }
 0x2a5   :  { %v5841_v0 = vld [vmem:[%s8698_s5 + $0x19c] sm:$0xf] }
 0x2a6   :  { %v5279_v15 = vor.u32 %v5841_v0, %v5276_v3 }
 0x2a8   :  { %2459 = vmatpush.bf16.msra.mxu3 %v5279_v15  ;;  %v5116_v15 = vld [vmem:[%s8698_s5 + $0x78] sm:$0xf0] }
 0x2a9   :  { %v5119_v2 = vor.u32 %v5801_v62, %v5116_v15  ;;  %v5402_v62 = vld [vmem:[%s8700_s7 + $0xa8] sm:$0xf]  ;;  %v7683_v15 = vor.u32 %v5876_v54, %v5394_v53  ;;  %v5314_v53 = vld [vmem:[%s8700_s7] sm:$0xf] }
 0x2ac   :  { %v7337_v19 = vpop.f32.mrf.mxu2  ;;  %2460 = vmatpush.bf16.msra.mxu3 %v5247_v16  ;;  %v5079_v16 = vor.u32 %v5792_v4, %v5076_v5  ;;  %v5870_v5 = vld [vmem:[%s8700_s7 + $0x84] sm:$0xf] }
 0x2ae   :  { %2437 = vmatpush.bf16.msra.mxu1 %v5079_v16 }
 0x2b0   :  { %2461 = vmatpush.bf16.msra.mxu3 %v5215_v42 }
 0x2b4   :  { %v1923_v20 = vpop.f32.mrf.mxu2  ;;  %2462 = vmatpush.bf16.msra.mxu3 %v5183_v33 }
 0x2b5   :  { %v5202_v20 = vld [vmem:[%s8698_s5 + $0x110] sm:$0xf] }
 0x2b6   :  { %v5203_v23 = vor.u32 %v5828_v21, %v5202_v20  ;;  %v5083_v20 = vor.u32 %v5797_v10, %v5082_v7  ;;  %v5087_v21 = vor.u32 %v5793_v12, %v5084_v13  ;;  %v5380_v7 = vld [vmem:[%s8700_s7 + $0x90] sm:$0xf0]  ;;  %v5386_v10 = vld [vmem:[%s8700_s7 + $0x88] sm:$0xf]  ;;  %v5873_v12 = vld [vmem:[%s8700_s7 + $0x94] sm:$0xf0] }
 0x2b7   :  { %v5871_v13 = vld [vmem:[%s8700_s7 + $0x8c] sm:$0xf] }
 0x2b8   :  { %2419 = vmatpush.bf16.msra.mxu0 %v5203_v23  ;;  %2463 = vmatpush.bf16.msra.mxu3 %v5151_v51 }
 0x2b9   :  { %2451 = vmatpush.bf16.msra.mxu2 %v5083_v20  ;;  %v7721_v20 = vor.u32 %v5870_v5, %v5380_v7  ;;  %v5855_v5 = vld [vmem:[%s8700_s7 + $0xc] sm:$0xf]  ;;  %v5324_v7 = vld [vmem:[%s8700_s7 + $0x18] sm:$0xf0] }
 0x2bc   :  { %2420 = vmatpush.bf16.msra.mxu0 %v5171_v63  ;;  %2464 = vmatpush.bf16.msra.mxu3 %v5119_v2 }
 0x2c0   :  { %2421 = vmatpush.bf16.msra.mxu0 %v5139_v40  ;;  %2465 = vmatpush.bf16.msra.mxu3 %v5087_v21  ;;  %v5880_v40 = vld [vmem:[%s8700_s7 + $0xcc] sm:$0xf0]  ;;  %v5362_v21 = vld [vmem:[%s8700_s7 + $0x60] sm:$0xf] }
 0x2c1   :  { %v7647_v51 = vor.u32 %v5880_v40, %v5410_v38  ;;  %v5860_v38 = vld [vmem:[%s8700_s7 + $0x2c] sm:$0xf0] }
 0x2c4   :  { %2422 = vmatpush.bf16.msra.mxu0 %v5107_v55  ;;  %v7659_v55 = vor.u32 %v5881_v47, %v5418_v46  ;;  %v5338_v46 = vld [vmem:[%s8700_s7 + $0x28] sm:$0xf]  ;;  %v5861_v47 = vld [vmem:[%s8700_s7 + $0x34] sm:$0xf0] }
 0x2c8   :  { %2423 = vmatpush.bf16.msra.mxu0 %v5075_v14  ;;  %v5388_v14 = vld [vmem:[%s8700_s7 + $0x98] sm:$0xf0] }
 0x2ee   :  { %v1807_v0 = vpop.f32.mrf.mxu3  ;;  %v1892_v3 = vpop.f32.mrf.mxu0 }
 0x2ef   :  { %v1908_v30 = vpop.f32.mrf.mxu1  ;;  %v1808_v25 = vadd.f32 %v1807_v0, %v7263_v29  ;;  %v5426_v29 = vld [vmem:[%s8700_s7 + $0xe0] sm:$0xf]  ;;  %v5877_v0 = vld [vmem:[%s8700_s7 + $0xb4] sm:$0xf0] }
 0x2f0   :  { %v1922_v28 = vadd.f32 %v7337_v19, %v1908_v30  ;;  %v5884_v19 = vld [vmem:[%s8700_s7 + $0xec] sm:$0xf0]  ;;  %v7695_v2 = vor.u32 %v5877_v0, %v5402_v62  ;;  %v5854_v62 = vld [vmem:[%s8700_s7 + $0x4] sm:$0xf]  ;;  %v5316_v0 = vld [vmem:[%s8700_s7 + $0x10] sm:$0xf0] }
 0x2f1   :  { %v1896_v27 = vadd.f32 %v1892_v3, %v1808_v25  ;;  %v7609_v34 = vor.u32 %v5884_v19, %v5426_v29  ;;  %v5875_v3 = vld [vmem:[%s8700_s7 + $0xac] sm:$0xf]  ;;  %v5872_v30 = vld [vmem:[%s8700_s7 + $0x8c] sm:$0xf0]  ;;  %v7733_v25 = vor.u32 %v5871_v13, %v5388_v14  ;;  %v5862_v19 = vld [vmem:[%s8700_s7 + $0x44] sm:$0xf] }
 0x2f2   :  { %v7697_v4 = vor.u32 %v5875_v3, %v5404_v9  ;;  %v7719_v16 = vor.u32 %v5872_v30, %v5378_v17  ;;  %v7849_v3 = vor.u32 %v5861_v47, %v5338_v46  ;;  %v7851_v9 = vor.u32 %v5859_v49, %v5340_v50  ;;  %v5322_v17 = vld [vmem:[%s8700_s7 + $0x8] sm:$0xf]  ;;  %v5857_v30 = vld [vmem:[%s8700_s7 + $0x14] sm:$0xf0]  ;;  %v5914_v13 = vld [vmem:[%s8701_s8 + $0xe4] sm:$0xf] }
 0x2f3   :  { %v1897_v35 = vadd.f32 %v7101_v18, %v1896_v27  ;;  %v5364_v27 = vld [vmem:[%s8700_s7 + $0x70] sm:$0xf0]  ;;  %v5522_v49 = vld [vmem:[%s8701_s8 + $0xa0] sm:$0xf]  ;;  %v5908_v50 = vld [vmem:[%s8701_s8 + $0xac] sm:$0xf0] }
 0x2f4   :  { %v5556_v14 = vld [vmem:[%s8701_s8 + $0xf0] sm:$0xf0] }
 0x2f5   :  { %v1898_v48 = vmax.f32 %v1897_v35, 0.0  ;;  %v5867_v35 = vld [vmem:[%s8700_s7 + $0x6c] sm:$0xf] }
 0x2f6   :  { %v1809_v22 = vpop.f32.mrf.mxu3  ;;  %v1894_v23 = vpop.f32.mrf.mxu0 }
 0x2f7   :  { %v1910_v26 = vpop.f32.mrf.mxu1  ;;  %v5868_v22 = vld [vmem:[%s8700_s7 + $0x6c] sm:$0xf0]  ;;  %v7731_v23 = vor.u32 %v5873_v12, %v5386_v10  ;;  %v5554_v10 = vld [vmem:[%s8701_s8 + $0xe0] sm:$0xf] }
 0x2f8   :  { %v5866_v26 = vld [vmem:[%s8700_s7 + $0x64] sm:$0xf]  ;;  %v5916_v12 = vld [vmem:[%s8701_s8 + $0xec] sm:$0xf0] }
 0x2fe   :  { %v1942_v32 = vpop.f32.mrf.mxu3 }
 0x2ff   :  { %v1946_v36 = vadd.f32 %v1942_v32, %v1922_v28  ;;  %v5370_v28 = vld [vmem:[%s8700_s7 + $0x68] sm:$0xf]  ;;  %v5869_v32 = vld [vmem:[%s8700_s7 + $0x74] sm:$0xf0] }
 0x301   :  { %v1947_v42 = vadd.f32 %v7101_v18, %v1946_v36  ;;  %v5882_v18 = vld [vmem:[%s8700_s7 + $0xe4] sm:$0xf]  ;;  %v5372_v36 = vld [vmem:[%s8700_s7 + $0x78] sm:$0xf0] }
 0x302   :  { %v7611_v37 = vor.u32 %v5882_v18, %v5428_v1  ;;  %v7769_v29 = vor.u32 %v5867_v35, %v5372_v36  ;;  %v5348_v18 = vld [vmem:[%s8700_s7 + $0x50] sm:$0xf0]  ;;  %v5354_v1 = vld [vmem:[%s8700_s7 + $0x48] sm:$0xf]  ;;  %v7897_v35 = vor.u32 %v5857_v30, %v5322_v17  ;;  %v7899_v36 = vor.u32 %v5855_v5, %v5324_v7  ;;  %v5909_v5 = vld [vmem:[%s8701_s8 + $0xb4] sm:$0xf0] }
 0x303   :  { %v1948_v56 = vmax.f32 %v1947_v42, 0.0  ;;  %v7755_v42 = vor.u32 %v5868_v22, %v5362_v21  ;;  %v7797_v61 = vor.u32 %v5862_v19, %v5348_v18  ;;  %v5562_v21 = vld [vmem:[%s8701_s8 + $0xe8] sm:$0xf]  ;;  %v7882_v22 = vor.u32 %v5856_v60, %v5314_v53  ;;  %v5538_v19 = vld [vmem:[%s8701_s8 + $0xc0] sm:$0xf] }
 0x304   :  { %8795 = vst [vmem:[#allocation7_spill] sm:$0xff] %v7897_v35  ;;  %v5912_v18 = vld [vmem:[%s8701_s8 + $0xcc] sm:$0xf0]  ;;  %v7953_v60 = vor.u32 %v5911_v44, %v5548_v45  ;;  %v5530_v17 = vld [vmem:[%s8701_s8 + $0xa8] sm:$0xf]  ;;  %v8705_v30 = vmov 0  }
 0x305   :  { %v1949_v59 = vmax.f32 %v1898_v48, %v1948_v56  ;;  %v7757_v48 = vor.u32 %v5866_v26, %v5364_v27  ;;  %v5346_v56 = vld [vmem:[%s8700_s7 + $0x40] sm:$0xf]  ;;  %v7884_v26 = vor.u32 %v5854_v62, %v5316_v0  ;;  %v5917_v27 = vld [vmem:[%s8701_s8 + $0xf4] sm:$0xf0]  ;;  %8796 = vst [vmem:[#allocation8_spill] sm:$0xff] %v7899_v36  ;;  %v7939_v46 = vor.u32 %v5912_v18, %v5538_v19 }
 0x306   :  { %v1944_v63 = vpop.f32.mrf.mxu3  ;;  %8804 = vst [vmem:[#allocation16_spill] sm:$0xff] %v7953_v60  ;;  %v5906_v62 = vld [vmem:[%s8701_s8 + $0xa4] sm:$0xf]  ;;  %v5524_v0 = vld [vmem:[%s8701_s8 + $0xb0] sm:$0xf0] }
 0x307   :  { %1950 = vst [vmem:[#allocation3 + $0x1] sm:$0x1] %v1949_v59  ;;  %v7767_v63 = vor.u32 %v5869_v32, %v5370_v28  ;;  %v5915_v28 = vld [vmem:[%s8701_s8 + $0xec] sm:$0xf]  ;;  %v5564_v32 = vld [vmem:[%s8701_s8 + $0xf8] sm:$0xf0] }
 0x308   :  { %1951 = vst [vmem:[#allocation3 + $0x2] sm:$0x2] %v1949_v59  ;;  %v5907_v7 = vld [vmem:[%s8701_s8 + $0xac] sm:$0xf]  ;;  %v5508_v19 = vld [vmem:[%s8701_s8 + $0x90] sm:$0xf0] }
 0x309   :  { %1952 = vst [vmem:[#allocation3 + $0x3] sm:$0x4] %v1949_v59  ;;  %v5514_v18 = vld [vmem:[%s8701_s8 + $0x88] sm:$0xf]  ;;  %v5490_v45 = vld [vmem:[%s8701_s8 + $0x60] sm:$0xf] }
 0x30a   :  { %1953 = vst [vmem:[#allocation3 + $0x4] sm:$0x8] %v1949_v59 }
 0x30b   :  { %1954 = vst [vmem:[#allocation3 + $0x5] sm:$0x10] %v1949_v59  ;;  %v5864_v59 = vld [vmem:[%s8700_s7 + $0x4c] sm:$0xf0] }
 0x30c   :  { %v7795_v24 = vor.u32 %v5864_v59, %v5346_v56  ;;  %v7901_v56 = vor.u32 %v5916_v12, %v5554_v10  ;;  %v7903_v59 = vor.u32 %v5914_v13, %v5556_v14  ;;  %8801 = vst [vmem:[#allocation13_spill] sm:$0xff] %v7939_v46  ;;  %v5532_v10 = vld [vmem:[%s8701_s8 + $0xb8] sm:$0xf0]  ;;  %v7979_v12 = vor.u32 %v5908_v50, %v5522_v49  ;;  %v5506_v14 = vld [vmem:[%s8701_s8 + $0x80] sm:$0xf] }
 0x30d   :  { %v7981_v13 = vor.u32 %v5906_v62, %v5524_v0  ;;  %v5900_v49 = vld [vmem:[%s8701_s8 + $0x6c] sm:$0xf0]  ;;  %v5898_v0 = vld [vmem:[%s8701_s8 + $0x64] sm:$0xf] }
 0x30e   :  { %8797 = vst [vmem:[#allocation9_spill] sm:$0xff] %v7901_v56 }
 0x30f   :  { %8798 = vst [vmem:[#allocation10_spill] sm:$0xff] %v7903_v59 }
 0x310   :  { %8805 = vst [vmem:[#allocation17_spill] sm:$0xff] %v7979_v12 }
 0x311   :  { %v1955_v11 = vld [vmem:[#allocation3] sm:$0xff]  ;;  %8806 = vst [vmem:[#allocation18_spill] sm:$0xff] %v7981_v13 }
 0x312   :  { %v1956_v31 = vld [vmem:[#allocation3 + $0x8] sm:$0x3] }
 0x313   :  { %v7607_v33 = vpack.c.bf16 %v1956_v31, %v1955_v11  ;;  %v5356_v11 = vld [vmem:[%s8700_s7 + $0x58] sm:$0xf0]  ;;  %v5330_v31 = vld [vmem:[%s8700_s7 + $0x20] sm:$0xf] }
 0x314   :  { %v7809_v40 = vor.u32 %v5863_v8, %v5356_v11  ;;  %v7834_v54 = vor.u32 %v5860_v38, %v5330_v31  ;;  %v5910_v8 = vld [vmem:[%s8701_s8 + $0xc4] sm:$0xf]  ;;  %v5540_v11 = vld [vmem:[%s8701_s8 + $0xd0] sm:$0xf0]  ;;  %v5546_v31 = vld [vmem:[%s8701_s8 + $0xc8] sm:$0xf] }
 0x315   :  { %2368 = vmatmul.bf16.vlgmr.msrb.gmra.mxu0 %v7607_v33  ;;  %2382 = vmatmul.bf16.vlgmr.msrb.gmra.mxu1 %v7607_v33  ;;  %v5913_v38 = vld [vmem:[%s8701_s8 + $0xd4] sm:$0xf0]  ;;  %v7941_v47 = vor.u32 %v5910_v8, %v5540_v11  ;;  %v5903_v11 = vld [vmem:[%s8701_s8 + $0x8c] sm:$0xf] }
 0x316   :  { %2396 = vmatmul.bf16.vlgmr.msrb.gmra.mxu2 %v7607_v33  ;;  %2410 = vmatmul.bf16.vlgmr.msrb.gmra.mxu3 %v7607_v33  ;;  %v7951_v53 = vor.u32 %v5913_v38, %v5546_v31  ;;  %v5905_v8 = vld [vmem:[%s8701_s8 + $0x94] sm:$0xf0]  ;;  %v5516_v31 = vld [vmem:[%s8701_s8 + $0x98] sm:$0xf0] }
 0x317   :  { %2664 = vmatpush.bf16.msrb.mxu0 %v7609_v34  ;;  %2677 = vmatpush.bf16.msrb.mxu1 %v7611_v37  ;;  %8802 = vst [vmem:[#allocation14_spill] sm:$0xff] %v7941_v47  ;;  %v8027_v50 = vor.u32 %v5905_v8, %v5514_v18  ;;  %v8029_v62 = vor.u32 %v5903_v11, %v5516_v31  ;;  %v5896_v18 = vld [vmem:[%s8701_s8 + $0x4c] sm:$0xf0]  ;;  %v5894_v31 = vld [vmem:[%s8701_s8 + $0x44] sm:$0xf] }
 0x318   :  { %2690 = vmatpush.bf16.msrb.mxu2 %v7619_v41  ;;  %2703 = vmatpush.bf16.msrb.mxu3 %v7621_v43  ;;  %8803 = vst [vmem:[#allocation15_spill] sm:$0xff] %v7951_v53 }
 0x319   :  { %8811 = vst [vmem:[#allocation23_spill] sm:$0xff] %v8027_v50 }
 0x31a   :  { %8812 = vst [vmem:[#allocation24_spill] sm:$0xff] %v8029_v62 }
 0x31b   :  { %2665 = vmatpush.bf16.msrb.mxu0 %v7647_v51  ;;  %2678 = vmatpush.bf16.msrb.mxu1 %v7649_v52 }
 0x31c   :  { %2691 = vmatpush.bf16.msrb.mxu2 %v7659_v55  ;;  %2704 = vmatpush.bf16.msrb.mxu3 %v7661_v57 }
 0x31f   :  { %2666 = vmatpush.bf16.msrb.mxu0 %v7683_v15  ;;  %2679 = vmatpush.bf16.msrb.mxu1 %v7685_v39 }
 0x320   :  { %2692 = vmatpush.bf16.msrb.mxu2 %v7695_v2  ;;  %2705 = vmatpush.bf16.msrb.mxu3 %v7697_v4 }
 0x323   :  { %2667 = vmatpush.bf16.msrb.mxu0 %v7719_v16  ;;  %2680 = vmatpush.bf16.msrb.mxu1 %v7721_v20 }
 0x324   :  { %2693 = vmatpush.bf16.msrb.mxu2 %v7731_v23  ;;  %2706 = vmatpush.bf16.msrb.mxu3 %v7733_v25 }
 0x325   :  { %2424 = vmatmul.bf16.vlgmr.msra.gmra.mxu0 %v7607_v33  ;;  %2438 = vmatmul.bf16.vlgmr.msra.gmra.mxu1 %v7607_v33 }
 0x326   :  { %2452 = vmatmul.bf16.vlgmr.msra.gmra.mxu2 %v7607_v33  ;;  %2466 = vmatmul.bf16.vlgmr.msra.gmra.mxu3 %v7607_v33  ;;  %v7807_v33 = vor.u32 %v5865_v6, %v5354_v1  ;;  %v7911_v1 = vor.u32 %v5917_v27, %v5562_v21  ;;  %v7913_v6 = vor.u32 %v5915_v28, %v5564_v32  ;;  %v5904_v21 = vld [vmem:[%s8701_s8 + $0x8c] sm:$0xf0]  ;;  %v5902_v32 = vld [vmem:[%s8701_s8 + $0x84] sm:$0xf] }
 0x327   :  { %2668 = vmatpush.bf16.msrb.mxu0 %v7755_v42  ;;  %2681 = vmatpush.bf16.msrb.mxu1 %v7757_v48  ;;  %v7991_v27 = vor.u32 %v5909_v5, %v5530_v17  ;;  %v7993_v28 = vor.u32 %v5907_v7, %v5532_v10  ;;  %v8015_v38 = vor.u32 %v5904_v21, %v5506_v14  ;;  %v5492_v17 = vld [vmem:[%s8701_s8 + $0x70] sm:$0xf0]  ;;  %v5498_v5 = vld [vmem:[%s8701_s8 + $0x68] sm:$0xf]  ;;  %v5901_v7 = vld [vmem:[%s8701_s8 + $0x74] sm:$0xf0] }
 0x328   :  { %2694 = vmatpush.bf16.msrb.mxu2 %v7767_v63  ;;  %2707 = vmatpush.bf16.msrb.mxu3 %v7769_v29  ;;  %8799 = vst [vmem:[#allocation11_spill] sm:$0xff] %v7911_v1  ;;  %v8017_v44 = vor.u32 %v5902_v32, %v5508_v19  ;;  %v5899_v10 = vld [vmem:[%s8701_s8 + $0x6c] sm:$0xf]  ;;  %v5500_v14 = vld [vmem:[%s8701_s8 + $0x78] sm:$0xf0]  ;;  %v8051_v21 = vor.u32 %v5900_v49, %v5490_v45 }
 0x329   :  { %8800 = vst [vmem:[#allocation12_spill] sm:$0xff] %v7913_v6  ;;  %v8053_v32 = vor.u32 %v5898_v0, %v5492_v17  ;;  %v5474_v19 = vld [vmem:[%s8701_s8 + $0x40] sm:$0xf]  ;;  %v8063_v8 = vor.u32 %v5901_v7, %v5498_v5  ;;  %v8065_v11 = vor.u32 %v5899_v10, %v5500_v14  ;;  %v5476_v45 = vld [vmem:[%s8701_s8 + $0x50] sm:$0xf0] }
 0x32a   :  { %8807 = vst [vmem:[#allocation19_spill] sm:$0xff] %v7991_v27  ;;  %v5482_v49 = vld [vmem:[%s8701_s8 + $0x48] sm:$0xf]  ;;  %v5897_v0 = vld [vmem:[%s8701_s8 + $0x54] sm:$0xf0]  ;;  %v8087_v7 = vor.u32 %v5896_v18, %v5474_v19  ;;  %v8089_v10 = vor.u32 %v5894_v31, %v5476_v45 }
 0x32b   :  { %2669 = vmatpush.bf16.msrb.mxu0 %v7795_v24  ;;  %2682 = vmatpush.bf16.msrb.mxu1 %v7797_v61  ;;  %8808 = vst [vmem:[#allocation20_spill] sm:$0xff] %v7993_v28  ;;  %v5895_v17 = vld [vmem:[%s8701_s8 + $0x4c] sm:$0xf]  ;;  %v5484_v5 = vld [vmem:[%s8701_s8 + $0x58] sm:$0xf0] }
 0x32c   :  { %2695 = vmatpush.bf16.msrb.mxu2 %v7807_v33  ;;  %2708 = vmatpush.bf16.msrb.mxu3 %v7809_v40  ;;  %8809 = vst [vmem:[#allocation21_spill] sm:$0xff] %v8015_v38  ;;  %v5458_v14 = vld [vmem:[%s8701_s8 + $0x20] sm:$0xf]  ;;  %v5890_v19 = vld [vmem:[%s8701_s8 + $0x24] sm:$0xf] }
 0x32d   :  { %8810 = vst [vmem:[#allocation22_spill] sm:$0xff] %v8017_v44  ;;  %v5460_v18 = vld [vmem:[%s8701_s8 + $0x30] sm:$0xf0]  ;;  %v5466_v31 = vld [vmem:[%s8701_s8 + $0x28] sm:$0xf] }
 0x32e   :  { %8813 = vst [vmem:[#allocation25_spill] sm:$0xff] %v8051_v21  ;;  %v5893_v45 = vld [vmem:[%s8701_s8 + $0x34] sm:$0xf0] }
 0x32f   :  { %2670 = vmatpush.bf16.msrb.mxu0 %v7834_v54  ;;  %2683 = vmatpush.bf16.msrb.mxu1 %v7836_v58  ;;  %8814 = vst [vmem:[#allocation26_spill] sm:$0xff] %v8053_v32 }
 0x330   :  { %2696 = vmatpush.bf16.msrb.mxu2 %v7849_v3  ;;  %2709 = vmatpush.bf16.msrb.mxu3 %v7851_v9  ;;  %8815 = vst [vmem:[#allocation27_spill] sm:$0xff] %v8063_v8 }
 0x331   :  { %8816 = vst [vmem:[#allocation28_spill] sm:$0xff] %v8065_v11 }
 0x332   :  { %8817 = vst [vmem:[#allocation29_spill] sm:$0xff] %v8087_v7 }
 0x333   :  { %2671 = vmatpush.bf16.msrb.mxu0 %v7882_v22  ;;  %2684 = vmatpush.bf16.msrb.mxu1 %v7884_v26  ;;  %8818 = vst [vmem:[#allocation30_spill] sm:$0xff] %v8089_v10 }
 0x334   :  { %2697 = vmatpush.bf16.msrb.mxu2 %v7897_v35  ;;  %2710 = vmatpush.bf16.msrb.mxu3 %v7899_v36 }
 0x336   :  { %2672 = vmatmul.bf16.vlgmr.msrb.gmra.mxu0 %v8705_v30  ;;  %2685 = vmatmul.bf16.vlgmr.msrb.gmra.mxu1 %v8705_v30 }
 0x337   :  { %2912 = vmatpush.bf16.msra.mxu0 %v7901_v56  ;;  %2925 = vmatpush.bf16.msra.mxu1 %v7903_v59 }
 0x338   :  { %2938 = vmatpush.bf16.msra.mxu2 %v7911_v1  ;;  %2951 = vmatpush.bf16.msra.mxu3 %v7913_v6 }
 0x339   :  { %2698 = vmatmul.bf16.vlgmr.msrb.gmra.mxu2 %v8705_v30  ;;  %2711 = vmatmul.bf16.vlgmr.msrb.gmra.mxu3 %v8705_v30  ;;  %v5892_v30 = vld [vmem:[%s8701_s8 + $0x2c] sm:$0xf0] }
 0x33b   :  { %2913 = vmatpush.bf16.msra.mxu0 %v7939_v46  ;;  %2926 = vmatpush.bf16.msra.mxu1 %v7941_v47 }
 0x33c   :  { %2939 = vmatpush.bf16.msra.mxu2 %v7951_v53  ;;  %2952 = vmatpush.bf16.msra.mxu3 %v7953_v60 }
 0x33f   :  { %2914 = vmatpush.bf16.msra.mxu0 %v7979_v12  ;;  %2927 = vmatpush.bf16.msra.mxu1 %v7981_v13 }
 0x340   :  { %2940 = vmatpush.bf16.msra.mxu2 %v7991_v27  ;;  %2953 = vmatpush.bf16.msra.mxu3 %v7993_v28 }
 0x343   :  { %2915 = vmatpush.bf16.msra.mxu0 %v8015_v38  ;;  %2928 = vmatpush.bf16.msra.mxu1 %v8017_v44 }
 0x344   :  { %2941 = vmatpush.bf16.msra.mxu2 %v8027_v50  ;;  %2954 = vmatpush.bf16.msra.mxu3 %v8029_v62  ;;  %v8099_v62 = vor.u32 %v5897_v0, %v5482_v49  ;;  %v5891_v49 = vld [vmem:[%s8701_s8 + $0x2c] sm:$0xf]  ;;  %v5468_v0 = vld [vmem:[%s8701_s8 + $0x38] sm:$0xf0] }
 0x346   :  { %8819 = vst [vmem:[#allocation31_spill] sm:$0xff] %v8099_v62 }
 0x347   :  { %2916 = vmatpush.bf16.msra.mxu0 %v8051_v21  ;;  %2929 = vmatpush.bf16.msra.mxu1 %v8053_v32  ;;  %v8101_v21 = vor.u32 %v5895_v17, %v5484_v5  ;;  %v8123_v17 = vor.u32 %v5892_v30, %v5458_v14  ;;  %v8125_v5 = vor.u32 %v5890_v19, %v5460_v18  ;;  %v5886_v30 = vld [vmem:[%s8701_s8 + $0x4] sm:$0xf]  ;;  %v5444_v14 = vld [vmem:[%s8701_s8 + $0x10] sm:$0xf0]  ;;  %v5450_v19 = vld [vmem:[%s8701_s8 + $0x8] sm:$0xf] }
 0x348   :  { %2942 = vmatpush.bf16.msra.mxu2 %v8063_v8  ;;  %2955 = vmatpush.bf16.msra.mxu3 %v8065_v11  ;;  %v5442_v11 = vld [vmem:[%s8701_s8] sm:$0xf]  ;;  %v5888_v8 = vld [vmem:[%s8701_s8 + $0xc] sm:$0xf0]  ;;  %v8135_v32 = vor.u32 %v5893_v45, %v5466_v31  ;;  %v5889_v18 = vld [vmem:[%s8701_s8 + $0x14] sm:$0xf0] }
 0x349   :  { %8820 = vst [vmem:[#allocation32_spill] sm:$0xff] %v8101_v21  ;;  %v5887_v31 = vld [vmem:[%s8701_s8 + $0xc] sm:$0xf]  ;;  %v5452_v45 = vld [vmem:[%s8701_s8 + $0x18] sm:$0xf0] }
 0x34a   :  { %8821 = vst [vmem:[#allocation33_spill] sm:$0xff] %v8123_v17 }
 0x34b   :  { %2917 = vmatpush.bf16.msra.mxu0 %v8087_v7  ;;  %2930 = vmatpush.bf16.msra.mxu1 %v8089_v10  ;;  %8822 = vst [vmem:[#allocation34_spill] sm:$0xff] %v8125_v5  ;;  %v8137_v7 = vor.u32 %v5891_v49, %v5468_v0  ;;  %v8159_v49 = vor.u32 %v5888_v8, %v5442_v11  ;;  %v8829_v8 = vmov 0   ;;  %v8830_v11 = vld [vmem:[#allocation24_spill] sm:$0xff] }
 0x34c   :  { %2943 = vmatpush.bf16.msra.mxu2 %v8099_v62  ;;  %2956 = vmatpush.bf16.msra.mxu3 %v8101_v21  ;;  %8823 = vst [vmem:[#allocation35_spill] sm:$0xff] %v8135_v32  ;;  %v8161_v0 = vor.u32 %v5886_v30, %v5444_v14  ;;  %v8165_v21 = vor.u32 %v5889_v18, %v5450_v19  ;;  %v8831_v30 = vld [vmem:[#allocation25_spill] sm:$0xff]  ;;  %v8832_v14 = vld [vmem:[#allocation26_spill] sm:$0xff]  ;;  %v8833_v19 = vld [vmem:[#allocation27_spill] sm:$0xff] }
 0x34d   :  { %8824 = vst [vmem:[#allocation36_spill] sm:$0xff] %v8137_v7  ;;  %v8167_v62 = vor.u32 %v5887_v31, %v5452_v45  ;;  %v8834_v18 = vld [vmem:[#allocation28_spill] sm:$0xff]  ;;  %v8835_v31 = vld [vmem:[#allocation29_spill] sm:$0xff]  ;;  %v8836_v45 = vld [vmem:[#allocation31_spill] sm:$0xff] }
 0x34e   :  { %8825 = vst [vmem:[#allocation37_spill] sm:$0xff] %v8159_v49 }
 0x34f   :  { %2918 = vmatpush.bf16.msra.mxu0 %v8123_v17  ;;  %2931 = vmatpush.bf16.msra.mxu1 %v8125_v5  ;;  %8826 = vst [vmem:[#allocation38_spill] sm:$0xff] %v8161_v0 }
 0x350   :  { %2944 = vmatpush.bf16.msra.mxu2 %v8135_v32  ;;  %2957 = vmatpush.bf16.msra.mxu3 %v8137_v7  ;;  %8827 = vst [vmem:[#allocation39_spill] sm:$0xff] %v8165_v21 }
 0x351   :  { %8828 = vst [vmem:[#allocation40_spill] sm:$0xff] %v8167_v62 }
 0x353   :  { %2919 = vmatpush.bf16.msra.mxu0 %v8159_v49  ;;  %2932 = vmatpush.bf16.msra.mxu1 %v8161_v0 }
 0x354   :  { %2945 = vmatpush.bf16.msra.mxu2 %v8165_v21  ;;  %2958 = vmatpush.bf16.msra.mxu3 %v8167_v62 }
 0x356   :  { %2920 = vmatmul.bf16.vlgmr.msra.gmra.mxu0 %v8829_v8  ;;  %2933 = vmatmul.bf16.vlgmr.msra.gmra.mxu1 %v8829_v8 }
 0x357   :  { %3095 = vmatpush.bf16.msrb.mxu0 %v7609_v34  ;;  %3108 = vmatpush.bf16.msrb.mxu1 %v7611_v37 }
 0x358   :  { %2946 = vmatmul.bf16.vlgmr.msra.gmra.mxu2 %v8829_v8  ;;  %2959 = vmatmul.bf16.vlgmr.msra.gmra.mxu3 %v8829_v8  ;;  %v8837_v8 = vld [vmem:[#allocation32_spill] sm:$0xff] }
 0x359   :  { %3121 = vmatpush.bf16.msrb.mxu2 %v7619_v41  ;;  %3134 = vmatpush.bf16.msrb.mxu3 %v7621_v43 }
 0x35b   :  { %3096 = vmatpush.bf16.msrb.mxu0 %v7647_v51  ;;  %3109 = vmatpush.bf16.msrb.mxu1 %v7649_v52 }
 0x35d   :  { %3122 = vmatpush.bf16.msrb.mxu2 %v7659_v55  ;;  %3135 = vmatpush.bf16.msrb.mxu3 %v7661_v57 }
 0x35f   :  { %3097 = vmatpush.bf16.msrb.mxu0 %v7683_v15  ;;  %3110 = vmatpush.bf16.msrb.mxu1 %v7685_v39 }
 0x361   :  { %3123 = vmatpush.bf16.msrb.mxu2 %v7695_v2  ;;  %3136 = vmatpush.bf16.msrb.mxu3 %v7697_v4 }
 0x363   :  { %3098 = vmatpush.bf16.msrb.mxu0 %v7719_v16  ;;  %3111 = vmatpush.bf16.msrb.mxu1 %v7721_v20 }
 0x365   :  { %3124 = vmatpush.bf16.msrb.mxu2 %v7731_v23  ;;  %3137 = vmatpush.bf16.msrb.mxu3 %v7733_v25 }
 0x367   :  { %3099 = vmatpush.bf16.msrb.mxu0 %v7755_v42  ;;  %3112 = vmatpush.bf16.msrb.mxu1 %v7757_v48 }
 0x369   :  { %3125 = vmatpush.bf16.msrb.mxu2 %v7767_v63  ;;  %3138 = vmatpush.bf16.msrb.mxu3 %v7769_v29 }
 0x36b   :  { %3100 = vmatpush.bf16.msrb.mxu0 %v7795_v24  ;;  %3113 = vmatpush.bf16.msrb.mxu1 %v7797_v61 }
 0x36d   :  { %3126 = vmatpush.bf16.msrb.mxu2 %v7807_v33  ;;  %3139 = vmatpush.bf16.msrb.mxu3 %v7809_v40 }
 0x36f   :  { %3101 = vmatpush.bf16.msrb.mxu0 %v7834_v54  ;;  %3114 = vmatpush.bf16.msrb.mxu1 %v7836_v58 }
 0x371   :  { %3127 = vmatpush.bf16.msrb.mxu2 %v7849_v3  ;;  %3140 = vmatpush.bf16.msrb.mxu3 %v7851_v9 }
 0x373   :  { %3102 = vmatpush.bf16.msrb.mxu0 %v7882_v22  ;;  %3115 = vmatpush.bf16.msrb.mxu1 %v7884_v26 }
 0x375   :  { %3128 = vmatpush.bf16.msrb.mxu2 %v7897_v35  ;;  %3141 = vmatpush.bf16.msrb.mxu3 %v7899_v36 }
 0x377   :  { %3164 = vmatpush.bf16.msra.mxu0 %v7901_v56  ;;  %3177 = vmatpush.bf16.msra.mxu1 %v7903_v59 }
 0x379   :  { %3190 = vmatpush.bf16.msra.mxu2 %v7911_v1  ;;  %3203 = vmatpush.bf16.msra.mxu3 %v7913_v6 }
 0x37b   :  { %3165 = vmatpush.bf16.msra.mxu0 %v7939_v46  ;;  %3178 = vmatpush.bf16.msra.mxu1 %v7941_v47 }
 0x37d   :  { %3191 = vmatpush.bf16.msra.mxu2 %v7951_v53  ;;  %3204 = vmatpush.bf16.msra.mxu3 %v7953_v60 }
 0x37f   :  { %3166 = vmatpush.bf16.msra.mxu0 %v7979_v12  ;;  %3179 = vmatpush.bf16.msra.mxu1 %v7981_v13 }
 0x381   :  { %3192 = vmatpush.bf16.msra.mxu2 %v7991_v27  ;;  %3205 = vmatpush.bf16.msra.mxu3 %v7993_v28 }
 0x383   :  { %3167 = vmatpush.bf16.msra.mxu0 %v8015_v38  ;;  %3180 = vmatpush.bf16.msra.mxu1 %v8017_v44 }
 0x385   :  { %3193 = vmatpush.bf16.msra.mxu2 %v8027_v50  ;;  %3206 = vmatpush.bf16.msra.mxu3 %v8830_v11 }
 0x387   :  { %3168 = vmatpush.bf16.msra.mxu0 %v8831_v30  ;;  %3181 = vmatpush.bf16.msra.mxu1 %v8832_v14 }
 0x389   :  { %3194 = vmatpush.bf16.msra.mxu2 %v8833_v19  ;;  %3207 = vmatpush.bf16.msra.mxu3 %v8834_v18 }
 0x38b   :  { %3169 = vmatpush.bf16.msra.mxu0 %v8835_v31  ;;  %3182 = vmatpush.bf16.msra.mxu1 %v8089_v10 }
 0x38d   :  { %3195 = vmatpush.bf16.msra.mxu2 %v8836_v45  ;;  %3208 = vmatpush.bf16.msra.mxu3 %v8837_v8 }
 0x38f   :  { %3170 = vmatpush.bf16.msra.mxu0 %v8123_v17  ;;  %3183 = vmatpush.bf16.msra.mxu1 %v8125_v5 }
 0x391   :  { %3196 = vmatpush.bf16.msra.mxu2 %v8135_v32  ;;  %3209 = vmatpush.bf16.msra.mxu3 %v8137_v7  ;;  %v8248_v7 = vld [vmem:[%s8699_s6] sm:$0xff] }
 0x392   :  { %v2369_v10 = vpop.f32.mrf.mxu0  ;;  %v2383_v45 = vpop.f32.mrf.mxu1  ;;  %8840 = vst [vmem:[#allocation43_spill] sm:$0xff] %v8248_v7  ;;  %v8752_v50 = vperm.slane %v8248_v7, 6  ;;  %v8753_v44 = vperm.slane %v8248_v7, 7 }
 0x393   :  { %3171 = vmatpush.bf16.msra.mxu0 %v8159_v49  ;;  %3184 = vmatpush.bf16.msra.mxu1 %v8161_v0  ;;  %v8749_v49 = vperm.slane %v8248_v7, 4  ;;  %v8750_v0 = vperm.slane %v8248_v7, 5 }
 0x395   :  { %3197 = vmatpush.bf16.msra.mxu2 %v8165_v21  ;;  %3210 = vmatpush.bf16.msra.mxu3 %v8167_v62  ;;  %v2026_v21 = vperm.slane %v8248_v7, 2  ;;  %v2027_v62 = vperm.slane %v8248_v7, 3 }
 0x399   :  { %v2397_v31 = vpop.f32.mrf.mxu2  ;;  %v2411_v8 = vpop.f32.mrf.mxu3 }
 0x39a   :  { %v8241_v18 = vpop.f32.mrf.mxu0  ;;  %v8243_v17 = vpop.f32.mrf.mxu1  ;;  %v8292_v27 = vadd.f32 %v2411_v8, %v2027_v62 }
 0x39b   :  { %8838 = vst [vmem:[#allocation41_spill] sm:$0xff] %v8241_v18 }
 0x39c   :  { %8839 = vst [vmem:[#allocation42_spill] sm:$0xff] %v8243_v17 }
 0x39d   :  { %8849 = vst [vmem:[#allocation52_spill] sm:$0xff] %v8292_v27 }
 0x3a1   :  { %v2399_v32 = vpop.f32.mrf.mxu2  ;;  %v2413_v5 = vpop.f32.mrf.mxu3 }
 0x3a2   :  { %v8254_v19 = vadd.f32 %v2399_v32, %v2026_v21  ;;  %v8256_v18 = vadd.f32 %v2413_v5, %v2027_v62  ;;  %v2425_v17 = vpop.f32.mrf.mxu0  ;;  %v2439_v14 = vpop.f32.mrf.mxu1  ;;  %v8295_v62 = vadd.f32 %v2397_v31, %v2026_v21 }
 0x3a3   :  { %v8260_v30 = vadd.f32 %v2425_v17, %v8749_v49  ;;  %v8264_v11 = vadd.f32 %v2439_v14, %v8750_v0  ;;  %v8766_v14 = vperm.slane %v8248_v7, 1 }
 0x3a4   :  { %8841 = vst [vmem:[#allocation44_spill] sm:$0xff] %v8254_v19  ;;  %v8763_v19 = vperm.slane %v8248_v7, 0 }
 0x3a5   :  { %8842 = vst [vmem:[#allocation45_spill] sm:$0xff] %v8256_v18 }
 0x3a6   :  { %8843 = vst [vmem:[#allocation46_spill] sm:$0xff] %v8260_v30 }
 0x3a7   :  { %8844 = vst [vmem:[#allocation47_spill] sm:$0xff] %v8264_v11  ;;  %v8284_v11 = vadd.f32 %v2369_v10, %v8763_v19 }
 0x3a8   :  { %8850 = vst [vmem:[#allocation53_spill] sm:$0xff] %v8295_v62 }
 0x3a9   :  { %v2453_v38 = vpop.f32.mrf.mxu2  ;;  %v2467_v28 = vpop.f32.mrf.mxu3  ;;  %8847 = vst [vmem:[#allocation50_spill] sm:$0xff] %v8284_v11 }
 0x3aa   :  { %v8270_v32 = vadd.f32 %v2453_v38, %v8752_v50  ;;  %v8274_v5 = vadd.f32 %v2467_v28, %v8753_v44  ;;  %v2427_v17 = vpop.f32.mrf.mxu0  ;;  %v2441_v49 = vpop.f32.mrf.mxu1  ;;  %v8288_v38 = vadd.f32 %v2383_v45, %v8766_v14 }
 0x3ac   :  { %8845 = vst [vmem:[#allocation48_spill] sm:$0xff] %v8270_v32 }
 0x3ad   :  { %8846 = vst [vmem:[#allocation49_spill] sm:$0xff] %v8274_v5 }
 0x3ae   :  { %8848 = vst [vmem:[#allocation51_spill] sm:$0xff] %v8288_v38 }
 0x3b1   :  { %v8278_v0 = vpop.f32.mrf.mxu2  ;;  %v8280_v18 = vpop.f32.mrf.mxu3 }
 0x3b3   :  { %v2673_v28 = vpop.f32.mrf.mxu0  ;;  %v2686_v50 = vpop.f32.mrf.mxu1 }
 0x3b4   :  { %v2716_v44 = vadd.f32 %v2673_v28, %v8284_v11  ;;  %v2717_v32 = vadd.f32 %v2686_v50, %v8288_v38 }
 0x3b6   :  { %v5568_v5 = vmul.f32 -1.442695, %v2716_v44  ;;  %v5569_v30 = vmul.f32 -1.442695, %v2717_v32 }
 0x3b8   :  { %5940 = vpow2.f32 %v5568_v5 }
 0x3b9   :  { %5942 = vpow2.f32 %v5569_v30 }
 0x3bb   :  { %v2675_v19 = vpop.f32.mrf.mxu0  ;;  %v2688_v60 = vpop.f32.mrf.mxu1 }
 0x3bc   :  { %v2699_v13 = vpop.f32.mrf.mxu2  ;;  %v2712_v12 = vpop.f32.mrf.mxu3 }
 0x3bd   :  { %v2719_v10 = vadd.f32 %v2712_v12, %v8292_v27  ;;  %v2718_v12 = vadd.f32 %v2699_v13, %v8295_v62  ;;  %v8851_v27 = vperm.slane %v8248_v7, 4  ;;  %v8852_v62 = vperm.slane %v8248_v7, 5 }
 0x3be   :  { %v5941_v14 = vpop.eup %5940 }
 0x3bf   :  { %v5570_v45 = vmul.f32 -1.442695, %v2719_v10  ;;  %v5943_v53 = vpop.eup %5942  ;;  %v2971_v47 = vadd.f32 1.0, %v5941_v14  ;;  %v2428_v13 = vadd.f32 %v2427_v17, %v8851_v27  ;;  %v2442_v38 = vadd.f32 %v2441_v49, %v8852_v62 }
 0x3c0   :  { %v2990_v28 = vadd.f32 1.0, %v5943_v53 }
 0x3c1   :  { %5944 = vpow2.f32 %v5570_v45  ;;  %v2981_v53 = vand.u32 2147483647, %v2971_v47  ;;  %v2983_v45 = vand.u32 2147483648, %v2971_v47  ;;  %vm2977_vm2 = vweird.f32 %v2971_v47 }
 0x3c2   :  { %5946 = vrcp.f32 %v2971_v47  ;;  %v3000_v21 = vand.u32 2147483647, %v2990_v28  ;;  %vm2996_vm3 = vweird.f32 %v2990_v28 }
 0x3c3   :  { %5948 = vrcp.f32 %v2990_v28  ;;  %vm2982_vm5 = vcmp.eq.f32.partialorder %v2981_v53, 8.507059e+37 }
 0x3c4   :  { %v2714_v44 = vpop.f32.mrf.mxu3  ;;  %v2701_v50 = vpop.f32.mrf.mxu2  ;;  %vm3001_vm7 = vcmp.eq.f32.partialorder %v3000_v21, 8.507059e+37 }
 0x3c5   :  { %v3002_v44 = vand.u32 2147483648, %v2990_v28 }
 0x3c7   :  { %v5945_v32 = vpop.eup %5944 }
 0x3c8   :  { %v8297_v30 = vadd.f32 1.0, %v5945_v32  ;;  %v5947_v8 = vpop.eup %5946 }
 0x3c9   :  { %v5949_v19 = vpop.eup %5948  ;;  %v2973_v60 = vmul.f32 %v5947_v8, %v2971_v47  ;;  %vm2978_vm0 = vweird.f32 %v5947_v8 }
 0x3ca   :  { %5950 = vrcp.f32 %v8297_v30  ;;  %v2992_v5 = vmul.f32 %v5949_v19, %v2990_v28  ;;  %vm2997_vm1 = vweird.f32 %v5949_v19  ;;  %vm2979_vm4 = vmor %vm2977_vm2, %vm2978_vm0  ;;  %vm3016_vm9 = vweird.f32 %v8297_v30 }
 0x3cb   :  { %v2974_v14 = vsub.f32 1.0, %v2973_v60  ;;  %5952 = vtanh.f32 %v2718_v12  ;;  %v2984_v60 = vor.u32 1.1754944e-38, %v2983_v45  ;;  %vm2998_vm6 = vmor %vm2996_vm3, %vm2997_vm1 }
 0x3cc   :  { %v2993_v10 = vsub.f32 1.0, %v2992_v5 }
 0x3cd   :  { %v2975_v50 = vmul.f32 %v5947_v8, %v2974_v14  ;;  %v3003_v14 = vor.u32 1.1754944e-38, %v3002_v44  ;;  %v3020_v44 = vand.u32 2147483647, %v8297_v30 }
 0x3ce   :  { %v2994_v31 = vmul.f32 %v5949_v19, %v2993_v10 }
 0x3cf   :  { %v2976_v11 = vadd.f32 %v5947_v8, %v2975_v50  ;;  %vm3021_vm11 = vcmp.eq.f32.partialorder %v3020_v44, 8.507059e+37 }
 0x3d0   :  { %v5951_v32 = vpop.eup %5950  ;;  %v2995_v5 = vadd.f32 %v5949_v19, %v2994_v31 }
 0x3d1   :  { %v3012_v12 = vmul.f32 %v5951_v32, %v8297_v30  ;;  %v2980_v46 = vsel %vm2979_vm4, %v5947_v8, %v2976_v11  ;;  %v5953_v1 = vpop.eup %5952  ;;  %v8853_v11 = vperm.slane %v8248_v7, 7  ;;  %vm3017_vm8 = vweird.f32 %v5951_v32 }
 0x3d2   :  { %v2985_v27 = vsel %vm2982_vm5, %v2984_v60, %v2980_v46  ;;  %v2999_v17 = vsel %vm2998_vm6, %v5949_v19, %v2995_v5  ;;  %vm3018_vm10 = vmor %vm3016_vm9, %vm3017_vm8 }
 0x3d3   :  { %v2921_v10 = vpop.f32.mrf.mxu0  ;;  %v2934_v6 = vpop.f32.mrf.mxu1  ;;  %v3013_v36 = vsub.f32 1.0, %v3012_v12  ;;  %v3004_v62 = vsel %vm3001_vm7, %v3003_v14, %v2999_v17  ;;  %v3027_v47 = vmul.f32 %v5953_v1, %v2985_v27  ;;  %v2470_v8 = vadd.f32 %v8280_v18, %v8853_v11 }
 0x3d4   :  { %v2964_v49 = vadd.f32 %v2921_v10, %v2428_v13  ;;  %v2965_v28 = vadd.f32 %v2934_v6, %v2442_v38  ;;  %v3026_v50 = vmul.f32 0.0, %v3004_v62 }
 0x3d5   :  { %v3014_v31 = vmul.f32 %v5951_v32, %v3013_v36  ;;  %v3022_v36 = vand.u32 2147483648, %v8297_v30  ;;  %v8854_v30 = vperm.slane %v8248_v7, 6  ;;  %v8885_v7 = vld [vmem:[#allocation38_spill] sm:$0xff] }
 0x3d6   :  { %v5571_v45 = vmul.f32 -1.442695, %v2964_v49  ;;  %v5572_v35 = vmul.f32 -1.442695, %v2965_v28  ;;  %v8306_v59 = vadd.f32 %v3027_v47, %v3026_v50 }
 0x3d7   :  { %v3015_v38 = vadd.f32 %v5951_v32, %v3014_v31  ;;  %v3023_v12 = vor.u32 1.1754944e-38, %v3022_v36  ;;  %v2456_v47 = vadd.f32 %v8278_v0, %v8854_v30 }
 0x3d8   :  { %5954 = vpow2.f32 %v5571_v45 }
 0x3d9   :  { %5956 = vpow2.f32 %v5572_v35  ;;  %v3019_v60 = vsel %vm3018_vm10, %v5951_v32, %v3015_v38 }
 0x3da   :  { %5958 = vtanh.f32 %v8306_v59  ;;  %v3024_v27 = vsel %vm3021_vm11, %v3023_v12, %v3019_v60 }
 0x3db   :  { %v2947_v46 = vpop.f32.mrf.mxu2  ;;  %v2960_v19 = vpop.f32.mrf.mxu3 }
 0x3dc   :  { %v2967_v53 = vadd.f32 %v2960_v19, %v2470_v8  ;;  %v2923_v1 = vpop.f32.mrf.mxu0  ;;  %v2936_v6 = vpop.f32.mrf.mxu1  ;;  %v2966_v32 = vadd.f32 %v2947_v46, %v2456_v47 }
 0x3de   :  { %v5573_v21 = vmul.f32 -1.442695, %v2967_v53  ;;  %v5955_v13 = vpop.eup %5954 }
 0x3df   :  { %v5957_v18 = vpop.eup %5956  ;;  %v3034_v35 = vadd.f32 1.0, %v5955_v13 }
 0x3e0   :  { %5960 = vpow2.f32 %v5573_v21  ;;  %v5959_v5 = vpop.eup %5958  ;;  %v3053_v14 = vadd.f32 1.0, %v5957_v18 }
 0x3e1   :  { %5962 = vrcp.f32 %v3034_v35  ;;  %v3030_v49 = vmul.f32 %v5959_v5, %v3024_v27  ;;  %v3046_v46 = vand.u32 2147483648, %v3034_v35  ;;  %v3044_v6 = vand.u32 2147483647, %v3034_v35 }
 0x3e2   :  { %5964 = vrcp.f32 %v3053_v14  ;;  %v3065_v53 = vand.u32 2147483648, %v3053_v14  ;;  %v3063_v36 = vand.u32 2147483647, %v3053_v14  ;;  %vm3040_vm14 = vweird.f32 %v3034_v35 }
 0x3e3   :  { %v2962_v10 = vpop.f32.mrf.mxu3  ;;  %v2949_v17 = vpop.f32.mrf.mxu2  ;;  %v3094_v28 = vpack.c.bf16 %v3030_v49, %v3030_v49  ;;  %vm3059_vm15 = vweird.f32 %v3053_v14  ;;  %v3047_v13 = vor.u32 1.1754944e-38, %v3046_v46  ;;  %vm3045_vm1 = vcmp.eq.f32.partialorder %v3044_v6, 8.507059e+37  ;;  %v8855_v46 = vld [vmem:[#allocation10_spill] sm:$0xff]  ;;  %v8858_v6 = vld [vmem:[#allocation11_spill] sm:$0xff] }
 0x3e4   :  { %v3066_v5 = vor.u32 1.1754944e-38, %v3065_v53  ;;  %vm3064_vm3 = vcmp.eq.f32.partialorder %v3063_v36, 8.507059e+37  ;;  %v8856_v53 = vld [vmem:[#allocation7_spill] sm:$0xff]  ;;  %v8860_v36 = vld [vmem:[#allocation13_spill] sm:$0xff] }
 0x3e5   :  { %3103 = vmatmul.bf16.vlgmr.msrb.gmra.mxu0 %v3094_v28  ;;  %3116 = vmatmul.bf16.vlgmr.msrb.gmra.mxu1 %v3094_v28 }
 0x3e6   :  { %v5961_v62 = vpop.eup %5960  ;;  %3129 = vmatmul.bf16.vlgmr.msrb.gmra.mxu2 %v3094_v28  ;;  %3142 = vmatmul.bf16.vlgmr.msrb.gmra.mxu3 %v3094_v28 }
 0x3e7   :  { %v8318_v50 = vadd.f32 1.0, %v5961_v62  ;;  %v5963_v45 = vpop.eup %5962  ;;  %3368 = vmatpush.bf16.msrb.mxu0 %v7609_v34  ;;  %3381 = vmatpush.bf16.msrb.mxu1 %v7611_v37 }
 0x3e8   :  { %v5965_v31 = vpop.eup %5964  ;;  %v3036_v11 = vmul.f32 %v5963_v45, %v3034_v35  ;;  %3394 = vmatpush.bf16.msrb.mxu2 %v7619_v41  ;;  %3407 = vmatpush.bf16.msrb.mxu3 %v7621_v43  ;;  %vm3041_vm12 = vweird.f32 %v5963_v45 }
 0x3e9   :  { %5966 = vrcp.f32 %v8318_v50  ;;  %v3055_v8 = vmul.f32 %v5965_v31, %v3053_v14  ;;  %vm3060_vm13 = vweird.f32 %v5965_v31  ;;  %vm3042_vm0 = vmor %vm3040_vm14, %vm3041_vm12  ;;  %vm3079_vm5 = vweird.f32 %v8318_v50 }
 0x3ea   :  { %v3037_v19 = vsub.f32 1.0, %v3036_v11  ;;  %5968 = vtanh.f32 %v2966_v32  ;;  %vm3061_vm2 = vmor %vm3059_vm15, %vm3060_vm13  ;;  %v3083_v32 = vand.u32 2147483647, %v8318_v50 }
 0x3eb   :  { %v3056_v0 = vsub.f32 1.0, %v3055_v8  ;;  %3369 = vmatpush.bf16.msrb.mxu0 %v7647_v51  ;;  %3382 = vmatpush.bf16.msrb.mxu1 %v7649_v52 }
 0x3ec   :  { %v3038_v1 = vmul.f32 %v5963_v45, %v3037_v19  ;;  %3395 = vmatpush.bf16.msrb.mxu2 %v7659_v55  ;;  %3408 = vmatpush.bf16.msrb.mxu3 %v7661_v57  ;;  %vm3084_vm7 = vcmp.eq.f32.partialorder %v3083_v32, 8.507059e+37  ;;  %v8878_v32 = vld [vmem:[#allocation31_spill] sm:$0xff] }
 0x3ed   :  { %v3057_v38 = vmul.f32 %v5965_v31, %v3056_v0 }
 0x3ee   :  { %v3039_v21 = vadd.f32 %v5963_v45, %v3038_v1  ;;  %v8857_v1 = vld [vmem:[#allocation8_spill] sm:$0xff] }
 0x3ef   :  { %v5967_v44 = vpop.eup %5966  ;;  %v3058_v18 = vadd.f32 %v5965_v31, %v3057_v38  ;;  %3370 = vmatpush.bf16.msrb.mxu0 %v7683_v15  ;;  %3383 = vmatpush.bf16.msrb.mxu1 %v7685_v39  ;;  %v8859_v38 = vld [vmem:[#allocation12_spill] sm:$0xff] }
 0x3f0   :  { %v3075_v60 = vmul.f32 %v5967_v44, %v8318_v50  ;;  %v3043_v12 = vsel %vm3042_vm0, %v5963_v45, %v3039_v21  ;;  %v5969_v10 = vpop.eup %5968  ;;  %3396 = vmatpush.bf16.msrb.mxu2 %v7695_v2  ;;  %3409 = vmatpush.bf16.msrb.mxu3 %v7697_v4  ;;  %vm3080_vm4 = vweird.f32 %v5967_v44  ;;  %v3085_v45 = vand.u32 2147483648, %v8318_v50  ;;  %v8862_v21 = vld [vmem:[#allocation15_spill] sm:$0xff] }
 0x3f1   :  { %v3048_v27 = vsel %vm3045_vm1, %v3047_v13, %v3043_v12  ;;  %v3062_v17 = vsel %vm3061_vm2, %v5965_v31, %v3058_v18  ;;  %vm3081_vm6 = vmor %vm3079_vm5, %vm3080_vm4  ;;  %v8863_v13 = vld [vmem:[#allocation16_spill] sm:$0xff]  ;;  %v8864_v18 = vld [vmem:[#allocation17_spill] sm:$0xff] }
 0x3f2   :  { %v3076_v35 = vsub.f32 1.0, %v3075_v60  ;;  %v3067_v14 = vsel %vm3064_vm3, %v3066_v5, %v3062_v17  ;;  %v3090_v49 = vmul.f32 %v5969_v10, %v3048_v27  ;;  %v3086_v11 = vor.u32 1.1754944e-38, %v3085_v45  ;;  %v8865_v60 = vld [vmem:[#allocation18_spill] sm:$0xff]  ;;  %v8866_v5 = vld [vmem:[#allocation19_spill] sm:$0xff]  ;;  %v8867_v12 = vld [vmem:[#allocation20_spill] sm:$0xff] }
 0x3f3   :  { %v3089_v62 = vmul.f32 0.0, %v3067_v14  ;;  %3371 = vmatpush.bf16.msrb.mxu0 %v7719_v16  ;;  %3384 = vmatpush.bf16.msrb.mxu1 %v7721_v20  ;;  %v8868_v10 = vld [vmem:[#allocation21_spill] sm:$0xff]  ;;  %v8869_v27 = vld [vmem:[#allocation22_spill] sm:$0xff]  ;;  %v8870_v17 = vld [vmem:[#allocation23_spill] sm:$0xff] }
 0x3f4   :  { %v3077_v30 = vmul.f32 %v5967_v44, %v3076_v35  ;;  %3397 = vmatpush.bf16.msrb.mxu2 %v7731_v23  ;;  %3410 = vmatpush.bf16.msrb.mxu3 %v7733_v25  ;;  %v8871_v35 = vld [vmem:[#allocation24_spill] sm:$0xff]  ;;  %v8872_v14 = vld [vmem:[#allocation25_spill] sm:$0xff]  ;;  %v8877_v45 = vld [vmem:[#allocation30_spill] sm:$0xff] }
 0x3f5   :  { %v8335_v47 = vadd.f32 %v3090_v49, %v3089_v62  ;;  %v8873_v49 = vld [vmem:[#allocation26_spill] sm:$0xff]  ;;  %v8874_v62 = vld [vmem:[#allocation27_spill] sm:$0xff] }
 0x3f6   :  { %v3078_v28 = vadd.f32 %v5967_v44, %v3077_v30  ;;  %v8875_v30 = vld [vmem:[#allocation28_spill] sm:$0xff] }
 0x3f7   :  { %5970 = vtanh.f32 %v8335_v47  ;;  %3372 = vmatpush.bf16.msrb.mxu0 %v7755_v42  ;;  %3385 = vmatpush.bf16.msrb.mxu1 %v7757_v48 }
 0x3f8   :  { %v3082_v31 = vsel %vm3081_vm6, %v5967_v44, %v3078_v28  ;;  %3398 = vmatpush.bf16.msrb.mxu2 %v7767_v63  ;;  %3411 = vmatpush.bf16.msrb.mxu3 %v7769_v29  ;;  %v8861_v44 = vld [vmem:[#allocation14_spill] sm:$0xff]  ;;  %v8876_v28 = vld [vmem:[#allocation29_spill] sm:$0xff] }
 0x3f9   :  { %v3087_v19 = vsel %vm3084_vm7, %v3086_v11, %v3082_v31  ;;  %v8879_v31 = vld [vmem:[#allocation32_spill] sm:$0xff]  ;;  %v8880_v11 = vld [vmem:[#allocation33_spill] sm:$0xff] }
 0x3fb   :  { %3373 = vmatpush.bf16.msrb.mxu0 %v7795_v24  ;;  %3386 = vmatpush.bf16.msrb.mxu1 %v7797_v61 }
 0x3fc   :  { %3399 = vmatpush.bf16.msrb.mxu2 %v7807_v33  ;;  %3412 = vmatpush.bf16.msrb.mxu3 %v7809_v40 }
 0x3fd   :  { %v5971_v8 = vpop.eup %5970 }
 0x3fe   :  { %v3093_v0 = vmul.f32 %v5971_v8, %v3087_v19  ;;  %v8881_v8 = vld [vmem:[#allocation34_spill] sm:$0xff]  ;;  %v8882_v19 = vld [vmem:[#allocation35_spill] sm:$0xff] }
 0x3ff   :  { %3374 = vmatpush.bf16.msrb.mxu0 %v7834_v54  ;;  %3387 = vmatpush.bf16.msrb.mxu1 %v7836_v58 }
 0x400   :  { %v3163_v50 = vpack.c.bf16 %v3093_v0, %v3093_v0  ;;  %3400 = vmatpush.bf16.msrb.mxu2 %v7849_v3  ;;  %3413 = vmatpush.bf16.msrb.mxu3 %v7851_v9  ;;  %v8883_v0 = vld [vmem:[#allocation36_spill] sm:$0xff] }
 0x402   :  { %3172 = vmatmul.bf16.vlgmr.msra.gmra.mxu0 %v3163_v50  ;;  %3185 = vmatmul.bf16.vlgmr.msra.gmra.mxu1 %v3163_v50 }
 0x403   :  { %3198 = vmatmul.bf16.vlgmr.msra.gmra.mxu2 %v3163_v50  ;;  %3211 = vmatmul.bf16.vlgmr.msra.gmra.mxu3 %v3163_v50  ;;  %v8884_v50 = vld [vmem:[#allocation37_spill] sm:$0xff] }
 0x404   :  { %3375 = vmatpush.bf16.msrb.mxu0 %v7882_v22  ;;  %3388 = vmatpush.bf16.msrb.mxu1 %v7884_v26 }
 0x405   :  { %3401 = vmatpush.bf16.msrb.mxu2 %v8856_v53  ;;  %3414 = vmatpush.bf16.msrb.mxu3 %v8857_v1 }
 0x408   :  { %3440 = vmatpush.bf16.msra.mxu0 %v7901_v56  ;;  %3453 = vmatpush.bf16.msra.mxu1 %v8855_v46 }
 0x409   :  { %3466 = vmatpush.bf16.msra.mxu2 %v8858_v6  ;;  %3479 = vmatpush.bf16.msra.mxu3 %v8859_v38 }
 0x40c   :  { %3441 = vmatpush.bf16.msra.mxu0 %v8860_v36  ;;  %3454 = vmatpush.bf16.msra.mxu1 %v8861_v44 }
 0x40d   :  { %3467 = vmatpush.bf16.msra.mxu2 %v8862_v21  ;;  %3480 = vmatpush.bf16.msra.mxu3 %v8863_v13 }
 0x410   :  { %3442 = vmatpush.bf16.msra.mxu0 %v8864_v18  ;;  %3455 = vmatpush.bf16.msra.mxu1 %v8865_v60 }
 0x411   :  { %3468 = vmatpush.bf16.msra.mxu2 %v8866_v5  ;;  %3481 = vmatpush.bf16.msra.mxu3 %v8867_v12 }
 0x414   :  { %3443 = vmatpush.bf16.msra.mxu0 %v8868_v10  ;;  %3456 = vmatpush.bf16.msra.mxu1 %v8869_v27 }
 0x415   :  { %3469 = vmatpush.bf16.msra.mxu2 %v8870_v17  ;;  %3482 = vmatpush.bf16.msra.mxu3 %v8871_v35 }
 0x418   :  { %3444 = vmatpush.bf16.msra.mxu0 %v8872_v14  ;;  %3457 = vmatpush.bf16.msra.mxu1 %v8873_v49  ;;  %v8888_v49 = vld [vmem:[#allocation50_spill] sm:$0xff]  ;;  %v8889_v14 = vld [vmem:[#allocation51_spill] sm:$0xff] }
 0x419   :  { %3470 = vmatpush.bf16.msra.mxu2 %v8874_v62  ;;  %3483 = vmatpush.bf16.msra.mxu3 %v8875_v30  ;;  %v8886_v30 = vld [vmem:[#allocation39_spill] sm:$0xff] }
 0x41c   :  { %3445 = vmatpush.bf16.msra.mxu0 %v8876_v28  ;;  %3458 = vmatpush.bf16.msra.mxu1 %v8877_v45  ;;  %v8887_v28 = vld [vmem:[#allocation40_spill] sm:$0xff] }
 0x41d   :  { %3471 = vmatpush.bf16.msra.mxu2 %v8878_v32  ;;  %3484 = vmatpush.bf16.msra.mxu3 %v8879_v31 }
 0x420   :  { %3446 = vmatpush.bf16.msra.mxu0 %v8880_v11  ;;  %3459 = vmatpush.bf16.msra.mxu1 %v8881_v8 }
 0x421   :  { %3472 = vmatpush.bf16.msra.mxu2 %v8882_v19  ;;  %3485 = vmatpush.bf16.msra.mxu3 %v8883_v0 }
 0x424   :  { %3447 = vmatpush.bf16.msra.mxu0 %v8884_v50  ;;  %3460 = vmatpush.bf16.msra.mxu1 %v8885_v7 }
 0x425   :  { %3473 = vmatpush.bf16.msra.mxu2 %v8886_v30  ;;  %3486 = vmatpush.bf16.msra.mxu3 %v8887_v28  ;;  %v8890_v30 = vld [vmem:[#allocation52_spill] sm:$0xff] }
 0x462   :  { %v3104_v45 = vpop.f32.mrf.mxu0  ;;  %v3117_v32 = vpop.f32.mrf.mxu1 }
 0x463   :  { %v3151_v62 = vrot.slane %v3104_v45, 6  ;;  %v3152_v31 = vrot.slane %v3117_v32, 6 }
 0x465   :  { %v3159_v11 = vadd.f32 %v3151_v62, %v8888_v49  ;;  %v3160_v8 = vadd.f32 %v3152_v31, %v8889_v14 }
 0x467   :  { %v5574_v35 = vmul.f32 -1.442695, %v3159_v11  ;;  %v5575_v19 = vmul.f32 -1.442695, %v3160_v8 }
 0x469   :  { %5972 = vpow2.f32 %v5574_v35  ;;  %v3130_v0 = vpop.f32.mrf.mxu2  ;;  %v3143_v17 = vpop.f32.mrf.mxu3 }
 0x46a   :  { %5974 = vpow2.f32 %v5575_v19  ;;  %v3154_v50 = vrot.slane %v3143_v17, 6  ;;  %v3106_v7 = vpop.f32.mrf.mxu0  ;;  %v3119_v27 = vpop.f32.mrf.mxu1  ;;  %v3153_v31 = vrot.slane %v3130_v0, 6  ;;  %v8891_v17 = vld [vmem:[#allocation53_spill] sm:$0xff] }
 0x46c   :  { %v3162_v10 = vadd.f32 %v3154_v50, %v8890_v30  ;;  %v3161_v7 = vadd.f32 %v3153_v31, %v8891_v17 }
 0x46e   :  { %v5576_v28 = vmul.f32 -1.442695, %v3162_v10 }
 0x46f   :  { %v5973_v12 = vpop.eup %5972 }
 0x470   :  { %v5975_v5 = vpop.eup %5974  ;;  %v3235_v45 = vadd.f32 1.0, %v5973_v12  ;;  %5976 = vpow2.f32 %v5576_v28 }
 0x471   :  { %v3254_v32 = vadd.f32 1.0, %v5975_v5  ;;  %v3132_v62 = vpop.f32.mrf.mxu2  ;;  %v3145_v49 = vpop.f32.mrf.mxu3  ;;  %v3291_v5 = vrot.slane %v8306_v59, 6 }
 0x472   :  { %5978 = vrcp.f32 %v3235_v45  ;;  %v3247_v12 = vand.u32 2147483648, %v3235_v45  ;;  %v3245_v49 = vand.u32 2147483647, %v3235_v45  ;;  %vm3241_vm11 = vweird.f32 %v3235_v45 }
 0x473   :  { %5980 = vrcp.f32 %v3254_v32  ;;  %v3266_v62 = vand.u32 2147483648, %v3254_v32  ;;  %vm3260_vm10 = vweird.f32 %v3254_v32 }
 0x474   :  { %vm3246_vm14 = vcmp.eq.f32.partialorder %v3245_v49, 8.507059e+37 }
 0x475   :  { %v3267_v36 = vor.u32 1.1754944e-38, %v3266_v62 }
 0x476   :  { %v5977_v35 = vpop.eup %5976 }
 0x477   :  { %v8396_v11 = vadd.f32 1.0, %v5977_v35  ;;  %v3264_v35 = vand.u32 2147483647, %v3254_v32 }
 0x478   :  { %v5979_v8 = vpop.eup %5978 }
 0x479   :  { %v5981_v27 = vpop.eup %5980  ;;  %v3237_v19 = vmul.f32 %v5979_v8, %v3235_v45  ;;  %5982 = vrcp.f32 %v8396_v11  ;;  %vm3242_vm8 = vweird.f32 %v5979_v8  ;;  %vm3265_vm15 = vcmp.eq.f32.partialorder %v3264_v35, 8.507059e+37 }
 0x47a   :  { %v3256_v10 = vmul.f32 %v5981_v27, %v3254_v32  ;;  %5984 = vtanh.f32 %v3161_v7  ;;  %vm3261_vm9 = vweird.f32 %v5981_v27  ;;  %vm3243_vm12 = vmor %vm3241_vm11, %vm3242_vm8  ;;  %v8892_v7 = vld [vmem:[#allocation46_spill] sm:$0xff]  ;;  %vm3280_vm1 = vweird.f32 %v8396_v11 }
 0x47b   :  { %v3238_v50 = vsub.f32 1.0, %v3237_v19  ;;  %v3248_v19 = vor.u32 1.1754944e-38, %v3247_v12  ;;  %vm3262_vm13 = vmor %vm3260_vm10, %vm3261_vm9 }
 0x47c   :  { %v3257_v28 = vsub.f32 1.0, %v3256_v10 }
 0x47d   :  { %v3239_v0 = vmul.f32 %v5979_v8, %v3238_v50  ;;  %v8893_v50 = vld [vmem:[#allocation47_spill] sm:$0xff] }
 0x47e   :  { %v3258_v60 = vmul.f32 %v5981_v27, %v3257_v28 }
 0x47f   :  { %v3173_v30 = vpop.f32.mrf.mxu0  ;;  %v3186_v14 = vpop.f32.mrf.mxu1  ;;  %v3240_v13 = vadd.f32 %v5979_v8, %v3239_v0 }
 0x480   :  { %v3220_v31 = vrot.slane %v3173_v30, 2  ;;  %v3221_v17 = vrot.slane %v3186_v14, 2  ;;  %v5983_v18 = vpop.eup %5982  ;;  %v3259_v59 = vadd.f32 %v5981_v27, %v3258_v60 }
 0x481   :  { %v3276_v10 = vmul.f32 %v5983_v18, %v8396_v11  ;;  %v3244_v38 = vsel %vm3243_vm12, %v5979_v8, %v3240_v13  ;;  %v5985_v30 = vpop.eup %5984  ;;  %v8894_v8 = vld [vmem:[#allocation49_spill] sm:$0xff]  ;;  %vm3281_vm0 = vweird.f32 %v5983_v18 }
 0x482   :  { %v3228_v21 = vadd.f32 %v3220_v31, %v8892_v7  ;;  %v3229_v44 = vadd.f32 %v3221_v17, %v8893_v50  ;;  %v3249_v14 = vsel %vm3246_vm14, %v3248_v19, %v3244_v38  ;;  %v3263_v28 = vsel %vm3262_vm13, %v5981_v27, %v3259_v59  ;;  %vm3282_vm2 = vmor %vm3280_vm1, %vm3281_vm0 }
 0x483   :  { %v3277_v32 = vsub.f32 1.0, %v3276_v10  ;;  %v3268_v45 = vsel %vm3265_vm15, %v3267_v36, %v3263_v28  ;;  %v3294_v12 = vmul.f32 %v5985_v30, %v3249_v14  ;;  %v3286_v36 = vand.u32 2147483648, %v8396_v11 }
 0x484   :  { %v5577_v0 = vmul.f32 -1.442695, %v3228_v21  ;;  %v5578_v6 = vmul.f32 -1.442695, %v3229_v44  ;;  %v3293_v60 = vmul.f32 %v3291_v5, %v3268_v45  ;;  %v3284_v21 = vand.u32 2147483647, %v8396_v11 }
 0x485   :  { %v3278_v1 = vmul.f32 %v5983_v18, %v3277_v32  ;;  %v3287_v19 = vor.u32 1.1754944e-38, %v3286_v36 }
 0x486   :  { %5986 = vpow2.f32 %v5577_v0  ;;  %v3199_v53 = vpop.f32.mrf.mxu2  ;;  %v3212_v31 = vpop.f32.mrf.mxu3  ;;  %v8404_v13 = vadd.f32 %v3294_v12, %v3293_v60  ;;  %vm3285_vm3 = vcmp.eq.f32.partialorder %v3284_v21, 8.507059e+37  ;;  %v8895_v12 = vld [vmem:[#allocation48_spill] sm:$0xff] }
 0x487   :  { %5988 = vpow2.f32 %v5578_v6  ;;  %v3223_v17 = vrot.slane %v3212_v31, 2  ;;  %v3175_v50 = vpop.f32.mrf.mxu0  ;;  %v3188_v62 = vpop.f32.mrf.mxu1  ;;  %v3279_v38 = vadd.f32 %v5983_v18, %v3278_v1  ;;  %v3222_v14 = vrot.slane %v3199_v53, 2 }
 0x488   :  { %5990 = vtanh.f32 %v8404_v13 }
 0x489   :  { %v3231_v49 = vadd.f32 %v3223_v17, %v8894_v8  ;;  %v3283_v35 = vsel %vm3282_vm2, %v5983_v18, %v3279_v38  ;;  %v3230_v60 = vadd.f32 %v3222_v14, %v8895_v12 }
 0x48a   :  { %v3288_v30 = vsel %vm3285_vm3, %v3287_v19, %v3283_v35 }
 0x48b   :  { %v5579_v44 = vmul.f32 -1.442695, %v3231_v49 }
 0x48c   :  { %v5987_v27 = vpop.eup %5986 }
 0x48d   :  { %v5989_v6 = vpop.eup %5988  ;;  %v3301_v5 = vadd.f32 1.0, %v5987_v27  ;;  %5992 = vpow2.f32 %v5579_v44 }
 0x48e   :  { %v3320_v59 = vadd.f32 1.0, %v5989_v6  ;;  %v3201_v10 = vpop.f32.mrf.mxu2  ;;  %v3214_v1 = vpop.f32.mrf.mxu3 }
 0x48f   :  { %5994 = vrcp.f32 %v3301_v5  ;;  %v5991_v50 = vpop.eup %5990  ;;  %v3313_v38 = vand.u32 2147483648, %v3301_v5  ;;  %v3311_v21 = vand.u32 2147483647, %v3301_v5  ;;  %vm3307_vm6 = vweird.f32 %v3301_v5 }
 0x490   :  { %5996 = vrcp.f32 %v3320_v59  ;;  %v3297_v28 = vmul.f32 %v5991_v50, %v3288_v30  ;;  %v3332_v36 = vand.u32 2147483648, %v3320_v59  ;;  %v3330_v6 = vand.u32 2147483647, %v3320_v59 }
 0x491   :  { %vm3326_vm7 = vweird.f32 %v3320_v59  ;;  %v3314_v10 = vor.u32 1.1754944e-38, %v3313_v38  ;;  %v3357_v30 = vrot.slane %v8335_v47, 2  ;;  %vm3312_vm10 = vcmp.eq.f32.partialorder %v3311_v21, 8.507059e+37 }
 0x492   :  { %v3364_v0 = vpack.c.bf16 %v3297_v28, %v3297_v28  ;;  %v3333_v14 = vor.u32 1.1754944e-38, %v3332_v36  ;;  %vm3331_vm11 = vcmp.eq.f32.partialorder %v3330_v6, 8.507059e+37  ;;  %v8896_v6 = vld [vmem:[#allocation7_spill] sm:$0xff] }
 0x493   :  { %v5993_v32 = vpop.eup %5992 }
 0x494   :  { %v8411_v11 = vadd.f32 1.0, %v5993_v32  ;;  %v3366_v31 = vrot.slane %v3364_v0, 1 }
 0x495   :  { %v5995_v45 = vpop.eup %5994 }
 0x496   :  { %v5997_v18 = vpop.eup %5996  ;;  %v3303_v17 = vmul.f32 %v5995_v45, %v3301_v5  ;;  %5998 = vrcp.f32 %v8411_v11  ;;  %3376 = vmatmul.bf16.vlgmr.msrb.gmra.mxu0 %v3366_v31  ;;  %3389 = vmatmul.bf16.vlgmr.msrb.gmra.mxu1 %v3366_v31  ;;  %vm3308_vm4 = vweird.f32 %v5995_v45  ;;  %vm3346_vm13 = vweird.f32 %v8411_v11 }
 0x497   :  { %v3322_v62 = vmul.f32 %v5997_v18, %v3320_v59  ;;  %3402 = vmatmul.bf16.vlgmr.msrb.gmra.mxu2 %v3366_v31  ;;  %3415 = vmatmul.bf16.vlgmr.msrb.gmra.mxu3 %v3366_v31  ;;  %6000 = vtanh.f32 %v3230_v60  ;;  %vm3327_vm5 = vweird.f32 %v5997_v18  ;;  %vm3309_vm8 = vmor %vm3307_vm6, %vm3308_vm4 }
 0x498   :  { %v3304_v49 = vsub.f32 1.0, %v3303_v17  ;;  %3644 = vmatpush.bf16.msrb.mxu0 %v7609_v34  ;;  %3657 = vmatpush.bf16.msrb.mxu1 %v7611_v37  ;;  %vm3328_vm9 = vmor %vm3326_vm7, %vm3327_vm5 }
 0x499   :  { %v3323_v53 = vsub.f32 1.0, %v3322_v62  ;;  %3670 = vmatpush.bf16.msrb.mxu2 %v7619_v41  ;;  %3683 = vmatpush.bf16.msrb.mxu3 %v7621_v43 }
 0x49a   :  { %v3305_v44 = vmul.f32 %v5995_v45, %v3304_v49  ;;  %v3350_v49 = vand.u32 2147483647, %v8411_v11 }
 0x49b   :  { %v3324_v27 = vmul.f32 %v5997_v18, %v3323_v53 }
 0x49c   :  { %v5999_v35 = vpop.eup %5998  ;;  %v3306_v19 = vadd.f32 %v5995_v45, %v3305_v44  ;;  %3645 = vmatpush.bf16.msrb.mxu0 %v7647_v51  ;;  %3658 = vmatpush.bf16.msrb.mxu1 %v7649_v52  ;;  %vm3351_vm15 = vcmp.eq.f32.partialorder %v3350_v49, 8.507059e+37  ;;  %v8915_v49 = vld [vmem:[#allocation28_spill] sm:$0xff] }
 0x49d   :  { %v3325_v1 = vadd.f32 %v5997_v18, %v3324_v27  ;;  %v3342_v50 = vmul.f32 %v5999_v35, %v8411_v11  ;;  %3671 = vmatpush.bf16.msrb.mxu2 %v7659_v55  ;;  %3684 = vmatpush.bf16.msrb.mxu3 %v7661_v57  ;;  %v6001_v5 = vpop.eup %6000  ;;  %vm3347_vm12 = vweird.f32 %v5999_v35 }
 0x49e   :  { %v3310_v28 = vsel %vm3309_vm8, %v5995_v45, %v3306_v19  ;;  %vm3348_vm14 = vmor %vm3346_vm13, %vm3347_vm12  ;;  %v8898_v19 = vld [vmem:[#allocation11_spill] sm:$0xff] }
 0x49f   :  { %v3315_v59 = vsel %vm3312_vm10, %v3314_v10, %v3310_v28  ;;  %v3329_v32 = vsel %vm3328_vm9, %v5997_v18, %v3325_v1  ;;  %v3343_v0 = vsub.f32 1.0, %v3342_v50  ;;  %v3352_v18 = vand.u32 2147483648, %v8411_v11  ;;  %v8899_v10 = vld [vmem:[#allocation12_spill] sm:$0xff]  ;;  %v8900_v1 = vld [vmem:[#allocation13_spill] sm:$0xff]  ;;  %v8901_v50 = vld [vmem:[#allocation14_spill] sm:$0xff] }
 0x4a0   :  { %v3334_v60 = vsel %vm3331_vm11, %v3333_v14, %v3329_v32  ;;  %v3360_v31 = vmul.f32 %v6001_v5, %v3315_v59  ;;  %3646 = vmatpush.bf16.msrb.mxu0 %v7683_v15  ;;  %3659 = vmatpush.bf16.msrb.mxu1 %v7685_v39  ;;  %v8903_v14 = vld [vmem:[#allocation16_spill] sm:$0xff]  ;;  %v8904_v28 = vld [vmem:[#allocation17_spill] sm:$0xff]  ;;  %v8905_v5 = vld [vmem:[#allocation18_spill] sm:$0xff] }
 0x4a1   :  { %v3359_v17 = vmul.f32 %v3357_v30, %v3334_v60  ;;  %v3344_v62 = vmul.f32 %v5999_v35, %v3343_v0  ;;  %3672 = vmatpush.bf16.msrb.mxu2 %v7695_v2  ;;  %3685 = vmatpush.bf16.msrb.mxu3 %v7697_v4  ;;  %v3353_v38 = vor.u32 1.1754944e-38, %v3352_v18  ;;  %v8902_v30 = vld [vmem:[#allocation15_spill] sm:$0xff]  ;;  %v8907_v32 = vld [vmem:[#allocation20_spill] sm:$0xff]  ;;  %v8908_v0 = vld [vmem:[#allocation21_spill] sm:$0xff] }
 0x4a2   :  { %v8906_v59 = vld [vmem:[#allocation19_spill] sm:$0xff]  ;;  %v8909_v60 = vld [vmem:[#allocation22_spill] sm:$0xff] }
 0x4a3   :  { %v8429_v47 = vadd.f32 %v3360_v31, %v3359_v17  ;;  %v3345_v45 = vadd.f32 %v5999_v35, %v3344_v62  ;;  %v8910_v31 = vld [vmem:[#allocation23_spill] sm:$0xff]  ;;  %v8911_v17 = vld [vmem:[#allocation24_spill] sm:$0xff]  ;;  %v8912_v62 = vld [vmem:[#allocation25_spill] sm:$0xff] }
 0x4a4   :  { %3647 = vmatpush.bf16.msrb.mxu0 %v7719_v16  ;;  %3660 = vmatpush.bf16.msrb.mxu1 %v7721_v20  ;;  %v8914_v18 = vld [vmem:[#allocation27_spill] sm:$0xff] }
 0x4a5   :  { %6002 = vtanh.f32 %v8429_v47  ;;  %3673 = vmatpush.bf16.msrb.mxu2 %v7731_v23  ;;  %3686 = vmatpush.bf16.msrb.mxu3 %v7733_v25  ;;  %v3349_v53 = vsel %vm3348_vm14, %v5999_v35, %v3345_v45  ;;  %v8897_v35 = vld [vmem:[#allocation8_spill] sm:$0xff]  ;;  %v8913_v45 = vld [vmem:[#allocation26_spill] sm:$0xff] }
 0x4a6   :  { %v3354_v44 = vsel %vm3351_vm15, %v3353_v38, %v3349_v53  ;;  %v8916_v53 = vld [vmem:[#allocation29_spill] sm:$0xff]  ;;  %v8917_v38 = vld [vmem:[#allocation30_spill] sm:$0xff] }
 0x4a8   :  { %3648 = vmatpush.bf16.msrb.mxu0 %v7755_v42  ;;  %3661 = vmatpush.bf16.msrb.mxu1 %v7757_v48 }
 0x4a9   :  { %3674 = vmatpush.bf16.msrb.mxu2 %v7767_v63  ;;  %3687 = vmatpush.bf16.msrb.mxu3 %v7769_v29 }
 0x4ab   :  { %v6003_v36 = vpop.eup %6002 }
 0x4ac   :  { %v3363_v21 = vmul.f32 %v6003_v36, %v3354_v44  ;;  %3649 = vmatpush.bf16.msrb.mxu0 %v7795_v24  ;;  %3662 = vmatpush.bf16.msrb.mxu1 %v7797_v61  ;;  %v8918_v36 = vld [vmem:[#allocation31_spill] sm:$0xff]  ;;  %v8919_v44 = vld [vmem:[#allocation32_spill] sm:$0xff] }
 0x4ad   :  { %3675 = vmatpush.bf16.msrb.mxu2 %v7807_v33  ;;  %3688 = vmatpush.bf16.msrb.mxu3 %v7809_v40 }
 0x4ae   :  { %v3436_v11 = vpack.c.bf16 %v3363_v21, %v3363_v21  ;;  %v8920_v21 = vld [vmem:[#allocation33_spill] sm:$0xff] }
 0x4b0   :  { %v3438_v27 = vrot.slane %v3436_v11, 3  ;;  %3650 = vmatpush.bf16.msrb.mxu0 %v7834_v54  ;;  %3663 = vmatpush.bf16.msrb.mxu1 %v7836_v58  ;;  %v8921_v11 = vld [vmem:[#allocation34_spill] sm:$0xff] }
 0x4b1   :  { %3676 = vmatpush.bf16.msrb.mxu2 %v7849_v3  ;;  %3689 = vmatpush.bf16.msrb.mxu3 %v7851_v9 }
 0x4b2   :  { %3448 = vmatmul.bf16.vlgmr.msra.gmra.mxu0 %v3438_v27  ;;  %3461 = vmatmul.bf16.vlgmr.msra.gmra.mxu1 %v3438_v27 }
 0x4b3   :  { %3474 = vmatmul.bf16.vlgmr.msra.gmra.mxu2 %v3438_v27  ;;  %3487 = vmatmul.bf16.vlgmr.msra.gmra.mxu3 %v3438_v27  ;;  %v8922_v27 = vld [vmem:[#allocation35_spill] sm:$0xff] }
 0x4b4   :  { %3651 = vmatpush.bf16.msrb.mxu0 %v7882_v22  ;;  %3664 = vmatpush.bf16.msrb.mxu1 %v7884_v26 }
 0x4b5   :  { %3677 = vmatpush.bf16.msrb.mxu2 %v8896_v6  ;;  %3690 = vmatpush.bf16.msrb.mxu3 %v8897_v35 }
 0x4b8   :  { %3716 = vmatpush.bf16.msra.mxu0 %v7901_v56  ;;  %3729 = vmatpush.bf16.msra.mxu1 %v8855_v46 }
 0x4b9   :  { %3742 = vmatpush.bf16.msra.mxu2 %v8898_v19  ;;  %3755 = vmatpush.bf16.msra.mxu3 %v8899_v10 }
 0x4bc   :  { %3717 = vmatpush.bf16.msra.mxu0 %v8900_v1  ;;  %3730 = vmatpush.bf16.msra.mxu1 %v8901_v50 }
 0x4bd   :  { %3743 = vmatpush.bf16.msra.mxu2 %v8902_v30  ;;  %3756 = vmatpush.bf16.msra.mxu3 %v8903_v14 }
 0x4c0   :  { %3718 = vmatpush.bf16.msra.mxu0 %v8904_v28  ;;  %3731 = vmatpush.bf16.msra.mxu1 %v8905_v5 }
 0x4c1   :  { %3744 = vmatpush.bf16.msra.mxu2 %v8906_v59  ;;  %3757 = vmatpush.bf16.msra.mxu3 %v8907_v32 }
 0x4c4   :  { %3719 = vmatpush.bf16.msra.mxu0 %v8908_v0  ;;  %3732 = vmatpush.bf16.msra.mxu1 %v8909_v60  ;;  %v8929_v60 = vld [vmem:[#allocation51_spill] sm:$0xff] }
 0x4c5   :  { %3745 = vmatpush.bf16.msra.mxu2 %v8910_v31  ;;  %3758 = vmatpush.bf16.msra.mxu3 %v8911_v17  ;;  %v8928_v31 = vld [vmem:[#allocation50_spill] sm:$0xff] }
 0x4c8   :  { %3720 = vmatpush.bf16.msra.mxu0 %v8912_v62  ;;  %3733 = vmatpush.bf16.msra.mxu1 %v8913_v45  ;;  %v8923_v62 = vld [vmem:[#allocation36_spill] sm:$0xff]  ;;  %v8924_v45 = vld [vmem:[#allocation37_spill] sm:$0xff] }
 0x4c9   :  { %3746 = vmatpush.bf16.msra.mxu2 %v8914_v18  ;;  %3759 = vmatpush.bf16.msra.mxu3 %v8915_v49  ;;  %v8925_v18 = vld [vmem:[#allocation38_spill] sm:$0xff]  ;;  %v8926_v49 = vld [vmem:[#allocation39_spill] sm:$0xff] }
 0x4cc   :  { %3721 = vmatpush.bf16.msra.mxu0 %v8916_v53  ;;  %3734 = vmatpush.bf16.msra.mxu1 %v8917_v38  ;;  %v8927_v53 = vld [vmem:[#allocation40_spill] sm:$0xff] }
 0x4cd   :  { %3747 = vmatpush.bf16.msra.mxu2 %v8918_v36  ;;  %3760 = vmatpush.bf16.msra.mxu3 %v8919_v44 }
 0x4d0   :  { %3722 = vmatpush.bf16.msra.mxu0 %v8920_v21  ;;  %3735 = vmatpush.bf16.msra.mxu1 %v8921_v11 }
 0x4d1   :  { %3748 = vmatpush.bf16.msra.mxu2 %v8922_v27  ;;  %3761 = vmatpush.bf16.msra.mxu3 %v8923_v62 }
 0x4d4   :  { %3723 = vmatpush.bf16.msra.mxu0 %v8924_v45  ;;  %3736 = vmatpush.bf16.msra.mxu1 %v8925_v18 }
 0x4d5   :  { %3749 = vmatpush.bf16.msra.mxu2 %v8926_v49  ;;  %3762 = vmatpush.bf16.msra.mxu3 %v8927_v53  ;;  %v8930_v49 = vld [vmem:[#allocation52_spill] sm:$0xff] }
 0x513   :  { %v3377_v38 = vpop.f32.mrf.mxu0  ;;  %v3390_v36 = vpop.f32.mrf.mxu1 }
 0x514   :  { %v3424_v17 = vrot.slane %v3377_v38, 4  ;;  %v3425_v44 = vrot.slane %v3390_v36, 4 }
 0x516   :  { %v3432_v21 = vadd.f32 %v3424_v17, %v8928_v31  ;;  %v3433_v11 = vadd.f32 %v3425_v44, %v8929_v60 }
 0x518   :  { %v5580_v0 = vmul.f32 -1.442695, %v3432_v21  ;;  %v5581_v27 = vmul.f32 -1.442695, %v3433_v11 }
 0x51a   :  { %6004 = vpow2.f32 %v5580_v0  ;;  %v3403_v62 = vpop.f32.mrf.mxu2  ;;  %v3416_v32 = vpop.f32.mrf.mxu3 }
 0x51b   :  { %6006 = vpow2.f32 %v5581_v27  ;;  %v3427_v45 = vrot.slane %v3416_v32, 4  ;;  %v3379_v18 = vpop.f32.mrf.mxu0  ;;  %v3392_v59 = vpop.f32.mrf.mxu1  ;;  %v3426_v44 = vrot.slane %v3403_v62, 4  ;;  %v8931_v32 = vld [vmem:[#allocation53_spill] sm:$0xff] }
 0x51d   :  { %v3435_v5 = vadd.f32 %v3427_v45, %v8930_v49  ;;  %v3434_v18 = vadd.f32 %v3426_v44, %v8931_v32 }
 0x51f   :  { %v5582_v53 = vmul.f32 -1.442695, %v3435_v5 }
 0x520   :  { %v6005_v28 = vpop.eup %6004 }
 0x521   :  { %v6007_v14 = vpop.eup %6006  ;;  %v3511_v38 = vadd.f32 1.0, %v6005_v28  ;;  %6008 = vpow2.f32 %v5582_v53 }
 0x522   :  { %v3530_v36 = vadd.f32 1.0, %v6007_v14  ;;  %v3405_v17 = vpop.f32.mrf.mxu2  ;;  %v3418_v31 = vpop.f32.mrf.mxu3  ;;  %v3567_v14 = vrot.slane %v8404_v13, 6 }
 0x523   :  { %6010 = vrcp.f32 %v3511_v38  ;;  %v3523_v28 = vand.u32 2147483648, %v3511_v38  ;;  %v3521_v31 = vand.u32 2147483647, %v3511_v38  ;;  %vm3517_vm3 = vweird.f32 %v3511_v38 }
 0x524   :  { %6012 = vrcp.f32 %v3530_v36  ;;  %v3542_v17 = vand.u32 2147483648, %v3530_v36  ;;  %vm3536_vm2 = vweird.f32 %v3530_v36 }
 0x525   :  { %vm3522_vm6 = vcmp.eq.f32.partialorder %v3521_v31, 8.507059e+37 }
 0x526   :  { %v3543_v19 = vor.u32 1.1754944e-38, %v3542_v17 }
 0x527   :  { %v6009_v0 = vpop.eup %6008 }
 0x528   :  { %v8490_v21 = vadd.f32 1.0, %v6009_v0  ;;  %v3540_v0 = vand.u32 2147483647, %v3530_v36 }
 0x529   :  { %v6011_v11 = vpop.eup %6010 }
 0x52a   :  { %v6013_v59 = vpop.eup %6012  ;;  %v3513_v27 = vmul.f32 %v6011_v11, %v3511_v38  ;;  %6014 = vrcp.f32 %v8490_v21  ;;  %vm3518_vm0 = vweird.f32 %v6011_v11  ;;  %vm3541_vm7 = vcmp.eq.f32.partialorder %v3540_v0, 8.507059e+37 }
 0x52b   :  { %v3532_v5 = vmul.f32 %v6013_v59, %v3530_v36  ;;  %6016 = vtanh.f32 %v3434_v18  ;;  %vm3537_vm1 = vweird.f32 %v6013_v59  ;;  %vm3519_vm4 = vmor %vm3517_vm3, %vm3518_vm0  ;;  %vm3556_vm9 = vweird.f32 %v8490_v21 }
 0x52c   :  { %v3514_v45 = vsub.f32 1.0, %v3513_v27  ;;  %v3524_v27 = vor.u32 1.1754944e-38, %v3523_v28  ;;  %vm3538_vm5 = vmor %vm3536_vm2, %vm3537_vm1 }
 0x52d   :  { %v3533_v53 = vsub.f32 1.0, %v3532_v5 }
 0x52e   :  { %v3515_v62 = vmul.f32 %v6011_v11, %v3514_v45  ;;  %v8932_v45 = vld [vmem:[#allocation47_spill] sm:$0xff] }
 0x52f   :  { %v3449_v49 = vpop.f32.mrf.mxu0  ;;  %v3462_v60 = vpop.f32.mrf.mxu1  ;;  %v3534_v30 = vmul.f32 %v6013_v59, %v3533_v53 }
 0x530   :  { %v3496_v44 = vrot.slane %v3449_v49, 4  ;;  %v3497_v32 = vrot.slane %v3462_v60, 4  ;;  %v6015_v50 = vpop.eup %6014  ;;  %v3516_v1 = vadd.f32 %v6011_v11, %v3515_v62 }
 0x531   :  { %v3535_v13 = vadd.f32 %v6013_v59, %v3534_v30  ;;  %v3552_v5 = vmul.f32 %v6015_v50, %v8490_v21  ;;  %v6017_v49 = vpop.eup %6016  ;;  %vm3557_vm8 = vweird.f32 %v6015_v50 }
 0x532   :  { %v3504_v18 = vadd.f32 %v3496_v44, %v8892_v7  ;;  %v3505_v10 = vadd.f32 %v3497_v32, %v8932_v45  ;;  %v3520_v35 = vsel %vm3519_vm4, %v6011_v11, %v3516_v1  ;;  %vm3558_vm10 = vmor %vm3556_vm9, %vm3557_vm8 }
 0x533   :  { %v3525_v60 = vsel %vm3522_vm6, %v3524_v27, %v3520_v35  ;;  %v3539_v53 = vsel %vm3538_vm5, %v6013_v59, %v3535_v13  ;;  %v3553_v36 = vsub.f32 1.0, %v3552_v5  ;;  %v3560_v59 = vand.u32 2147483647, %v8490_v21 }
 0x534   :  { %v5583_v62 = vmul.f32 -1.442695, %v3504_v18  ;;  %v3544_v38 = vsel %vm3541_vm7, %v3543_v19, %v3539_v53  ;;  %v3570_v28 = vmul.f32 %v6017_v49, %v3525_v60  ;;  %v5584_v6 = vmul.f32 -1.442695, %v3505_v10 }
 0x535   :  { %v3569_v30 = vmul.f32 %v3567_v14, %v3544_v38  ;;  %v3554_v46 = vmul.f32 %v6015_v50, %v3553_v36  ;;  %v3562_v19 = vand.u32 2147483648, %v8490_v21  ;;  %vm3561_vm11 = vcmp.eq.f32.partialorder %v3560_v59, 8.507059e+37 }
 0x536   :  { %6018 = vpow2.f32 %v5583_v62  ;;  %v3475_v56 = vpop.f32.mrf.mxu2  ;;  %v3488_v44 = vpop.f32.mrf.mxu3 }
 0x537   :  { %6020 = vpow2.f32 %v5584_v6  ;;  %v3499_v32 = vrot.slane %v3488_v44, 4  ;;  %v3451_v45 = vpop.f32.mrf.mxu0  ;;  %v3464_v17 = vpop.f32.mrf.mxu1  ;;  %v8498_v1 = vadd.f32 %v3570_v28, %v3569_v30  ;;  %v3555_v35 = vadd.f32 %v6015_v50, %v3554_v46 }
 0x538   :  { %v3563_v27 = vor.u32 1.1754944e-38, %v3562_v19  ;;  %v3498_v49 = vrot.slane %v3475_v56, 4 }
 0x539   :  { %v3507_v11 = vadd.f32 %v3499_v32, %v8894_v8  ;;  %6022 = vtanh.f32 %v8498_v1  ;;  %v3559_v0 = vsel %vm3558_vm10, %v6015_v50, %v3555_v35 }
 0x53a   :  { %v3564_v45 = vsel %vm3561_vm11, %v3563_v27, %v3559_v0  ;;  %v3506_v38 = vadd.f32 %v3498_v49, %v8895_v12 }
 0x53b   :  { %v5585_v10 = vmul.f32 -1.442695, %v3507_v11 }
 0x53c   :  { %v6019_v14 = vpop.eup %6018 }
 0x53d   :  { %v6021_v6 = vpop.eup %6020  ;;  %v3577_v31 = vadd.f32 1.0, %v6019_v14  ;;  %6024 = vpow2.f32 %v5585_v10 }
 0x53e   :  { %v3596_v13 = vadd.f32 1.0, %v6021_v6  ;;  %v3477_v5 = vpop.f32.mrf.mxu2  ;;  %v3490_v46 = vpop.f32.mrf.mxu3 }
 0x53f   :  { %6026 = vrcp.f32 %v3577_v31  ;;  %v6023_v18 = vpop.eup %6022  ;;  %v3589_v17 = vand.u32 2147483648, %v3577_v31  ;;  %v3587_v19 = vand.u32 2147483647, %v3577_v31  ;;  %vm3583_vm14 = vweird.f32 %v3577_v31 }
 0x540   :  { %6028 = vrcp.f32 %v3596_v13  ;;  %v3573_v60 = vmul.f32 %v6023_v18, %v3564_v45  ;;  %v3608_v11 = vand.u32 2147483648, %v3596_v13  ;;  %v3606_v59 = vand.u32 2147483647, %v3596_v13 }
 0x541   :  { %vm3602_vm15 = vweird.f32 %v3596_v13  ;;  %v3590_v0 = vor.u32 1.1754944e-38, %v3589_v17  ;;  %vm3588_vm2 = vcmp.eq.f32.partialorder %v3587_v19, 8.507059e+37  ;;  %v8960_v17 = vld [vmem:[#allocation34_spill] sm:$0xff]  ;;  %v8963_v19 = vld [vmem:[#allocation37_spill] sm:$0xff] }
 0x542   :  { %v3640_v36 = vpack.c.bf16 %v3573_v60, %v3573_v60  ;;  %vm3607_vm3 = vcmp.eq.f32.partialorder %v3606_v59, 8.507059e+37  ;;  %v8948_v60 = vld [vmem:[#allocation22_spill] sm:$0xff]  ;;  %v8965_v59 = vld [vmem:[#allocation39_spill] sm:$0xff] }
 0x543   :  { %v6025_v53 = vpop.eup %6024 }
 0x544   :  { %v8505_v21 = vadd.f32 1.0, %v6025_v53  ;;  %v3642_v28 = vrot.slane %v3640_v36, 2  ;;  %v8949_v53 = vld [vmem:[#allocation23_spill] sm:$0xff]  ;;  %v8950_v36 = vld [vmem:[#allocation24_spill] sm:$0xff] }
 0x545   :  { %v6027_v62 = vpop.eup %6026 }
 0x546   :  { %v6029_v50 = vpop.eup %6028  ;;  %v3579_v30 = vmul.f32 %v6027_v62, %v3577_v31  ;;  %6030 = vrcp.f32 %v8505_v21  ;;  %3652 = vmatmul.bf16.vlgmr.msrb.gmra.mxu0 %v3642_v28  ;;  %3665 = vmatmul.bf16.vlgmr.msrb.gmra.mxu1 %v3642_v28  ;;  %vm3584_vm12 = vweird.f32 %v6027_v62  ;;  %vm3622_vm5 = vweird.f32 %v8505_v21 }
 0x547   :  { %v3598_v44 = vmul.f32 %v6029_v50, %v3596_v13  ;;  %3678 = vmatmul.bf16.vlgmr.msrb.gmra.mxu2 %v3642_v28  ;;  %3691 = vmatmul.bf16.vlgmr.msrb.gmra.mxu3 %v3642_v28  ;;  %6032 = vtanh.f32 %v3506_v38  ;;  %vm3603_vm13 = vweird.f32 %v6029_v50  ;;  %vm3585_vm0 = vmor %vm3583_vm14, %vm3584_vm12  ;;  %v8953_v38 = vld [vmem:[#allocation27_spill] sm:$0xff]  ;;  %v8954_v28 = vld [vmem:[#allocation28_spill] sm:$0xff] }
 0x548   :  { %v3580_v32 = vsub.f32 1.0, %v3579_v30  ;;  %3920 = vmatpush.bf16.msrb.mxu0 %v7609_v34  ;;  %3933 = vmatpush.bf16.msrb.mxu1 %v7611_v37  ;;  %vm3604_vm1 = vmor %vm3602_vm15, %vm3603_vm13  ;;  %v8956_v30 = vld [vmem:[#allocation30_spill] sm:$0xff] }
 0x549   :  { %v3599_v56 = vsub.f32 1.0, %v3598_v44  ;;  %3946 = vmatpush.bf16.msrb.mxu2 %v7619_v41  ;;  %3959 = vmatpush.bf16.msrb.mxu3 %v7621_v43  ;;  %v3633_v41 = vrot.slane %v8429_v47, 2  ;;  %v3609_v43 = vor.u32 1.1754944e-38, %v3608_v11  ;;  %v8947_v47 = vld [vmem:[#allocation21_spill] sm:$0xff]  ;;  %v8957_v44 = vld [vmem:[#allocation31_spill] sm:$0xff] }
 0x54a   :  { %v3581_v35 = vmul.f32 %v6027_v62, %v3580_v32  ;;  %v8958_v32 = vld [vmem:[#allocation32_spill] sm:$0xff]  ;;  %v8961_v11 = vld [vmem:[#allocation35_spill] sm:$0xff] }
 0x54b   :  { %v3600_v10 = vmul.f32 %v6029_v50, %v3599_v56  ;;  %v8959_v56 = vld [vmem:[#allocation33_spill] sm:$0xff] }
 0x54c   :  { %v6031_v14 = vpop.eup %6030  ;;  %v3582_v6 = vadd.f32 %v6027_v62, %v3581_v35  ;;  %3921 = vmatpush.bf16.msrb.mxu0 %v7647_v51  ;;  %3934 = vmatpush.bf16.msrb.mxu1 %v7649_v52  ;;  %v8962_v35 = vld [vmem:[#allocation36_spill] sm:$0xff] }
 0x54d   :  { %v3601_v34 = vadd.f32 %v6029_v50, %v3600_v10  ;;  %v3618_v37 = vmul.f32 %v6031_v14, %v8505_v21  ;;  %3947 = vmatpush.bf16.msrb.mxu2 %v7659_v55  ;;  %3960 = vmatpush.bf16.msrb.mxu3 %v7661_v57  ;;  %v6033_v31 = vpop.eup %6032  ;;  %vm3623_vm4 = vweird.f32 %v6031_v14  ;;  %v3628_v57 = vand.u32 2147483648, %v8505_v21  ;;  %v8964_v10 = vld [vmem:[#allocation38_spill] sm:$0xff] }
 0x54e   :  { %v3586_v27 = vsel %vm3585_vm0, %v6027_v62, %v3582_v6  ;;  %vm3624_vm6 = vmor %vm3622_vm5, %vm3623_vm4  ;;  %v8952_v62 = vld [vmem:[#allocation26_spill] sm:$0xff] }
 0x54f   :  { %v3591_v13 = vsel %vm3588_vm2, %v3590_v0, %v3586_v27  ;;  %v3605_v5 = vsel %vm3604_vm1, %v6029_v50, %v3601_v34  ;;  %v3619_v46 = vsub.f32 1.0, %v3618_v37  ;;  %v8955_v50 = vld [vmem:[#allocation29_spill] sm:$0xff]  ;;  %v8968_v27 = vld [vmem:[#allocation51_spill] sm:$0xff] }
 0x550   :  { %v3610_v18 = vsel %vm3607_vm3, %v3609_v43, %v3605_v5  ;;  %v3636_v45 = vmul.f32 %v6033_v31, %v3591_v13  ;;  %3922 = vmatpush.bf16.msrb.mxu0 %v7683_v15  ;;  %3935 = vmatpush.bf16.msrb.mxu1 %v7685_v39  ;;  %v3626_v15 = vand.u32 2147483647, %v8505_v21  ;;  %v8951_v21 = vld [vmem:[#allocation25_spill] sm:$0xff] }
 0x551   :  { %v3635_v51 = vmul.f32 %v3633_v41, %v3610_v18  ;;  %v3620_v49 = vmul.f32 %v6031_v14, %v3619_v46  ;;  %3948 = vmatpush.bf16.msrb.mxu2 %v7695_v2  ;;  %3961 = vmatpush.bf16.msrb.mxu3 %v7697_v4  ;;  %v3629_v2 = vor.u32 1.1754944e-38, %v3628_v57  ;;  %v8967_v41 = vld [vmem:[#allocation50_spill] sm:$0xff] }
 0x552   :  { %vm3627_vm7 = vcmp.eq.f32.partialorder %v3626_v15, 8.507059e+37 }
 0x553   :  { %v8523_v52 = vadd.f32 %v3636_v45, %v3635_v51  ;;  %v3621_v55 = vadd.f32 %v6031_v14, %v3620_v49 }
 0x554   :  { %3923 = vmatpush.bf16.msrb.mxu0 %v7719_v16  ;;  %3936 = vmatpush.bf16.msrb.mxu1 %v7721_v20 }
 0x555   :  { %6034 = vtanh.f32 %v8523_v52  ;;  %3949 = vmatpush.bf16.msrb.mxu2 %v7731_v23  ;;  %3962 = vmatpush.bf16.msrb.mxu3 %v7733_v25  ;;  %v3625_v39 = vsel %vm3624_vm6, %v6031_v14, %v3621_v55  ;;  %v8966_v14 = vld [vmem:[#allocation40_spill] sm:$0xff] }
 0x556   :  { %v3630_v16 = vsel %vm3627_vm7, %v3629_v2, %v3625_v39  ;;  %v8969_v55 = vld [vmem:[#allocation52_spill] sm:$0xff] }
 0x558   :  { %3924 = vmatpush.bf16.msrb.mxu0 %v7755_v42  ;;  %3937 = vmatpush.bf16.msrb.mxu1 %v7757_v48  ;;  %v8933_v42 = vld [vmem:[#allocation9_spill] sm:$0xff]  ;;  %v8934_v48 = vld [vmem:[#allocation10_spill] sm:$0xff] }
 0x559   :  { %3950 = vmatpush.bf16.msrb.mxu2 %v7767_v63  ;;  %3963 = vmatpush.bf16.msrb.mxu3 %v7769_v29  ;;  %v8935_v63 = vld [vmem:[#allocation7_spill] sm:$0xff]  ;;  %v8936_v29 = vld [vmem:[#allocation8_spill] sm:$0xff] }
 0x55b   :  { %v6035_v4 = vpop.eup %6034 }
 0x55c   :  { %v3639_v20 = vmul.f32 %v6035_v4, %v3630_v16  ;;  %3925 = vmatpush.bf16.msrb.mxu0 %v7795_v24  ;;  %3938 = vmatpush.bf16.msrb.mxu1 %v7797_v61  ;;  %v8937_v24 = vld [vmem:[#allocation11_spill] sm:$0xff]  ;;  %v8938_v61 = vld [vmem:[#allocation12_spill] sm:$0xff] }
 0x55d   :  { %3951 = vmatpush.bf16.msrb.mxu2 %v7807_v33  ;;  %3964 = vmatpush.bf16.msrb.mxu3 %v7809_v40  ;;  %v8939_v33 = vld [vmem:[#allocation13_spill] sm:$0xff]  ;;  %v8940_v40 = vld [vmem:[#allocation14_spill] sm:$0xff] }
 0x55e   :  { %v3712_v23 = vpack.c.bf16 %v3639_v20, %v3639_v20 }
 0x560   :  { %v3714_v25 = vrot.slane %v3712_v23, 2  ;;  %3926 = vmatpush.bf16.msrb.mxu0 %v7834_v54  ;;  %3939 = vmatpush.bf16.msrb.mxu1 %v7836_v58  ;;  %v8941_v54 = vld [vmem:[#allocation15_spill] sm:$0xff]  ;;  %v8942_v58 = vld [vmem:[#allocation16_spill] sm:$0xff] }
 0x561   :  { %3952 = vmatpush.bf16.msrb.mxu2 %v7849_v3  ;;  %3965 = vmatpush.bf16.msrb.mxu3 %v7851_v9  ;;  %v8943_v3 = vld [vmem:[#allocation17_spill] sm:$0xff]  ;;  %v8944_v9 = vld [vmem:[#allocation18_spill] sm:$0xff] }
 0x562   :  { %3724 = vmatmul.bf16.vlgmr.msra.gmra.mxu0 %v3714_v25  ;;  %3737 = vmatmul.bf16.vlgmr.msra.gmra.mxu1 %v3714_v25 }
 0x563   :  { %3750 = vmatmul.bf16.vlgmr.msra.gmra.mxu2 %v3714_v25  ;;  %3763 = vmatmul.bf16.vlgmr.msra.gmra.mxu3 %v3714_v25 }
 0x564   :  { %3927 = vmatpush.bf16.msrb.mxu0 %v7882_v22  ;;  %3940 = vmatpush.bf16.msrb.mxu1 %v7884_v26  ;;  %v8945_v22 = vld [vmem:[#allocation19_spill] sm:$0xff]  ;;  %v8946_v26 = vld [vmem:[#allocation20_spill] sm:$0xff] }
 0x565   :  { %3953 = vmatpush.bf16.msrb.mxu2 %v8935_v63  ;;  %3966 = vmatpush.bf16.msrb.mxu3 %v8936_v29  ;;  %v8970_v29 = vld [vmem:[#allocation53_spill] sm:$0xff] }
 0x568   :  { %3980 = vmatpush.bf16.msra.mxu0 %v8933_v42  ;;  %3993 = vmatpush.bf16.msra.mxu1 %v8934_v48 }
 0x569   :  { %4006 = vmatpush.bf16.msra.mxu2 %v8937_v24  ;;  %4019 = vmatpush.bf16.msra.mxu3 %v8938_v61 }
 0x56c   :  { %3981 = vmatpush.bf16.msra.mxu0 %v8939_v33  ;;  %3994 = vmatpush.bf16.msra.mxu1 %v8940_v40 }
 0x56d   :  { %4007 = vmatpush.bf16.msra.mxu2 %v8941_v54  ;;  %4020 = vmatpush.bf16.msra.mxu3 %v8942_v58 }
 0x570   :  { %3982 = vmatpush.bf16.msra.mxu0 %v8943_v3  ;;  %3995 = vmatpush.bf16.msra.mxu1 %v8944_v9  ;;  %v3843_v3 = vrot.slane %v8498_v1, 6 }
 0x571   :  { %4008 = vmatpush.bf16.msra.mxu2 %v8945_v22  ;;  %4021 = vmatpush.bf16.msra.mxu3 %v8946_v26 }
 0x574   :  { %3983 = vmatpush.bf16.msra.mxu0 %v8947_v47  ;;  %3996 = vmatpush.bf16.msra.mxu1 %v8948_v60 }
 0x575   :  { %4009 = vmatpush.bf16.msra.mxu2 %v8949_v53  ;;  %4022 = vmatpush.bf16.msra.mxu3 %v8950_v36 }
 0x578   :  { %3984 = vmatpush.bf16.msra.mxu0 %v8951_v21  ;;  %3997 = vmatpush.bf16.msra.mxu1 %v8952_v62 }
 0x579   :  { %4010 = vmatpush.bf16.msra.mxu2 %v8953_v38  ;;  %4023 = vmatpush.bf16.msra.mxu3 %v8954_v28 }
 0x57c   :  { %3985 = vmatpush.bf16.msra.mxu0 %v8955_v50  ;;  %3998 = vmatpush.bf16.msra.mxu1 %v8956_v30 }
 0x57d   :  { %4011 = vmatpush.bf16.msra.mxu2 %v8957_v44  ;;  %4024 = vmatpush.bf16.msra.mxu3 %v8958_v32 }
 0x580   :  { %3986 = vmatpush.bf16.msra.mxu0 %v8959_v56  ;;  %3999 = vmatpush.bf16.msra.mxu1 %v8960_v17  ;;  %v8971_v56 = vld [vmem:[#allocation47_spill] sm:$0xff] }
 0x581   :  { %4012 = vmatpush.bf16.msra.mxu2 %v8961_v11  ;;  %4025 = vmatpush.bf16.msra.mxu3 %v8962_v35 }
 0x584   :  { %3987 = vmatpush.bf16.msra.mxu0 %v8963_v19  ;;  %4000 = vmatpush.bf16.msra.mxu1 %v8964_v10 }
 0x585   :  { %4013 = vmatpush.bf16.msra.mxu2 %v8965_v59  ;;  %4026 = vmatpush.bf16.msra.mxu3 %v8966_v14 }
 0x5c3   :  { %v3653_v6 = vpop.f32.mrf.mxu0  ;;  %v3666_v0 = vpop.f32.mrf.mxu1 }
 0x5c4   :  { %v3700_v34 = vrot.slane %v3653_v6, 2  ;;  %v3701_v37 = vrot.slane %v3666_v0, 2 }
 0x5c6   :  { %v3708_v43 = vadd.f32 %v3700_v34, %v8967_v41  ;;  %v3709_v31 = vadd.f32 %v3701_v37, %v8968_v27 }
 0x5c8   :  { %v5586_v13 = vmul.f32 -1.442695, %v3708_v43  ;;  %v5587_v5 = vmul.f32 -1.442695, %v3709_v31 }
 0x5ca   :  { %6036 = vpow2.f32 %v5586_v13  ;;  %v3679_v46 = vpop.f32.mrf.mxu2  ;;  %v3692_v18 = vpop.f32.mrf.mxu3 }
 0x5cb   :  { %6038 = vpow2.f32 %v5587_v5  ;;  %v3703_v45 = vrot.slane %v3692_v18, 2  ;;  %v3655_v51 = vpop.f32.mrf.mxu0  ;;  %v3668_v49 = vpop.f32.mrf.mxu1  ;;  %v3702_v25 = vrot.slane %v3679_v46, 2 }
 0x5cd   :  { %v3711_v57 = vadd.f32 %v3703_v45, %v8969_v55  ;;  %v3710_v24 = vadd.f32 %v3702_v25, %v8970_v29 }
 0x5cf   :  { %v5588_v15 = vmul.f32 -1.442695, %v3711_v57 }
 0x5d0   :  { %v6037_v39 = vpop.eup %6036 }
 0x5d1   :  { %v6039_v2 = vpop.eup %6038  ;;  %v3787_v4 = vadd.f32 1.0, %v6037_v39  ;;  %6040 = vpow2.f32 %v5588_v15 }
 0x5d2   :  { %v3806_v16 = vadd.f32 1.0, %v6039_v2  ;;  %v3681_v20 = vpop.f32.mrf.mxu2  ;;  %v3694_v23 = vpop.f32.mrf.mxu3 }
 0x5d3   :  { %6042 = vrcp.f32 %v3787_v4  ;;  %v3799_v58 = vand.u32 2147483648, %v3787_v4  ;;  %v3797_v22 = vand.u32 2147483647, %v3787_v4  ;;  %vm3793_vm11 = vweird.f32 %v3787_v4 }
 0x5d4   :  { %6044 = vrcp.f32 %v3806_v16  ;;  %v3818_v26 = vand.u32 2147483648, %v3806_v16  ;;  %v3816_v60 = vand.u32 2147483647, %v3806_v16  ;;  %vm3812_vm10 = vweird.f32 %v3806_v16 }
 0x5d5   :  { %v3800_v30 = vor.u32 1.1754944e-38, %v3799_v58  ;;  %vm3798_vm14 = vcmp.eq.f32.partialorder %v3797_v22, 8.507059e+37 }
 0x5d6   :  { %v3819_v11 = vor.u32 1.1754944e-38, %v3818_v26  ;;  %vm3817_vm15 = vcmp.eq.f32.partialorder %v3816_v60, 8.507059e+37 }
 0x5d7   :  { %v6041_v42 = vpop.eup %6040 }
 0x5d8   :  { %v8584_v48 = vadd.f32 1.0, %v6041_v42 }
 0x5d9   :  { %v6043_v63 = vpop.eup %6042 }
 0x5da   :  { %v6045_v61 = vpop.eup %6044  ;;  %v3789_v33 = vmul.f32 %v6043_v63, %v3787_v4  ;;  %6046 = vrcp.f32 %v8584_v48  ;;  %vm3794_vm8 = vweird.f32 %v6043_v63  ;;  %v3838_v49 = vand.u32 2147483648, %v8584_v48 }
 0x5db   :  { %v3808_v40 = vmul.f32 %v6045_v61, %v3806_v16  ;;  %6048 = vtanh.f32 %v3710_v24  ;;  %vm3813_vm9 = vweird.f32 %v6045_v61  ;;  %vm3795_vm12 = vmor %vm3793_vm11, %vm3794_vm8  ;;  %vm3832_vm1 = vweird.f32 %v8584_v48 }
 0x5dc   :  { %v3790_v54 = vsub.f32 1.0, %v3789_v33  ;;  %vm3814_vm13 = vmor %vm3812_vm10, %vm3813_vm9  ;;  %v3836_v57 = vand.u32 2147483647, %v8584_v48  ;;  %v3839_v16 = vor.u32 1.1754944e-38, %v3838_v49  ;;  %v5925_v49 = vld [vmem:[%s8702_s9 + $0x38] sm:$0xff] }
 0x5dd   :  { %v3809_v9 = vsub.f32 1.0, %v3808_v40 }
 0x5de   :  { %v3791_v47 = vmul.f32 %v6043_v63, %v3790_v54  ;;  %vm3837_vm3 = vcmp.eq.f32.partialorder %v3836_v57, 8.507059e+37  ;;  %v5923_v57 = vld [vmem:[%s8702_s9 + $0x28] sm:$0xff] }
 0x5df   :  { %v3725_v53 = vpop.f32.mrf.mxu0  ;;  %v3738_v36 = vpop.f32.mrf.mxu1  ;;  %v3810_v21 = vmul.f32 %v6045_v61, %v3809_v9 }
 0x5e0   :  { %v3772_v62 = vrot.slane %v3725_v53, 6  ;;  %v3773_v38 = vrot.slane %v3738_v36, 6  ;;  %v6047_v28 = vpop.eup %6046  ;;  %v3792_v50 = vadd.f32 %v6043_v63, %v3791_v47 }
 0x5e1   :  { %v3811_v1 = vadd.f32 %v6045_v61, %v3810_v21  ;;  %v3828_v44 = vmul.f32 %v6047_v28, %v8584_v48  ;;  %v6049_v19 = vpop.eup %6048  ;;  %vm3833_vm0 = vweird.f32 %v6047_v28 }
 0x5e2   :  { %v3780_v32 = vadd.f32 %v3772_v62, %v8892_v7  ;;  %v3781_v17 = vadd.f32 %v3773_v38, %v8971_v56  ;;  %v3796_v35 = vsel %vm3795_vm12, %v6043_v63, %v3792_v50  ;;  %vm3834_vm2 = vmor %vm3832_vm1, %vm3833_vm0 }
 0x5e3   :  { %v3801_v10 = vsel %vm3798_vm14, %v3800_v30, %v3796_v35  ;;  %v3815_v59 = vsel %vm3814_vm13, %v6045_v61, %v3811_v1  ;;  %v3829_v14 = vsub.f32 1.0, %v3828_v44 }
 0x5e4   :  { %v5589_v6 = vmul.f32 -1.442695, %v3780_v32  ;;  %v3820_v0 = vsel %vm3817_vm15, %v3819_v11, %v3815_v59  ;;  %v3846_v34 = vmul.f32 %v6049_v19, %v3801_v10  ;;  %v5590_v37 = vmul.f32 -1.442695, %v3781_v17 }
 0x5e5   :  { %v3845_v41 = vmul.f32 %v3843_v3, %v3820_v0  ;;  %v3830_v43 = vmul.f32 %v6047_v28, %v3829_v14  ;;  %v3909_v32 = vrot.slane %v8523_v52, 2 }
 0x5e6   :  { %6050 = vpow2.f32 %v5589_v6  ;;  %v3751_v27 = vpop.f32.mrf.mxu2  ;;  %v3764_v31 = vpop.f32.mrf.mxu3 }
 0x5e7   :  { %6052 = vpow2.f32 %v5590_v37  ;;  %v3775_v13 = vrot.slane %v3764_v31, 6  ;;  %v3727_v5 = vpop.f32.mrf.mxu0  ;;  %v3740_v46 = vpop.f32.mrf.mxu1  ;;  %v8592_v18 = vadd.f32 %v3846_v34, %v3845_v41  ;;  %v3831_v51 = vadd.f32 %v6047_v28, %v3830_v43 }
 0x5e8   :  { %v3774_v29 = vrot.slane %v3751_v27, 6 }
 0x5e9   :  { %v3783_v45 = vadd.f32 %v3775_v13, %v8894_v8  ;;  %6054 = vtanh.f32 %v8592_v18  ;;  %v3835_v4 = vsel %vm3834_vm2, %v6047_v28, %v3831_v51 }
 0x5ea   :  { %v3840_v63 = vsel %vm3837_vm3, %v3839_v16, %v3835_v4  ;;  %v3782_v54 = vadd.f32 %v3774_v29, %v8895_v12  ;;  %v8974_v4 = vld [vmem:[#allocation41_spill] sm:$0xff] }
 0x5eb   :  { %v5591_v55 = vmul.f32 -1.442695, %v3783_v45 }
 0x5ec   :  { %v6051_v15 = vpop.eup %6050 }
 0x5ed   :  { %v6053_v39 = vpop.eup %6052  ;;  %v3853_v2 = vadd.f32 1.0, %v6051_v15  ;;  %6056 = vpow2.f32 %v5591_v55  ;;  %v5924_v55 = vld [vmem:[%s8702_s9 + $0x30] sm:$0xff]  ;;  %v5922_v15 = vld [vmem:[%s8702_s9 + $0x20] sm:$0xff] }
 0x5ee   :  { %v3872_v20 = vadd.f32 1.0, %v6053_v39  ;;  %v3753_v23 = vpop.f32.mrf.mxu2  ;;  %v3766_v25 = vpop.f32.mrf.mxu3  ;;  %v8972_v39 = vld [vmem:[#allocation43_spill] sm:$0xff] }
 0x5ef   :  { %6058 = vrcp.f32 %v3853_v2  ;;  %v6055_v42 = vpop.eup %6054  ;;  %v3865_v60 = vand.u32 2147483648, %v3853_v2  ;;  %v3863_v21 = vand.u32 2147483647, %v3853_v2  ;;  %vm3859_vm6 = vweird.f32 %v3853_v2  ;;  %v8976_v23 = vld [vmem:[#allocation42_spill] sm:$0xff] }
 0x5f0   :  { %6060 = vrcp.f32 %v3872_v20  ;;  %v3849_v24 = vmul.f32 %v6055_v42, %v3840_v63  ;;  %v3884_v53 = vand.u32 2147483648, %v3872_v20  ;;  %v3882_v38 = vand.u32 2147483647, %v3872_v20  ;;  %v5921_v42 = vld [vmem:[%s8702_s9 + $0x18] sm:$0xff] }
 0x5f1   :  { %vm3878_vm7 = vweird.f32 %v3872_v20  ;;  %v3866_v30 = vor.u32 1.1754944e-38, %v3865_v60  ;;  %vm3864_vm10 = vcmp.eq.f32.partialorder %v3863_v21, 8.507059e+37  ;;  %v5933_v21 = vld [vmem:[%s8702_s9 + $0x78] sm:$0xff] }
 0x5f2   :  { %v3916_v33 = vpack.c.bf16 %v3849_v24, %v3849_v24  ;;  %v3885_v17 = vor.u32 1.1754944e-38, %v3884_v53  ;;  %vm3883_vm11 = vcmp.eq.f32.partialorder %v3882_v38, 8.507059e+37 }
 0x5f3   :  { %v6057_v61 = vpop.eup %6056 }
 0x5f4   :  { %v3892_v48 = vadd.f32 1.0, %v6057_v61  ;;  %v3918_v58 = vrot.slane %v3916_v33, 3 }
 0x5f5   :  { %v6059_v40 = vpop.eup %6058 }
 0x5f6   :  { %v6061_v3 = vpop.eup %6060  ;;  %v3855_v9 = vmul.f32 %v6059_v40, %v3853_v2  ;;  %6062 = vrcp.f32 %v3892_v48  ;;  %3928 = vmatmul.bf16.vlgmr.msrb.gmra.mxu0 %v3918_v58  ;;  %3941 = vmatmul.bf16.vlgmr.msrb.gmra.mxu1 %v3918_v58  ;;  %vm3860_vm4 = vweird.f32 %v6059_v40  ;;  %v3904_v52 = vand.u32 2147483648, %v3892_v48 }
 0x5f7   :  { %v3874_v22 = vmul.f32 %v6061_v3, %v3872_v20  ;;  %3954 = vmatmul.bf16.vlgmr.msrb.gmra.mxu2 %v3918_v58  ;;  %3967 = vmatmul.bf16.vlgmr.msrb.gmra.mxu3 %v3918_v58  ;;  %6064 = vtanh.f32 %v3782_v54  ;;  %vm3879_vm5 = vweird.f32 %v6061_v3  ;;  %vm3861_vm8 = vmor %vm3859_vm6, %vm3860_vm4  ;;  %vm3898_vm13 = vweird.f32 %v3892_v48 }
 0x5f8   :  { %v3856_v26 = vsub.f32 1.0, %v3855_v9  ;;  %vm3880_vm9 = vmor %vm3878_vm7, %vm3879_vm5  ;;  %v3902_v43 = vand.u32 2147483647, %v3892_v48  ;;  %v3905_v31 = vor.u32 1.1754944e-38, %v3904_v52  ;;  %4302 = vmatpush.bf16.msrb.mxu0 %v5925_v49  ;;  %v8973_v2 = vperm.slane %v8972_v39, 0  ;;  %v8977_v9 = vld [vmem:[#allocation45_spill] sm:$0xff]  ;;  %4315 = vmatpush.bf16.msrb.mxu1 %v5933_v21 }
 0x5f9   :  { %v3875_v47 = vsub.f32 1.0, %v3874_v22  ;;  %v8975_v20 = vperm.slane %v8972_v39, 1  ;;  %v5926_v21 = vld [vmem:[%s8702_s9 + $0x40] sm:$0xff] }
 0x5fa   :  { %v3857_v36 = vmul.f32 %v6059_v40, %v3856_v26  ;;  %vm3903_vm15 = vcmp.eq.f32.partialorder %v3902_v43, 8.507059e+37  ;;  %v2372_v16 = vadd.f32 %v8974_v4, %v8973_v2 }
 0x5fb   :  { %v3876_v62 = vmul.f32 %v6061_v3, %v3875_v47  ;;  %v2386_v25 = vadd.f32 %v8976_v23, %v8975_v20 }
 0x5fc   :  { %v6063_v28 = vpop.eup %6062  ;;  %v3858_v50 = vadd.f32 %v6059_v40, %v3857_v36  ;;  %4303 = vmatpush.bf16.msrb.mxu0 %v5924_v55  ;;  %v5918_v36 = vld [vmem:[%s8702_s9] sm:$0xff] }
 0x5fd   :  { %v3877_v1 = vadd.f32 %v6061_v3, %v3876_v62  ;;  %v3894_v44 = vmul.f32 %v6063_v28, %v3892_v48  ;;  %v6065_v35 = vpop.eup %6064  ;;  %vm3899_vm12 = vweird.f32 %v6063_v28 }
 0x5fe   :  { %v3862_v11 = vsel %vm3861_vm8, %v6059_v40, %v3858_v50  ;;  %vm3900_vm14 = vmor %vm3898_vm13, %vm3899_vm12  ;;  %v5920_v40 = vld [vmem:[%s8702_s9 + $0x10] sm:$0xff] }
 0x5ff   :  { %v3867_v19 = vsel %vm3864_vm10, %v3866_v30, %v3862_v11  ;;  %v3881_v10 = vsel %vm3880_vm9, %v6061_v3, %v3877_v1  ;;  %v3895_v59 = vsub.f32 1.0, %v3894_v44  ;;  %v5919_v3 = vld [vmem:[%s8702_s9 + $0x8] sm:$0xff]  ;;  %v5932_v1 = vld [vmem:[%s8702_s9 + $0x70] sm:$0xff] }
 0x600   :  { %v3886_v14 = vsel %vm3883_vm11, %v3885_v17, %v3881_v10  ;;  %v3912_v6 = vmul.f32 %v6065_v35, %v3867_v19  ;;  %4304 = vmatpush.bf16.msrb.mxu0 %v5923_v57  ;;  %4316 = vmatpush.bf16.msrb.mxu1 %v5932_v1  ;;  %v5931_v17 = vld [vmem:[%s8702_s9 + $0x68] sm:$0xff]  ;;  %v5929_v57 = vld [vmem:[%s8702_s9 + $0x58] sm:$0xff] }
 0x601   :  { %v3911_v0 = vmul.f32 %v3909_v32, %v3886_v14  ;;  %v3896_v34 = vmul.f32 %v6063_v28, %v3895_v59  ;;  %v8978_v35 = vld [vmem:[#allocation44_spill] sm:$0xff] }
 0x603   :  { %v8601_v37 = vadd.f32 %v3912_v6, %v3911_v0  ;;  %v3897_v41 = vadd.f32 %v6063_v28, %v3896_v34  ;;  %v5930_v34 = vld [vmem:[%s8702_s9 + $0x60] sm:$0xff] }
 0x604   :  { %4305 = vmatpush.bf16.msrb.mxu0 %v5922_v15  ;;  %4317 = vmatpush.bf16.msrb.mxu1 %v5931_v17 }
 0x605   :  { %6066 = vtanh.f32 %v8601_v37  ;;  %v3901_v27 = vsel %vm3900_vm14, %v6063_v28, %v3897_v41 }
 0x606   :  { %v3906_v5 = vsel %vm3903_vm15, %v3905_v31, %v3901_v27 }
 0x608   :  { %4306 = vmatpush.bf16.msrb.mxu0 %v5921_v42  ;;  %4318 = vmatpush.bf16.msrb.mxu1 %v5930_v34 }
 0x60b   :  { %v6067_v13 = vpop.eup %6066 }
 0x60c   :  { %v3915_v46 = vmul.f32 %v6067_v13, %v3906_v5  ;;  %4307 = vmatpush.bf16.msrb.mxu0 %v5920_v40  ;;  %v4095_v5 = vrot.slane %v8592_v18, 6  ;;  %4319 = vmatpush.bf16.msrb.mxu1 %v5929_v57 }
 0x60e   :  { %v3976_v45 = vpack.c.bf16 %v3915_v46, %v3915_v46 }
 0x610   :  { %v3978_v51 = vrot.slane %v3976_v45, 1  ;;  %4308 = vmatpush.bf16.msrb.mxu0 %v5919_v3 }
 0x612   :  { %3988 = vmatmul.bf16.vlgmr.msra.gmra.mxu0 %v3978_v51  ;;  %4001 = vmatmul.bf16.vlgmr.msra.gmra.mxu1 %v3978_v51 }
 0x613   :  { %4014 = vmatmul.bf16.vlgmr.msra.gmra.mxu2 %v3978_v51  ;;  %4027 = vmatmul.bf16.vlgmr.msra.gmra.mxu3 %v3978_v51 }
 0x614   :  { %4309 = vmatpush.bf16.msrb.mxu0 %v5918_v36 }
 0x673   :  { %v3929_v63 = vpop.f32.mrf.mxu0  ;;  %v3942_v29 = vpop.f32.mrf.mxu1 }
 0x674   :  { %v3972_v24 = vadd.f32 %v3929_v63, %v2372_v16  ;;  %v3973_v61 = vadd.f32 %v3942_v29, %v2386_v25 }
 0x676   :  { %v5592_v33 = vmul.f32 -1.442695, %v3972_v24  ;;  %v5593_v48 = vmul.f32 -1.442695, %v3973_v61 }
 0x678   :  { %6068 = vpow2.f32 %v5592_v33 }
 0x679   :  { %6070 = vpow2.f32 %v5593_v48 }
 0x67a   :  { %v3955_v54 = vpop.f32.mrf.mxu2  ;;  %v3968_v58 = vpop.f32.mrf.mxu3 }
 0x67b   :  { %v3975_v22 = vadd.f32 %v3968_v58, %v8977_v9  ;;  %v3931_v26 = vpop.f32.mrf.mxu0  ;;  %v3944_v47 = vpop.f32.mrf.mxu1  ;;  %v3974_v19 = vadd.f32 %v3955_v54, %v8978_v35 }
 0x67d   :  { %v5594_v60 = vmul.f32 -1.442695, %v3975_v22 }
 0x67e   :  { %v6069_v53 = vpop.eup %6068 }
 0x67f   :  { %v6071_v62 = vpop.eup %6070  ;;  %v4039_v38 = vadd.f32 1.0, %v6069_v53  ;;  %6072 = vpow2.f32 %v5594_v60 }
 0x680   :  { %v4058_v28 = vadd.f32 1.0, %v6071_v62 }
 0x681   :  { %6074 = vrcp.f32 %v4039_v38  ;;  %v4049_v0 = vand.u32 2147483647, %v4039_v38  ;;  %v4051_v52 = vand.u32 2147483648, %v4039_v38  ;;  %vm4045_vm3 = vweird.f32 %v4039_v38 }
 0x682   :  { %6076 = vrcp.f32 %v4058_v28  ;;  %v3957_v50 = vpop.f32.mrf.mxu2  ;;  %v3970_v30 = vpop.f32.mrf.mxu3  ;;  %v4070_v43 = vand.u32 2147483648, %v4058_v28  ;;  %v4068_v31 = vand.u32 2147483647, %v4058_v28  ;;  %vm4064_vm2 = vweird.f32 %v4058_v28 }
 0x683   :  { %vm8654_vm4 = vcmp.eq.f32.partialorder %v4049_v0, 8.507059e+37  ;;  %v4052_v15 = vor.u32 1.1754944e-38, %v4051_v52 }
 0x684   :  { %v4071_v4 = vor.u32 1.1754944e-38, %v4070_v43  ;;  %vm4069_vm7 = vcmp.eq.f32.partialorder %v4068_v31, 8.507059e+37 }
 0x685   :  { %v6073_v44 = vpop.eup %6072 }
 0x686   :  { %v8641_v32 = vadd.f32 1.0, %v6073_v44 }
 0x687   :  { %v6075_v11 = vpop.eup %6074 }
 0x688   :  { %v6077_v10 = vpop.eup %6076  ;;  %v4041_v59 = vmul.f32 %v6075_v11, %v4039_v38  ;;  %6078 = vrcp.f32 %v8641_v32  ;;  %vm4046_vm0 = vweird.f32 %v6075_v11  ;;  %v4090_v60 = vand.u32 2147483648, %v8641_v32 }
 0x689   :  { %v4060_v14 = vmul.f32 %v6077_v10, %v4058_v28  ;;  %6080 = vtanh.f32 %v3974_v19  ;;  %vm4065_vm1 = vweird.f32 %v6077_v10  ;;  %vm4047_vm5 = vmor %vm4045_vm3, %vm4046_vm0  ;;  %vm4084_vm9 = vweird.f32 %v8641_v32 }
 0x68a   :  { %v4042_v6 = vsub.f32 1.0, %v4041_v59  ;;  %vm4066_vm6 = vmor %vm4064_vm2, %vm4065_vm1  ;;  %v4088_v53 = vand.u32 2147483647, %v8641_v32  ;;  %v4091_v50 = vor.u32 1.1754944e-38, %v4090_v60 }
 0x68b   :  { %v4061_v41 = vsub.f32 1.0, %v4060_v14 }
 0x68c   :  { %v4043_v27 = vmul.f32 %v6075_v11, %v4042_v6  ;;  %vm4089_vm11 = vcmp.eq.f32.partialorder %v4088_v53, 8.507059e+37 }
 0x68d   :  { %v4062_v13 = vmul.f32 %v6077_v10, %v4061_v41 }
 0x68e   :  { %v8652_v46 = vpop.eup %6078  ;;  %v4044_v45 = vadd.f32 %v6075_v11, %v4043_v27 }
 0x68f   :  { %v3989_v49 = vpop.f32.mrf.mxu0  ;;  %v4002_v55 = vpop.f32.mrf.mxu1  ;;  %v4063_v39 = vadd.f32 %v6077_v10, %v4062_v13  ;;  %v4080_v18 = vmul.f32 %v8652_v46, %v8641_v32  ;;  %vm4085_vm8 = vweird.f32 %v8652_v46 }
 0x690   :  { %v4032_v2 = vadd.f32 %v3989_v49, %v8892_v7  ;;  %v4048_v16 = vsel %vm4047_vm5, %v6075_v11, %v4044_v45  ;;  %v4033_v20 = vadd.f32 %v4002_v55, %v8971_v56  ;;  %v6081_v23 = vpop.eup %6080  ;;  %v5928_v7 = vld [vmem:[%s8702_s9 + $0x50] sm:$0xff]  ;;  %v5927_v56 = vld [vmem:[%s8702_s9 + $0x48] sm:$0xff]  ;;  %vm4086_vm10 = vmor %vm4084_vm9, %vm4085_vm8 }
 0x691   :  { %v4053_v25 = vsel %vm8654_vm4, %v4052_v15, %v4048_v16  ;;  %v4067_v42 = vsel %vm4066_vm6, %v6077_v10, %v4063_v39  ;;  %v4081_v63 = vsub.f32 1.0, %v4080_v18  ;;  %4320 = vmatpush.bf16.msrb.mxu1 %v5928_v7  ;;  %v4161_v39 = vrot.slane %v8601_v37, 2 }
 0x692   :  { %v5595_v29 = vmul.f32 -1.442695, %v4032_v2  ;;  %v4072_v24 = vsel %vm4069_vm7, %v4071_v4, %v4067_v42  ;;  %v4098_v61 = vmul.f32 %v6081_v23, %v4053_v25  ;;  %v5596_v33 = vmul.f32 -1.442695, %v4033_v20 }
 0x693   :  { %v4097_v48 = vmul.f32 %v4095_v5, %v4072_v24  ;;  %v4082_v40 = vmul.f32 %v8652_v46, %v4081_v63 }
 0x694   :  { %6082 = vpow2.f32 %v5595_v29 }
 0x695   :  { %6084 = vpow2.f32 %v5596_v33  ;;  %v4099_v54 = vadd.f32 %v4098_v61, %v4097_v48  ;;  %v4083_v47 = vadd.f32 %v8652_v46, %v4082_v40  ;;  %4321 = vmatpush.bf16.msrb.mxu1 %v5927_v56 }
 0x696   :  { %v4015_v58 = vpop.f32.mrf.mxu2  ;;  %v4028_v3 = vpop.f32.mrf.mxu3 }
 0x697   :  { %v4035_v9 = vadd.f32 %v4028_v3, %v8894_v8  ;;  %v3991_v22 = vpop.f32.mrf.mxu0  ;;  %v4004_v26 = vpop.f32.mrf.mxu1  ;;  %6086 = vtanh.f32 %v4099_v54  ;;  %v4087_v28 = vsel %vm4086_vm10, %v8652_v46, %v4083_v47  ;;  %v4034_v14 = vadd.f32 %v4015_v58, %v8895_v12  ;;  %v5939_v3 = vld [vmem:[%s8703_s10] ss:$0 sm:$0xff] }
 0x698   :  { %v4092_v17 = vsel %vm4089_vm11, %v4091_v50, %v4087_v28 }
 0x699   :  { %v5597_v36 = vmul.f32 -1.442695, %v4035_v9  ;;  %4322 = vmatpush.bf16.msrb.mxu1 %v5926_v21 }
 0x69a   :  { %v6083_v62 = vpop.eup %6082 }
 0x69b   :  { %v6085_v8 = vpop.eup %6084  ;;  %v4105_v38 = vadd.f32 1.0, %v6083_v62  ;;  %6088 = vpow2.f32 %v5597_v36 }
 0x69c   :  { %v4124_v30 = vadd.f32 1.0, %v6085_v8 }
 0x69d   :  { %6090 = vrcp.f32 %v4105_v38  ;;  %v6087_v1 = vpop.eup %6086  ;;  %v4117_v43 = vand.u32 2147483648, %v4105_v38  ;;  %v4115_v13 = vand.u32 2147483647, %v4105_v38  ;;  %vm4111_vm14 = vweird.f32 %v4105_v38 }
 0x69e   :  { %6092 = vrcp.f32 %v4124_v30  ;;  %v4017_v44 = vpop.f32.mrf.mxu2  ;;  %v4030_v32 = vpop.f32.mrf.mxu3  ;;  %v4101_v11 = vmul.f32 %v6087_v1, %v4092_v17  ;;  %v4136_v27 = vand.u32 2147483648, %v4124_v30  ;;  %v4134_v46 = vand.u32 2147483647, %v4124_v30 }
 0x69f   :  { %vm4130_vm15 = vweird.f32 %v4124_v30  ;;  %v4118_v12 = vor.u32 1.1754944e-38, %v4117_v43  ;;  %vm4116_vm2 = vcmp.eq.f32.partialorder %v4115_v13, 8.507059e+37 }
 0x6a0   :  { %v4168_v19 = vpack.c.bf16 %v4101_v11, %v4101_v11  ;;  %v4137_v57 = vor.u32 1.1754944e-38, %v4136_v27  ;;  %vm4135_vm3 = vcmp.eq.f32.partialorder %v4134_v46, 8.507059e+37 }
 0x6a1   :  { %v6089_v35 = vpop.eup %6088 }
 0x6a2   :  { %v4144_v10 = vadd.f32 1.0, %v6089_v35  ;;  %4310 = vmatmul.bf16.vlgmr.msrb.gmra.mxu0 %v4168_v19 }
 0x6a3   :  { %v6091_v59 = vpop.eup %6090 }
 0x6a4   :  { %v6093_v6 = vpop.eup %6092  ;;  %v4107_v0 = vmul.f32 %v6091_v59, %v4105_v38  ;;  %6094 = vrcp.f32 %v4144_v10  ;;  %vm4112_vm12 = vweird.f32 %v6091_v59  ;;  %v4156_v24 = vand.u32 2147483648, %v4144_v10 }
 0x6a5   :  { %v4126_v34 = vmul.f32 %v6093_v6, %v4124_v30  ;;  %6096 = vtanh.f32 %v4034_v14  ;;  %vm4131_vm13 = vweird.f32 %v6093_v6  ;;  %vm4113_vm0 = vmor %vm4111_vm14, %vm4112_vm12  ;;  %vm4150_vm5 = vweird.f32 %v4144_v10 }
 0x6a6   :  { %v4108_v41 = vsub.f32 1.0, %v4107_v0  ;;  %vm4132_vm1 = vmor %vm4130_vm15, %vm4131_vm13  ;;  %v4154_v61 = vand.u32 2147483647, %v4144_v10  ;;  %v4157_v7 = vor.u32 1.1754944e-38, %v4156_v24 }
 0x6a7   :  { %v4127_v52 = vsub.f32 1.0, %v4126_v34 }
 0x6a8   :  { %v4109_v31 = vmul.f32 %v6091_v59, %v4108_v41  ;;  %vm4155_vm7 = vcmp.eq.f32.partialorder %v4154_v61, 8.507059e+37 }
 0x6a9   :  { %v4128_v5 = vmul.f32 %v6093_v6, %v4127_v52 }
 0x6aa   :  { %v6095_v45 = vpop.eup %6094  ;;  %v4110_v51 = vadd.f32 %v6091_v59, %v4109_v31 }
 0x6ab   :  { %v4129_v49 = vadd.f32 %v6093_v6, %v4128_v5  ;;  %v4146_v55 = vmul.f32 %v6095_v45, %v4144_v10  ;;  %v6097_v18 = vpop.eup %6096  ;;  %vm4151_vm4 = vweird.f32 %v6095_v45 }
 0x6ac   :  { %v4114_v15 = vsel %vm4113_vm0, %v6091_v59, %v4110_v51  ;;  %vm4152_vm6 = vmor %vm4150_vm5, %vm4151_vm4 }
 0x6ad   :  { %v4119_v2 = vsel %vm4116_vm2, %v4118_v12, %v4114_v15  ;;  %v4133_v4 = vsel %vm4132_vm1, %v6093_v6, %v4129_v49  ;;  %v4147_v16 = vsub.f32 1.0, %v4146_v55 }
 0x6ae   :  { %v4138_v20 = vsel %vm4135_vm3, %v4137_v57, %v4133_v4  ;;  %v4164_v23 = vmul.f32 %v6097_v18, %v4119_v2 }
 0x6af   :  { %v4163_v25 = vmul.f32 %v4161_v39, %v4138_v20  ;;  %v4148_v42 = vmul.f32 %v6095_v45, %v4147_v16 }
 0x6b1   :  { %v4165_v63 = vadd.f32 %v4164_v23, %v4163_v25  ;;  %v4149_v29 = vadd.f32 %v6095_v45, %v4148_v42 }
 0x6b3   :  { %6098 = vtanh.f32 %v4165_v63  ;;  %v4153_v33 = vsel %vm4152_vm6, %v6095_v45, %v4149_v29 }
 0x6b4   :  { %v4158_v48 = vsel %vm4155_vm7, %v4157_v7, %v4153_v33 }
 0x6b9   :  { %v6099_v37 = vpop.eup %6098 }
 0x6ba   :  { %v4167_v40 = vmul.f32 %v6099_v37, %v4158_v48 }
 0x6bc   :  { %v4169_v56 = vpack.c.bf16 %v4167_v40, %v4167_v40 }
 0x6be   :  { %4323 = vmatmul.bf16.vlgmr.msrb.gmra.mxu1 %v4169_v56 }
 0x71f   :  { %v4311_v54 = vpop.f32.mrf.mxu0 }
 0x720   :  { %v4312_v9 = vadd.f32 %v5939_v3, %v4311_v54 }
 0x727   :  { %v4313_v58 = vpop.f32.mrf.mxu0 }
 0x73b   :  { %v4324_v22 = vpop.f32.mrf.mxu1 }
 0x73c   :  { %v4325_v26 = vadd.f32 %v4324_v22, %v4312_v9 }
 0x73e   :  { %4328 = vst [vmem:[#allocation4] sm:$0x3] %v4325_v26 }
 0x73f   :  { %4339 = dma.vmem_to_hbm [thread:$0]  %s4335_s2, 32, %s4337_s30, [#allocation5]  }
 0x743   :  { %v4326_v47 = vpop.f32.mrf.mxu1 }
 0x744   :  { %6124 = dma.done.wait [#allocation5], 32  }
 0x745   :  { %6125 = vsyncadd [#allocation5], 4294967264 }
 0x746   :  { %4344 = vsyncpa [#allocation5], 1 }

</bundles_post_ra>
